<compile_context>
chip_gen: v6e
topology: v6e:2x2x1
jax: 0.10.0
libtpu: 0.0.40
codegen_flags: <defaults>
</compile_context>

<pallas_src>
import functools

import jax
import jax.numpy as jnp
from jax import lax
from jax.experimental import pallas as pl
from jax.experimental.pallas import tpu as pltpu


_SLAB_OFF = 8  # core rows live at this sublane-aligned offset inside the slab scratch


def _conv3x3_unshuffle_kernel(x_core_ref, x_top_ref, x_bot_ref, rsel_ref,
                              csel_ref, w_ref, o_ref, slab_ref, *,
                              cin, cout, tile_h, width, halo_blk, co_group):
    """One (batch, row-tile) step: 3x3 SAME conv (pad fused) + PixelUnshuffle(2).

    x_core_ref : (1, Cin, tile_h, W)      input rows [t*tile_h, (t+1)*tile_h)
    x_top_ref  : (1, Cin, halo_blk, W)    block whose LAST row is row t*tile_h - 1
    x_bot_ref  : (1, Cin, halo_blk, W)    block whose FIRST row is row (t+1)*tile_h
    rsel_ref   : (2, tile_h//2, tile_h)   row-parity selectors (even/odd output rows)
    csel_ref   : (3, 2, W, W//2)          per-kx column shift + parity selectors
                                          (horizontal zero pad baked in)
    w_ref      : (Cout*Cin*9,) in SMEM    flat OIHW conv weights (scalar reads)
    o_ref      : (1, 4*Cout, tile_h//2, W//2)
    slab_ref   : (Cin, tile_h+16, W)      VMEM scratch: vertically haloed slab
    """
    t = pl.program_id(1)
    n_tiles = pl.num_programs(1)
    in_dt = slab_ref.dtype

    # ---- Stage the vertically haloed slab; the zero pad rows are fused via
    # 0/1 gates on the halo rows (top invalid at t==0, bottom at the last tile).
    top_gate = (t > 0).astype(in_dt)
    bot_gate = (t < n_tiles - 1).astype(in_dt)
    slab_ref[:, _SLAB_OFF - 1:_SLAB_OFF, :] = (
        x_top_ref[0, :, halo_blk - 1:halo_blk, :] * top_gate)
    slab_ref[:, _SLAB_OFF:_SLAB_OFF + tile_h, :] = x_core_ref[0, :, :, :]
    slab_ref[:, _SLAB_OFF + tile_h:_SLAB_OFF + tile_h + 1, :] = (
        x_bot_ref[0, :, 0:1, :] * bot_gate)

    # ---- 3x3 conv as scalar-weight VPU FMAs into per-kx f32 accumulators.
    for g0 in range(0, cout, co_group):
        cos = list(range(g0, min(g0 + co_group, cout)))
        accs = {(co, kx): jnp.zeros((tile_h, width), jnp.float32)
                for co in cos for kx in range(3)}

        for ci in range(cin):
            for ky in range(3):
                base = slab_ref[ci,
                                _SLAB_OFF - 1 + ky:_SLAB_OFF - 1 + ky + tile_h, :]
                base = base.astype(jnp.float32)
                for co in cos:
                    for kx in range(3):
                        widx = ((co * cin + ci) * 3 + ky) * 3 + kx
                        accs[(co, kx)] = accs[(co, kx)] + w_ref[widx] * base

        # ---- Fused horizontal shift + horizontal pad + PixelUnshuffle(2):
        # exact 0/1-selector matmuls on the otherwise-idle MXU, then contiguous
        # stores directly into the unshuffled output layout.
        for co in cos:
            for j in range(2):                      # output column parity
                cols = None
                for kx in range(3):
                    contrib = jnp.dot(accs[(co, kx)], csel_ref[kx, j, :, :],
                                      precision=lax.Precision.HIGHEST,
                                      preferred_element_type=jnp.float32)
                    cols = contrib if cols is None else cols + contrib
                for i in range(2):                  # output row parity
                    quad = jnp.dot(rsel_ref[i, :, :], cols,
                                   precision=lax.Precision.HIGHEST,
                                   preferred_element_type=jnp.float32)
                    o_ref[0, 4 * co + 2 * i + j, :, :] = quad.astype(o_ref.dtype)


def _pick_tile_h(h, w):
    """Largest row tile that divides H, is a multiple of 16 (so the unshuffled
    output tile stays sublane-aligned) and keeps one f32 acc within ~8 vregs."""
    divisors = [th for th in (128, 64, 32, 16) if h % th == 0]
    if not divisors:
        return h                       # small / irregular even H: single tile
    for th in divisors:
        if th * w <= 8 * 1024:
            return th
    return divisors[-1]


def _build_row_selectors(tile_h):
    """(2, tile_h//2, tile_h): rsel[i][m, y] = 1 iff y == 2*m + i."""
    th2 = tile_h // 2
    m = jnp.arange(th2)
    y = jnp.arange(tile_h)
    return jnp.stack([(y[None, :] == (2 * m + i)[:, None]).astype(jnp.float32)
                      for i in range(2)])


def _build_col_selectors(width):
    """(3, 2, W, W//2): csel[kx, j][s, k] = 1 iff s == 2*k + j + kx - 1 (in range).

    Implements the +/-1 column shift of the 3x3 window, the horizontal zero
    pad (out-of-range sources select nothing) and the column-parity split of
    PixelUnshuffle(2) in one exact permutation-like matrix per (kx, parity).
    """
    w2 = width // 2
    k = jnp.arange(w2)
    s = jnp.arange(width)
    per_kx = []
    for kx in range(3):
        per_j = []
        for j in range(2):
            src = 2 * k + j + (kx - 1)
            valid = (src >= 0) & (src < width)
            m = (s[:, None] == src[None, :]) & valid[None, :]
            per_j.append(m.astype(jnp.float32))
        per_kx.append(jnp.stack(per_j))
    return jnp.stack(per_kx)


def downsample(x_nchw, w_oihw):
    """Forward pass of Downsample: conv3x3 (bias=False) + PixelUnshuffle(2)."""
    N, Cin, H, W = x_nchw.shape
    Cout = w_oihw.shape[0]                     # = n_feat // 2
    assert w_oihw.shape == (Cout, Cin, 3, 3)
    assert H % 2 == 0 and W % 2 == 0 and H >= 2 and W >= 2
    # Scalar-weight SMEM path only (small n_feat); large n_feat needs the
    # im2col MXU path (see TODO at top of file).
    assert Cout * Cin * 9 <= 16 * 1024

    tile_h = _pick_tile_h(H, W)
    n_tiles = H // tile_h
    halo_blk = 8 if H % 8 == 0 else tile_h     # 8-row halo blocks when possible
    hb_per_tile = tile_h // halo_blk
    n_hblocks = H // halo_blk

    rsel = _build_row_selectors(tile_h)
    csel = _build_col_selectors(W)
    w_flat = w_oihw.reshape(-1).astype(jnp.float32)

    # Keep the live accumulator set (3 per output channel) within ~24 vregs.
    co_group = max(1, min(Cout, (24 * 1024) // max(1, 3 * tile_h * W)))

    kernel = functools.partial(
        _conv3x3_unshuffle_kernel, cin=Cin, cout=Cout, tile_h=tile_h,
        width=W, halo_blk=halo_blk, co_group=co_group)

    # VMEM budget: double-buffered blocks + slab scratch + headroom, capped at
    # 56 MiB so it always fits v7x's 64 MiB per-TC VMEM.
    itemsize = jnp.dtype(x_nchw.dtype).itemsize
    core_b = Cin * tile_h * W * itemsize
    halo_b = 2 * Cin * halo_blk * W * itemsize
    out_b = Cout * tile_h * W * itemsize
    sel_b = (2 * (tile_h // 2) * tile_h + 3 * 2 * W * (W // 2)) * 4
    slab_b = Cin * (tile_h + 16) * W * itemsize
    vmem_limit = int(min(56 << 20,
                         max(24 << 20,
                             2 * (core_b + halo_b + out_b + sel_b)
                             + slab_b + (8 << 20))))

    grid = (N, n_tiles)                        # disjoint outputs -> both parallel

    out = pl.pallas_call(
        kernel,
        out_shape=jax.ShapeDtypeStruct((N, 4 * Cout, H // 2, W // 2),
                                       x_nchw.dtype),
        grid_spec=pltpu.PrefetchScalarGridSpec(
            num_scalar_prefetch=0,
            grid=grid,
            in_specs=[
                # Core row tile.
                pl.BlockSpec((1, Cin, tile_h, W), lambda n, t: (n, 0, t, 0)),
                # Halo block whose last row is t*tile_h - 1 (clamped at t == 0).
                pl.BlockSpec(
                    (1, Cin, halo_blk, W),
                    lambda n, t: (n, 0, jnp.maximum(t * hb_per_tile - 1, 0), 0)),
                # Halo block whose first row is (t+1)*tile_h (clamped at last t).
                pl.BlockSpec(
                    (1, Cin, halo_blk, W),
                    lambda n, t: (n, 0, jnp.minimum((t + 1) * hb_per_tile,
                                                    n_hblocks - 1), 0)),
                # Constant selector matrices (resident: block index never changes).
                pl.BlockSpec((2, tile_h // 2, tile_h), lambda n, t: (0, 0, 0)),
                pl.BlockSpec((3, 2, W, W // 2), lambda n, t: (0, 0, 0, 0)),
                # Flat conv weights, whole array in SMEM (scalar reads).
                pl.BlockSpec(memory_space=pltpu.MemorySpace.SMEM),
            ],
            out_specs=pl.BlockSpec((1, 4 * Cout, tile_h // 2, W // 2),
                                   lambda n, t: (n, 0, t, 0)),
            scratch_shapes=[pltpu.VMEM((Cin, tile_h + 16, W), x_nchw.dtype)],
        ),
        compiler_params=pltpu.CompilerParams(
            dimension_semantics=("parallel", "parallel"),
            vmem_limit_bytes=vmem_limit),
    )(x_nchw, x_nchw, x_nchw, rsel, csel, w_flat)
    return out


def reference_downsample(x_nchw, w_oihw):
    """Pure-JAX reference (lax.conv) for correctness checking."""
    N, Cin, H, W = x_nchw.shape
    Cout = w_oihw.shape[0]
    y = lax.conv_general_dilated(
        x_nchw, w_oihw, window_strides=(1, 1), padding=((1, 1), (1, 1)),
        dimension_numbers=("NCHW", "OIHW", "NCHW"))
    # torch.nn.PixelUnshuffle(2): out[:, c*4 + 2*i + j, h, w] = y[:, c, 2h+i, 2w+j]
    y = y.reshape(N, Cout, H // 2, 2, W // 2, 2)
    y = jnp.transpose(y, (0, 1, 3, 5, 2, 4))
    return y.reshape(N, Cout * 4, H // 2, W // 2)


if __name__ == "__main__":
    n_feat = 4
    N, H, W = 2, 16, 16

    key = jax.random.PRNGKey(0)
    kx_key, kw_key = jax.random.split(key)

    x = jax.random.normal(kx_key, (N, n_feat, H, W), dtype=jnp.float32)
    # Conv2d(n_feat, n_feat//2, 3, bias=False) weight: (Cout, Cin, 3, 3)
    fan_in = n_feat * 3 * 3
    w = jax.random.normal(kw_key, (n_feat // 2, n_feat, 3, 3),
                          dtype=jnp.float32) * (1.0 / jnp.sqrt(fan_in))

    out = jax.block_until_ready(jax.jit(downsample)(x, w))
    ref = jax.block_until_ready(reference_downsample(x, w))

    assert out.shape == (N, 2 * n_feat, H // 2, W // 2), out.shape
    max_err = float(jnp.max(jnp.abs(out - ref)))
    assert jnp.allclose(out, ref, atol=1e-5, rtol=1e-5), max_err

    print("KERNEL_OK")
</pallas_src>

<mosaic_0001>
module attributes {stable_mosaic.version = 11 : i64} {
  func.func @_conv3x3_unshuffle_kernel(%arg0: i32, %arg1: i32, %arg2: memref<1x4x16x16xf32, #tpu.memory_space<vmem>>, %arg3: memref<1x4x8x16xf32, #tpu.memory_space<vmem>>, %arg4: memref<1x4x8x16xf32, #tpu.memory_space<vmem>>, %arg5: memref<2x8x16xf32, #tpu.memory_space<vmem>>, %arg6: memref<3x2x16x8xf32, #tpu.memory_space<vmem>>, %arg7: memref<72xf32, #tpu.memory_space<smem>>, %arg8: memref<1x8x8x8xf32, #tpu.memory_space<vmem>>, %arg9: memref<4x32x16xf32, #tpu.memory_space<vmem>>) attributes {dimension_semantics = [#tpu.dimension_semantics<parallel>, #tpu.dimension_semantics<parallel>], iteration_bounds = array<i64: 2, 1>, scalar_prefetch = 0 : i64, scratch_operands = 1 : i64, tpu.core_type = #tpu.core_type<tc>, window_params = [{transform_indices = @transform_0, window_bounds = array<i64: 1, 4, 16, 16>}, {transform_indices = @transform_1, window_bounds = array<i64: 1, 4, 8, 16>}, {transform_indices = @transform_2, window_bounds = array<i64: 1, 4, 8, 16>}, {pipeline_mode = #tpu.pipeline_mode<synchronous>, transform_indices = @transform_3, window_bounds = array<i64: 2, 8, 16>}, {pipeline_mode = #tpu.pipeline_mode<synchronous>, transform_indices = @transform_4, window_bounds = array<i64: 3, 2, 16, 8>}, {transform_indices = @transform_5, window_bounds = array<i64: 72>}, {transform_indices = @transform_6, window_bounds = array<i64: 1, 8, 8, 8>}]} {
    %c0_i32 = arith.constant 0 : i32
    %0 = arith.cmpi sgt, %arg1, %c0_i32 : i32
    %1 = arith.extui %0 : i1 to i32
    %2 = arith.sitofp %1 : i32 to f32
    %c0_i32_0 = arith.constant 0 : i32
    %3 = arith.cmpi slt, %arg1, %c0_i32_0 : i32
    %4 = arith.extui %3 : i1 to i32
    %5 = arith.sitofp %4 : i32 to f32
    %c0 = arith.constant 0 : index
    %c0_1 = arith.constant 0 : index
    %c7 = arith.constant 7 : index
    %c0_2 = arith.constant 0 : index
    %6 = vector.load %arg3[%c0, %c0_1, %c7, %c0_2] : memref<1x4x8x16xf32, #tpu.memory_space<vmem>>, vector<1x4x1x16xf32>
    %7 = vector.shape_cast %6 : vector<1x4x1x16xf32> to vector<4x1x16xf32>
    %8 = vector.broadcast %2 : f32 to vector<4x1x16xf32>
    %9 = arith.mulf %7, %8 : vector<4x1x16xf32>
    %c0_3 = arith.constant 0 : index
    %c7_4 = arith.constant 7 : index
    %c0_5 = arith.constant 0 : index
    %10 = vector.load %arg9[%c0_3, %c7_4, %c0_5] : memref<4x32x16xf32, #tpu.memory_space<vmem>>, vector<4x1x16xf32>
    tpu.vector_store %arg9[%c0_3, %c7_4, %c0_5], %9 {strides = array<i32>} : memref<4x32x16xf32, #tpu.memory_space<vmem>>, vector<4x1x16xf32>,
    %c0_6 = arith.constant 0 : index
    %c0_7 = arith.constant 0 : index
    %c0_8 = arith.constant 0 : index
    %c0_9 = arith.constant 0 : index
    %11 = vector.load %arg2[%c0_6, %c0_7, %c0_8, %c0_9] : memref<1x4x16x16xf32, #tpu.memory_space<vmem>>, vector<1x4x16x16xf32>
    %12 = vector.shape_cast %11 : vector<1x4x16x16xf32> to vector<4x16x16xf32>
    %c0_10 = arith.constant 0 : index
    %c8 = arith.constant 8 : index
    %c0_11 = arith.constant 0 : index
    %13 = vector.load %arg9[%c0_10, %c8, %c0_11] : memref<4x32x16xf32, #tpu.memory_space<vmem>>, vector<4x16x16xf32>
    tpu.vector_store %arg9[%c0_10, %c8, %c0_11], %12 {strides = array<i32>} : memref<4x32x16xf32, #tpu.memory_space<vmem>>, vector<4x16x16xf32>,
    %c0_12 = arith.constant 0 : index
    %c0_13 = arith.constant 0 : index
    %c0_14 = arith.constant 0 : index
    %c0_15 = arith.constant 0 : index
    %14 = vector.load %arg4[%c0_12, %c0_13, %c0_14, %c0_15] : memref<1x4x8x16xf32, #tpu.memory_space<vmem>>, vector<1x4x1x16xf32>
    %15 = vector.shape_cast %14 : vector<1x4x1x16xf32> to vector<4x1x16xf32>
    %16 = vector.broadcast %5 : f32 to vector<4x1x16xf32>
    %17 = arith.mulf %15, %16 : vector<4x1x16xf32>
    %c0_16 = arith.constant 0 : index
    %c24 = arith.constant 24 : index
    %c0_17 = arith.constant 0 : index
    %18 = vector.load %arg9[%c0_16, %c24, %c0_17] : memref<4x32x16xf32, #tpu.memory_space<vmem>>, vector<4x1x16xf32>
    tpu.vector_store %arg9[%c0_16, %c24, %c0_17], %17 {strides = array<i32>} : memref<4x32x16xf32, #tpu.memory_space<vmem>>, vector<4x1x16xf32>,
    %cst = arith.constant 0.000000e+00 : f32
    %19 = vector.broadcast %cst : f32 to vector<16x16xf32>
    %cst_18 = arith.constant 0.000000e+00 : f32
    %20 = vector.broadcast %cst_18 : f32 to vector<16x16xf32>
    %cst_19 = arith.constant 0.000000e+00 : f32
    %21 = vector.broadcast %cst_19 : f32 to vector<16x16xf32>
    %cst_20 = arith.constant 0.000000e+00 : f32
    %22 = vector.broadcast %cst_20 : f32 to vector<16x16xf32>
    %cst_21 = arith.constant 0.000000e+00 : f32
    %23 = vector.broadcast %cst_21 : f32 to vector<16x16xf32>
    %cst_22 = arith.constant 0.000000e+00 : f32
    %24 = vector.broadcast %cst_22 : f32 to vector<16x16xf32>
    %c0_23 = arith.constant 0 : index
    %c7_24 = arith.constant 7 : index
    %c0_25 = arith.constant 0 : index
    %25 = vector.load %arg9[%c0_23, %c7_24, %c0_25] : memref<4x32x16xf32, #tpu.memory_space<vmem>>, vector<1x16x16xf32>
    %26 = vector.shape_cast %25 : vector<1x16x16xf32> to vector<16x16xf32>
    %c0_26 = arith.constant 0 : index
    %27 = memref.load %arg7[%c0_26] : memref<72xf32, #tpu.memory_space<smem>>
    %28 = vector.broadcast %27 : f32 to vector<16x16xf32>
    %29 = arith.mulf %28, %26 : vector<16x16xf32>
    %30 = arith.addf %19, %29 : vector<16x16xf32>
    %c1 = arith.constant 1 : index
    %31 = memref.load %arg7[%c1] : memref<72xf32, #tpu.memory_space<smem>>
    %32 = vector.broadcast %31 : f32 to vector<16x16xf32>
    %33 = arith.mulf %32, %26 : vector<16x16xf32>
    %34 = arith.addf %20, %33 : vector<16x16xf32>
    %c2 = arith.constant 2 : index
    %35 = memref.load %arg7[%c2] : memref<72xf32, #tpu.memory_space<smem>>
    %36 = vector.broadcast %35 : f32 to vector<16x16xf32>
    %37 = arith.mulf %36, %26 : vector<16x16xf32>
    %38 = arith.addf %21, %37 : vector<16x16xf32>
    %c36 = arith.constant 36 : index
    %39 = memref.load %arg7[%c36] : memref<72xf32, #tpu.memory_space<smem>>
    %40 = vector.broadcast %39 : f32 to vector<16x16xf32>
    %41 = arith.mulf %40, %26 : vector<16x16xf32>
    %42 = arith.addf %22, %41 : vector<16x16xf32>
    %c37 = arith.constant 37 : index
    %43 = memref.load %arg7[%c37] : memref<72xf32, #tpu.memory_space<smem>>
    %44 = vector.broadcast %43 : f32 to vector<16x16xf32>
    %45 = arith.mulf %44, %26 : vector<16x16xf32>
    %46 = arith.addf %23, %45 : vector<16x16xf32>
    %c38 = arith.constant 38 : index
    %47 = memref.load %arg7[%c38] : memref<72xf32, #tpu.memory_space<smem>>
    %48 = vector.broadcast %47 : f32 to vector<16x16xf32>
    %49 = arith.mulf %48, %26 : vector<16x16xf32>
    %50 = arith.addf %24, %49 : vector<16x16xf32>
    %c0_27 = arith.constant 0 : index
    %c8_28 = arith.constant 8 : index
    %c0_29 = arith.constant 0 : index
    %51 = vector.load %arg9[%c0_27, %c8_28, %c0_29] : memref<4x32x16xf32, #tpu.memory_space<vmem>>, vector<1x16x16xf32>
    %52 = vector.shape_cast %51 : vector<1x16x16xf32> to vector<16x16xf32>
    %c3 = arith.constant 3 : index
    %53 = memref.load %arg7[%c3] : memref<72xf32, #tpu.memory_space<smem>>
    %54 = vector.broadcast %53 : f32 to vector<16x16xf32>
    %55 = arith.mulf %54, %52 : vector<16x16xf32>
    %56 = arith.addf %30, %55 : vector<16x16xf32>
    %c4 = arith.constant 4 : index
    %57 = memref.load %arg7[%c4] : memref<72xf32, #tpu.memory_space<smem>>
    %58 = vector.broadcast %57 : f32 to vector<16x16xf32>
    %59 = arith.mulf %58, %52 : vector<16x16xf32>
    %60 = arith.addf %34, %59 : vector<16x16xf32>
    %c5 = arith.constant 5 : index
    %61 = memref.load %arg7[%c5] : memref<72xf32, #tpu.memory_space<smem>>
    %62 = vector.broadcast %61 : f32 to vector<16x16xf32>
    %63 = arith.mulf %62, %52 : vector<16x16xf32>
    %64 = arith.addf %38, %63 : vector<16x16xf32>
    %c39 = arith.constant 39 : index
    %65 = memref.load %arg7[%c39] : memref<72xf32, #tpu.memory_space<smem>>
    %66 = vector.broadcast %65 : f32 to vector<16x16xf32>
    %67 = arith.mulf %66, %52 : vector<16x16xf32>
    %68 = arith.addf %42, %67 : vector<16x16xf32>
    %c40 = arith.constant 40 : index
    %69 = memref.load %arg7[%c40] : memref<72xf32, #tpu.memory_space<smem>>
    %70 = vector.broadcast %69 : f32 to vector<16x16xf32>
    %71 = arith.mulf %70, %52 : vector<16x16xf32>
    %72 = arith.addf %46, %71 : vector<16x16xf32>
    %c41 = arith.constant 41 : index
    %73 = memref.load %arg7[%c41] : memref<72xf32, #tpu.memory_space<smem>>
    %74 = vector.broadcast %73 : f32 to vector<16x16xf32>
    %75 = arith.mulf %74, %52 : vector<16x16xf32>
    %76 = arith.addf %50, %75 : vector<16x16xf32>
    %c0_30 = arith.constant 0 : index
    %c9 = arith.constant 9 : index
    %c0_31 = arith.constant 0 : index
    %77 = vector.load %arg9[%c0_30, %c9, %c0_31] : memref<4x32x16xf32, #tpu.memory_space<vmem>>, vector<1x16x16xf32>
    %78 = vector.shape_cast %77 : vector<1x16x16xf32> to vector<16x16xf32>
    %c6 = arith.constant 6 : index
    %79 = memref.load %arg7[%c6] : memref<72xf32, #tpu.memory_space<smem>>
    %80 = vector.broadcast %79 : f32 to vector<16x16xf32>
    %81 = arith.mulf %80, %78 : vector<16x16xf32>
    %82 = arith.addf %56, %81 : vector<16x16xf32>
    %c7_32 = arith.constant 7 : index
    %83 = memref.load %arg7[%c7_32] : memref<72xf32, #tpu.memory_space<smem>>
    %84 = vector.broadcast %83 : f32 to vector<16x16xf32>
    %85 = arith.mulf %84, %78 : vector<16x16xf32>
    %86 = arith.addf %60, %85 : vector<16x16xf32>
    %c8_33 = arith.constant 8 : index
    %87 = memref.load %arg7[%c8_33] : memref<72xf32, #tpu.memory_space<smem>>
    %88 = vector.broadcast %87 : f32 to vector<16x16xf32>
    %89 = arith.mulf %88, %78 : vector<16x16xf32>
    %90 = arith.addf %64, %89 : vector<16x16xf32>
    %c42 = arith.constant 42 : index
    %91 = memref.load %arg7[%c42] : memref<72xf32, #tpu.memory_space<smem>>
    %92 = vector.broadcast %91 : f32 to vector<16x16xf32>
    %93 = arith.mulf %92, %78 : vector<16x16xf32>
    %94 = arith.addf %68, %93 : vector<16x16xf32>
    %c43 = arith.constant 43 : index
    %95 = memref.load %arg7[%c43] : memref<72xf32, #tpu.memory_space<smem>>
    %96 = vector.broadcast %95 : f32 to vector<16x16xf32>
    %97 = arith.mulf %96, %78 : vector<16x16xf32>
    %98 = arith.addf %72, %97 : vector<16x16xf32>
    %c44 = arith.constant 44 : index
    %99 = memref.load %arg7[%c44] : memref<72xf32, #tpu.memory_space<smem>>
    %100 = vector.broadcast %99 : f32 to vector<16x16xf32>
    %101 = arith.mulf %100, %78 : vector<16x16xf32>
    %102 = arith.addf %76, %101 : vector<16x16xf32>
    %c1_34 = arith.constant 1 : index
    %c7_35 = arith.constant 7 : index
    %c0_36 = arith.constant 0 : index
    %103 = vector.load %arg9[%c1_34, %c7_35, %c0_36] : memref<4x32x16xf32, #tpu.memory_space<vmem>>, vector<1x16x16xf32>
    %104 = vector.shape_cast %103 : vector<1x16x16xf32> to vector<16x16xf32>
    %c9_37 = arith.constant 9 : index
    %105 = memref.load %arg7[%c9_37] : memref<72xf32, #tpu.memory_space<smem>>
    %106 = vector.broadcast %105 : f32 to vector<16x16xf32>
    %107 = arith.mulf %106, %104 : vector<16x16xf32>
    %108 = arith.addf %82, %107 : vector<16x16xf32>
    %c10 = arith.constant 10 : index
    %109 = memref.load %arg7[%c10] : memref<72xf32, #tpu.memory_space<smem>>
    %110 = vector.broadcast %109 : f32 to vector<16x16xf32>
    %111 = arith.mulf %110, %104 : vector<16x16xf32>
    %112 = arith.addf %86, %111 : vector<16x16xf32>
    %c11 = arith.constant 11 : index
    %113 = memref.load %arg7[%c11] : memref<72xf32, #tpu.memory_space<smem>>
    %114 = vector.broadcast %113 : f32 to vector<16x16xf32>
    %115 = arith.mulf %114, %104 : vector<16x16xf32>
    %116 = arith.addf %90, %115 : vector<16x16xf32>
    %c45 = arith.constant 45 : index
    %117 = memref.load %arg7[%c45] : memref<72xf32, #tpu.memory_space<smem>>
    %118 = vector.broadcast %117 : f32 to vector<16x16xf32>
    %119 = arith.mulf %118, %104 : vector<16x16xf32>
    %120 = arith.addf %94, %119 : vector<16x16xf32>
    %c46 = arith.constant 46 : index
    %121 = memref.load %arg7[%c46] : memref<72xf32, #tpu.memory_space<smem>>
    %122 = vector.broadcast %121 : f32 to vector<16x16xf32>
    %123 = arith.mulf %122, %104 : vector<16x16xf32>
    %124 = arith.addf %98, %123 : vector<16x16xf32>
    %c47 = arith.constant 47 : index
    %125 = memref.load %arg7[%c47] : memref<72xf32, #tpu.memory_space<smem>>
    %126 = vector.broadcast %125 : f32 to vector<16x16xf32>
    %127 = arith.mulf %126, %104 : vector<16x16xf32>
    %128 = arith.addf %102, %127 : vector<16x16xf32>
    %c1_38 = arith.constant 1 : index
    %c8_39 = arith.constant 8 : index
    %c0_40 = arith.constant 0 : index
    %129 = vector.load %arg9[%c1_38, %c8_39, %c0_40] : memref<4x32x16xf32, #tpu.memory_space<vmem>>, vector<1x16x16xf32>
    %130 = vector.shape_cast %129 : vector<1x16x16xf32> to vector<16x16xf32>
    %c12 = arith.constant 12 : index
    %131 = memref.load %arg7[%c12] : memref<72xf32, #tpu.memory_space<smem>>
    %132 = vector.broadcast %131 : f32 to vector<16x16xf32>
    %133 = arith.mulf %132, %130 : vector<16x16xf32>
    %134 = arith.addf %108, %133 : vector<16x16xf32>
    %c13 = arith.constant 13 : index
    %135 = memref.load %arg7[%c13] : memref<72xf32, #tpu.memory_space<smem>>
    %136 = vector.broadcast %135 : f32 to vector<16x16xf32>
    %137 = arith.mulf %136, %130 : vector<16x16xf32>
    %138 = arith.addf %112, %137 : vector<16x16xf32>
    %c14 = arith.constant 14 : index
    %139 = memref.load %arg7[%c14] : memref<72xf32, #tpu.memory_space<smem>>
    %140 = vector.broadcast %139 : f32 to vector<16x16xf32>
    %141 = arith.mulf %140, %130 : vector<16x16xf32>
    %142 = arith.addf %116, %141 : vector<16x16xf32>
    %c48 = arith.constant 48 : index
    %143 = memref.load %arg7[%c48] : memref<72xf32, #tpu.memory_space<smem>>
    %144 = vector.broadcast %143 : f32 to vector<16x16xf32>
    %145 = arith.mulf %144, %130 : vector<16x16xf32>
    %146 = arith.addf %120, %145 : vector<16x16xf32>
    %c49 = arith.constant 49 : index
    %147 = memref.load %arg7[%c49] : memref<72xf32, #tpu.memory_space<smem>>
    %148 = vector.broadcast %147 : f32 to vector<16x16xf32>
    %149 = arith.mulf %148, %130 : vector<16x16xf32>
    %150 = arith.addf %124, %149 : vector<16x16xf32>
    %c50 = arith.constant 50 : index
    %151 = memref.load %arg7[%c50] : memref<72xf32, #tpu.memory_space<smem>>
    %152 = vector.broadcast %151 : f32 to vector<16x16xf32>
    %153 = arith.mulf %152, %130 : vector<16x16xf32>
    %154 = arith.addf %128, %153 : vector<16x16xf32>
    %c1_41 = arith.constant 1 : index
    %c9_42 = arith.constant 9 : index
    %c0_43 = arith.constant 0 : index
    %155 = vector.load %arg9[%c1_41, %c9_42, %c0_43] : memref<4x32x16xf32, #tpu.memory_space<vmem>>, vector<1x16x16xf32>
    %156 = vector.shape_cast %155 : vector<1x16x16xf32> to vector<16x16xf32>
    %c15 = arith.constant 15 : index
    %157 = memref.load %arg7[%c15] : memref<72xf32, #tpu.memory_space<smem>>
    %158 = vector.broadcast %157 : f32 to vector<16x16xf32>
    %159 = arith.mulf %158, %156 : vector<16x16xf32>
    %160 = arith.addf %134, %159 : vector<16x16xf32>
    %c16 = arith.constant 16 : index
    %161 = memref.load %arg7[%c16] : memref<72xf32, #tpu.memory_space<smem>>
    %162 = vector.broadcast %161 : f32 to vector<16x16xf32>
    %163 = arith.mulf %162, %156 : vector<16x16xf32>
    %164 = arith.addf %138, %163 : vector<16x16xf32>
    %c17 = arith.constant 17 : index
    %165 = memref.load %arg7[%c17] : memref<72xf32, #tpu.memory_space<smem>>
    %166 = vector.broadcast %165 : f32 to vector<16x16xf32>
    %167 = arith.mulf %166, %156 : vector<16x16xf32>
    %168 = arith.addf %142, %167 : vector<16x16xf32>
    %c51 = arith.constant 51 : index
    %169 = memref.load %arg7[%c51] : memref<72xf32, #tpu.memory_space<smem>>
    %170 = vector.broadcast %169 : f32 to vector<16x16xf32>
    %171 = arith.mulf %170, %156 : vector<16x16xf32>
    %172 = arith.addf %146, %171 : vector<16x16xf32>
    %c52 = arith.constant 52 : index
    %173 = memref.load %arg7[%c52] : memref<72xf32, #tpu.memory_space<smem>>
    %174 = vector.broadcast %173 : f32 to vector<16x16xf32>
    %175 = arith.mulf %174, %156 : vector<16x16xf32>
    %176 = arith.addf %150, %175 : vector<16x16xf32>
    %c53 = arith.constant 53 : index
    %177 = memref.load %arg7[%c53] : memref<72xf32, #tpu.memory_space<smem>>
    %178 = vector.broadcast %177 : f32 to vector<16x16xf32>
    %179 = arith.mulf %178, %156 : vector<16x16xf32>
    %180 = arith.addf %154, %179 : vector<16x16xf32>
    %c2_44 = arith.constant 2 : index
    %c7_45 = arith.constant 7 : index
    %c0_46 = arith.constant 0 : index
    %181 = vector.load %arg9[%c2_44, %c7_45, %c0_46] : memref<4x32x16xf32, #tpu.memory_space<vmem>>, vector<1x16x16xf32>
    %182 = vector.shape_cast %181 : vector<1x16x16xf32> to vector<16x16xf32>
    %c18 = arith.constant 18 : index
    %183 = memref.load %arg7[%c18] : memref<72xf32, #tpu.memory_space<smem>>
    %184 = vector.broadcast %183 : f32 to vector<16x16xf32>
    %185 = arith.mulf %184, %182 : vector<16x16xf32>
    %186 = arith.addf %160, %185 : vector<16x16xf32>
    %c19 = arith.constant 19 : index
    %187 = memref.load %arg7[%c19] : memref<72xf32, #tpu.memory_space<smem>>
    %188 = vector.broadcast %187 : f32 to vector<16x16xf32>
    %189 = arith.mulf %188, %182 : vector<16x16xf32>
    %190 = arith.addf %164, %189 : vector<16x16xf32>
    %c20 = arith.constant 20 : index
    %191 = memref.load %arg7[%c20] : memref<72xf32, #tpu.memory_space<smem>>
    %192 = vector.broadcast %191 : f32 to vector<16x16xf32>
    %193 = arith.mulf %192, %182 : vector<16x16xf32>
    %194 = arith.addf %168, %193 : vector<16x16xf32>
    %c54 = arith.constant 54 : index
    %195 = memref.load %arg7[%c54] : memref<72xf32, #tpu.memory_space<smem>>
    %196 = vector.broadcast %195 : f32 to vector<16x16xf32>
    %197 = arith.mulf %196, %182 : vector<16x16xf32>
    %198 = arith.addf %172, %197 : vector<16x16xf32>
    %c55 = arith.constant 55 : index
    %199 = memref.load %arg7[%c55] : memref<72xf32, #tpu.memory_space<smem>>
    %200 = vector.broadcast %199 : f32 to vector<16x16xf32>
    %201 = arith.mulf %200, %182 : vector<16x16xf32>
    %202 = arith.addf %176, %201 : vector<16x16xf32>
    %c56 = arith.constant 56 : index
    %203 = memref.load %arg7[%c56] : memref<72xf32, #tpu.memory_space<smem>>
    %204 = vector.broadcast %203 : f32 to vector<16x16xf32>
    %205 = arith.mulf %204, %182 : vector<16x16xf32>
    %206 = arith.addf %180, %205 : vector<16x16xf32>
    %c2_47 = arith.constant 2 : index
    %c8_48 = arith.constant 8 : index
    %c0_49 = arith.constant 0 : index
    %207 = vector.load %arg9[%c2_47, %c8_48, %c0_49] : memref<4x32x16xf32, #tpu.memory_space<vmem>>, vector<1x16x16xf32>
    %208 = vector.shape_cast %207 : vector<1x16x16xf32> to vector<16x16xf32>
    %c21 = arith.constant 21 : index
    %209 = memref.load %arg7[%c21] : memref<72xf32, #tpu.memory_space<smem>>
    %210 = vector.broadcast %209 : f32 to vector<16x16xf32>
    %211 = arith.mulf %210, %208 : vector<16x16xf32>
    %212 = arith.addf %186, %211 : vector<16x16xf32>
    %c22 = arith.constant 22 : index
    %213 = memref.load %arg7[%c22] : memref<72xf32, #tpu.memory_space<smem>>
    %214 = vector.broadcast %213 : f32 to vector<16x16xf32>
    %215 = arith.mulf %214, %208 : vector<16x16xf32>
    %216 = arith.addf %190, %215 : vector<16x16xf32>
    %c23 = arith.constant 23 : index
    %217 = memref.load %arg7[%c23] : memref<72xf32, #tpu.memory_space<smem>>
    %218 = vector.broadcast %217 : f32 to vector<16x16xf32>
    %219 = arith.mulf %218, %208 : vector<16x16xf32>
    %220 = arith.addf %194, %219 : vector<16x16xf32>
    %c57 = arith.constant 57 : index
    %221 = memref.load %arg7[%c57] : memref<72xf32, #tpu.memory_space<smem>>
    %222 = vector.broadcast %221 : f32 to vector<16x16xf32>
    %223 = arith.mulf %222, %208 : vector<16x16xf32>
    %224 = arith.addf %198, %223 : vector<16x16xf32>
    %c58 = arith.constant 58 : index
    %225 = memref.load %arg7[%c58] : memref<72xf32, #tpu.memory_space<smem>>
    %226 = vector.broadcast %225 : f32 to vector<16x16xf32>
    %227 = arith.mulf %226, %208 : vector<16x16xf32>
    %228 = arith.addf %202, %227 : vector<16x16xf32>
    %c59 = arith.constant 59 : index
    %229 = memref.load %arg7[%c59] : memref<72xf32, #tpu.memory_space<smem>>
    %230 = vector.broadcast %229 : f32 to vector<16x16xf32>
    %231 = arith.mulf %230, %208 : vector<16x16xf32>
    %232 = arith.addf %206, %231 : vector<16x16xf32>
    %c2_50 = arith.constant 2 : index
    %c9_51 = arith.constant 9 : index
    %c0_52 = arith.constant 0 : index
    %233 = vector.load %arg9[%c2_50, %c9_51, %c0_52] : memref<4x32x16xf32, #tpu.memory_space<vmem>>, vector<1x16x16xf32>
    %234 = vector.shape_cast %233 : vector<1x16x16xf32> to vector<16x16xf32>
    %c24_53 = arith.constant 24 : index
    %235 = memref.load %arg7[%c24_53] : memref<72xf32, #tpu.memory_space<smem>>
    %236 = vector.broadcast %235 : f32 to vector<16x16xf32>
    %237 = arith.mulf %236, %234 : vector<16x16xf32>
    %238 = arith.addf %212, %237 : vector<16x16xf32>
    %c25 = arith.constant 25 : index
    %239 = memref.load %arg7[%c25] : memref<72xf32, #tpu.memory_space<smem>>
    %240 = vector.broadcast %239 : f32 to vector<16x16xf32>
    %241 = arith.mulf %240, %234 : vector<16x16xf32>
    %242 = arith.addf %216, %241 : vector<16x16xf32>
    %c26 = arith.constant 26 : index
    %243 = memref.load %arg7[%c26] : memref<72xf32, #tpu.memory_space<smem>>
    %244 = vector.broadcast %243 : f32 to vector<16x16xf32>
    %245 = arith.mulf %244, %234 : vector<16x16xf32>
    %246 = arith.addf %220, %245 : vector<16x16xf32>
    %c60 = arith.constant 60 : index
    %247 = memref.load %arg7[%c60] : memref<72xf32, #tpu.memory_space<smem>>
    %248 = vector.broadcast %247 : f32 to vector<16x16xf32>
    %249 = arith.mulf %248, %234 : vector<16x16xf32>
    %250 = arith.addf %224, %249 : vector<16x16xf32>
    %c61 = arith.constant 61 : index
    %251 = memref.load %arg7[%c61] : memref<72xf32, #tpu.memory_space<smem>>
    %252 = vector.broadcast %251 : f32 to vector<16x16xf32>
    %253 = arith.mulf %252, %234 : vector<16x16xf32>
    %254 = arith.addf %228, %253 : vector<16x16xf32>
    %c62 = arith.constant 62 : index
    %255 = memref.load %arg7[%c62] : memref<72xf32, #tpu.memory_space<smem>>
    %256 = vector.broadcast %255 : f32 to vector<16x16xf32>
    %257 = arith.mulf %256, %234 : vector<16x16xf32>
    %258 = arith.addf %232, %257 : vector<16x16xf32>
    %c3_54 = arith.constant 3 : index
    %c7_55 = arith.constant 7 : index
    %c0_56 = arith.constant 0 : index
    %259 = vector.load %arg9[%c3_54, %c7_55, %c0_56] : memref<4x32x16xf32, #tpu.memory_space<vmem>>, vector<1x16x16xf32>
    %260 = vector.shape_cast %259 : vector<1x16x16xf32> to vector<16x16xf32>
    %c27 = arith.constant 27 : index
    %261 = memref.load %arg7[%c27] : memref<72xf32, #tpu.memory_space<smem>>
    %262 = vector.broadcast %261 : f32 to vector<16x16xf32>
    %263 = arith.mulf %262, %260 : vector<16x16xf32>
    %264 = arith.addf %238, %263 : vector<16x16xf32>
    %c28 = arith.constant 28 : index
    %265 = memref.load %arg7[%c28] : memref<72xf32, #tpu.memory_space<smem>>
    %266 = vector.broadcast %265 : f32 to vector<16x16xf32>
    %267 = arith.mulf %266, %260 : vector<16x16xf32>
    %268 = arith.addf %242, %267 : vector<16x16xf32>
    %c29 = arith.constant 29 : index
    %269 = memref.load %arg7[%c29] : memref<72xf32, #tpu.memory_space<smem>>
    %270 = vector.broadcast %269 : f32 to vector<16x16xf32>
    %271 = arith.mulf %270, %260 : vector<16x16xf32>
    %272 = arith.addf %246, %271 : vector<16x16xf32>
    %c63 = arith.constant 63 : index
    %273 = memref.load %arg7[%c63] : memref<72xf32, #tpu.memory_space<smem>>
    %274 = vector.broadcast %273 : f32 to vector<16x16xf32>
    %275 = arith.mulf %274, %260 : vector<16x16xf32>
    %276 = arith.addf %250, %275 : vector<16x16xf32>
    %c64 = arith.constant 64 : index
    %277 = memref.load %arg7[%c64] : memref<72xf32, #tpu.memory_space<smem>>
    %278 = vector.broadcast %277 : f32 to vector<16x16xf32>
    %279 = arith.mulf %278, %260 : vector<16x16xf32>
    %280 = arith.addf %254, %279 : vector<16x16xf32>
    %c65 = arith.constant 65 : index
    %281 = memref.load %arg7[%c65] : memref<72xf32, #tpu.memory_space<smem>>
    %282 = vector.broadcast %281 : f32 to vector<16x16xf32>
    %283 = arith.mulf %282, %260 : vector<16x16xf32>
    %284 = arith.addf %258, %283 : vector<16x16xf32>
    %c3_57 = arith.constant 3 : index
    %c8_58 = arith.constant 8 : index
    %c0_59 = arith.constant 0 : index
    %285 = vector.load %arg9[%c3_57, %c8_58, %c0_59] : memref<4x32x16xf32, #tpu.memory_space<vmem>>, vector<1x16x16xf32>
    %286 = vector.shape_cast %285 : vector<1x16x16xf32> to vector<16x16xf32>
    %c30 = arith.constant 30 : index
    %287 = memref.load %arg7[%c30] : memref<72xf32, #tpu.memory_space<smem>>
    %288 = vector.broadcast %287 : f32 to vector<16x16xf32>
    %289 = arith.mulf %288, %286 : vector<16x16xf32>
    %290 = arith.addf %264, %289 : vector<16x16xf32>
    %c31 = arith.constant 31 : index
    %291 = memref.load %arg7[%c31] : memref<72xf32, #tpu.memory_space<smem>>
    %292 = vector.broadcast %291 : f32 to vector<16x16xf32>
    %293 = arith.mulf %292, %286 : vector<16x16xf32>
    %294 = arith.addf %268, %293 : vector<16x16xf32>
    %c32 = arith.constant 32 : index
    %295 = memref.load %arg7[%c32] : memref<72xf32, #tpu.memory_space<smem>>
    %296 = vector.broadcast %295 : f32 to vector<16x16xf32>
    %297 = arith.mulf %296, %286 : vector<16x16xf32>
    %298 = arith.addf %272, %297 : vector<16x16xf32>
    %c66 = arith.constant 66 : index
    %299 = memref.load %arg7[%c66] : memref<72xf32, #tpu.memory_space<smem>>
    %300 = vector.broadcast %299 : f32 to vector<16x16xf32>
    %301 = arith.mulf %300, %286 : vector<16x16xf32>
    %302 = arith.addf %276, %301 : vector<16x16xf32>
    %c67 = arith.constant 67 : index
    %303 = memref.load %arg7[%c67] : memref<72xf32, #tpu.memory_space<smem>>
    %304 = vector.broadcast %303 : f32 to vector<16x16xf32>
    %305 = arith.mulf %304, %286 : vector<16x16xf32>
    %306 = arith.addf %280, %305 : vector<16x16xf32>
    %c68 = arith.constant 68 : index
    %307 = memref.load %arg7[%c68] : memref<72xf32, #tpu.memory_space<smem>>
    %308 = vector.broadcast %307 : f32 to vector<16x16xf32>
    %309 = arith.mulf %308, %286 : vector<16x16xf32>
    %310 = arith.addf %284, %309 : vector<16x16xf32>
    %c3_60 = arith.constant 3 : index
    %c9_61 = arith.constant 9 : index
    %c0_62 = arith.constant 0 : index
    %311 = vector.load %arg9[%c3_60, %c9_61, %c0_62] : memref<4x32x16xf32, #tpu.memory_space<vmem>>, vector<1x16x16xf32>
    %312 = vector.shape_cast %311 : vector<1x16x16xf32> to vector<16x16xf32>
    %c33 = arith.constant 33 : index
    %313 = memref.load %arg7[%c33] : memref<72xf32, #tpu.memory_space<smem>>
    %314 = vector.broadcast %313 : f32 to vector<16x16xf32>
    %315 = arith.mulf %314, %312 : vector<16x16xf32>
    %316 = arith.addf %290, %315 : vector<16x16xf32>
    %c34 = arith.constant 34 : index
    %317 = memref.load %arg7[%c34] : memref<72xf32, #tpu.memory_space<smem>>
    %318 = vector.broadcast %317 : f32 to vector<16x16xf32>
    %319 = arith.mulf %318, %312 : vector<16x16xf32>
    %320 = arith.addf %294, %319 : vector<16x16xf32>
    %c35 = arith.constant 35 : index
    %321 = memref.load %arg7[%c35] : memref<72xf32, #tpu.memory_space<smem>>
    %322 = vector.broadcast %321 : f32 to vector<16x16xf32>
    %323 = arith.mulf %322, %312 : vector<16x16xf32>
    %324 = arith.addf %298, %323 : vector<16x16xf32>
    %c69 = arith.constant 69 : index
    %325 = memref.load %arg7[%c69] : memref<72xf32, #tpu.memory_space<smem>>
    %326 = vector.broadcast %325 : f32 to vector<16x16xf32>
    %327 = arith.mulf %326, %312 : vector<16x16xf32>
    %328 = arith.addf %302, %327 : vector<16x16xf32>
    %c70 = arith.constant 70 : index
    %329 = memref.load %arg7[%c70] : memref<72xf32, #tpu.memory_space<smem>>
    %330 = vector.broadcast %329 : f32 to vector<16x16xf32>
    %331 = arith.mulf %330, %312 : vector<16x16xf32>
    %332 = arith.addf %306, %331 : vector<16x16xf32>
    %c71 = arith.constant 71 : index
    %333 = memref.load %arg7[%c71] : memref<72xf32, #tpu.memory_space<smem>>
    %334 = vector.broadcast %333 : f32 to vector<16x16xf32>
    %335 = arith.mulf %334, %312 : vector<16x16xf32>
    %336 = arith.addf %310, %335 : vector<16x16xf32>
    %c0_63 = arith.constant 0 : index
    %c0_64 = arith.constant 0 : index
    %c0_65 = arith.constant 0 : index
    %c0_66 = arith.constant 0 : index
    %337 = vector.load %arg6[%c0_63, %c0_64, %c0_65, %c0_66] : memref<3x2x16x8xf32, #tpu.memory_space<vmem>>, vector<1x1x16x8xf32>
    %338 = vector.shape_cast %337 : vector<1x1x16x8xf32> to vector<16x8xf32>
    %cst_67 = arith.constant dense<0.000000e+00> : vector<16x8xf32>
    %339 = tpu.matmul %316, %338, %cst_67 {dimension_numbers = #tpu.dot_dimension_numbers<[1], [0], [0], [1], [0, 0, 1, 1], [], []>, precision = #tpu.contract_precision<fp32>} : vector<16x16xf32>, vector<16x8xf32>, vector<16x8xf32> -> vector<16x8xf32>
    %c1_68 = arith.constant 1 : index
    %c0_69 = arith.constant 0 : index
    %c0_70 = arith.constant 0 : index
    %c0_71 = arith.constant 0 : index
    %340 = vector.load %arg6[%c1_68, %c0_69, %c0_70, %c0_71] : memref<3x2x16x8xf32, #tpu.memory_space<vmem>>, vector<1x1x16x8xf32>
    %341 = vector.shape_cast %340 : vector<1x1x16x8xf32> to vector<16x8xf32>
    %cst_72 = arith.constant dense<0.000000e+00> : vector<16x8xf32>
    %342 = tpu.matmul %320, %341, %cst_72 {dimension_numbers = #tpu.dot_dimension_numbers<[1], [0], [0], [1], [0, 0, 1, 1], [], []>, precision = #tpu.contract_precision<fp32>} : vector<16x16xf32>, vector<16x8xf32>, vector<16x8xf32> -> vector<16x8xf32>
    %343 = arith.addf %339, %342 : vector<16x8xf32>
    %c2_73 = arith.constant 2 : index
    %c0_74 = arith.constant 0 : index
    %c0_75 = arith.constant 0 : index
    %c0_76 = arith.constant 0 : index
    %344 = vector.load %arg6[%c2_73, %c0_74, %c0_75, %c0_76] : memref<3x2x16x8xf32, #tpu.memory_space<vmem>>, vector<1x1x16x8xf32>
    %345 = vector.shape_cast %344 : vector<1x1x16x8xf32> to vector<16x8xf32>
    %cst_77 = arith.constant dense<0.000000e+00> : vector<16x8xf32>
    %346 = tpu.matmul %324, %345, %cst_77 {dimension_numbers = #tpu.dot_dimension_numbers<[1], [0], [0], [1], [0, 0, 1, 1], [], []>, precision = #tpu.contract_precision<fp32>} : vector<16x16xf32>, vector<16x8xf32>, vector<16x8xf32> -> vector<16x8xf32>
    %347 = arith.addf %343, %346 : vector<16x8xf32>
    %c0_78 = arith.constant 0 : index
    %c0_79 = arith.constant 0 : index
    %c0_80 = arith.constant 0 : index
    %348 = vector.load %arg5[%c0_78, %c0_79, %c0_80] : memref<2x8x16xf32, #tpu.memory_space<vmem>>, vector<1x8x16xf32>
    %349 = vector.shape_cast %348 : vector<1x8x16xf32> to vector<8x16xf32>
    %cst_81 = arith.constant dense<0.000000e+00> : vector<8x8xf32>
    %350 = tpu.matmul %349, %347, %cst_81 {dimension_numbers = #tpu.dot_dimension_numbers<[1], [0], [0], [1], [0, 0, 1, 1], [], []>, precision = #tpu.contract_precision<fp32>} : vector<8x16xf32>, vector<16x8xf32>, vector<8x8xf32> -> vector<8x8xf32>
    %c0_82 = arith.constant 0 : index
    %c0_83 = arith.constant 0 : index
    %c0_84 = arith.constant 0 : index
    %c0_85 = arith.constant 0 : index
    %351 = vector.load %arg8[%c0_82, %c0_83, %c0_84, %c0_85] : memref<1x8x8x8xf32, #tpu.memory_space<vmem>>, vector<1x1x8x8xf32>
    %352 = vector.shape_cast %351 : vector<1x1x8x8xf32> to vector<8x8xf32>
    %353 = vector.shape_cast %350 : vector<8x8xf32> to vector<1x1x8x8xf32>
    tpu.vector_store %arg8[%c0_82, %c0_83, %c0_84, %c0_85], %353 {strides = array<i32>} : memref<1x8x8x8xf32, #tpu.memory_space<vmem>>, vector<1x1x8x8xf32>,
    %c1_86 = arith.constant 1 : index
    %c0_87 = arith.constant 0 : index
    %c0_88 = arith.constant 0 : index
    %354 = vector.load %arg5[%c1_86, %c0_87, %c0_88] : memref<2x8x16xf32, #tpu.memory_space<vmem>>, vector<1x8x16xf32>
    %355 = vector.shape_cast %354 : vector<1x8x16xf32> to vector<8x16xf32>
    %cst_89 = arith.constant dense<0.000000e+00> : vector<8x8xf32>
    %356 = tpu.matmul %355, %347, %cst_89 {dimension_numbers = #tpu.dot_dimension_numbers<[1], [0], [0], [1], [0, 0, 1, 1], [], []>, precision = #tpu.contract_precision<fp32>} : vector<8x16xf32>, vector<16x8xf32>, vector<8x8xf32> -> vector<8x8xf32>
    %c0_90 = arith.constant 0 : index
    %c2_91 = arith.constant 2 : index
    %c0_92 = arith.constant 0 : index
    %c0_93 = arith.constant 0 : index
    %357 = vector.load %arg8[%c0_90, %c2_91, %c0_92, %c0_93] : memref<1x8x8x8xf32, #tpu.memory_space<vmem>>, vector<1x1x8x8xf32>
    %358 = vector.shape_cast %357 : vector<1x1x8x8xf32> to vector<8x8xf32>
    %359 = vector.shape_cast %356 : vector<8x8xf32> to vector<1x1x8x8xf32>
    tpu.vector_store %arg8[%c0_90, %c2_91, %c0_92, %c0_93], %359 {strides = array<i32>} : memref<1x8x8x8xf32, #tpu.memory_space<vmem>>, vector<1x1x8x8xf32>,
    %c0_94 = arith.constant 0 : index
    %c1_95 = arith.constant 1 : index
    %c0_96 = arith.constant 0 : index
    %c0_97 = arith.constant 0 : index
    %360 = vector.load %arg6[%c0_94, %c1_95, %c0_96, %c0_97] : memref<3x2x16x8xf32, #tpu.memory_space<vmem>>, vector<1x1x16x8xf32>
    %361 = vector.shape_cast %360 : vector<1x1x16x8xf32> to vector<16x8xf32>
    %cst_98 = arith.constant dense<0.000000e+00> : vector<16x8xf32>
    %362 = tpu.matmul %316, %361, %cst_98 {dimension_numbers = #tpu.dot_dimension_numbers<[1], [0], [0], [1], [0, 0, 1, 1], [], []>, precision = #tpu.contract_precision<fp32>} : vector<16x16xf32>, vector<16x8xf32>, vector<16x8xf32> -> vector<16x8xf32>
    %c1_99 = arith.constant 1 : index
    %c1_100 = arith.constant 1 : index
    %c0_101 = arith.constant 0 : index
    %c0_102 = arith.constant 0 : index
    %363 = vector.load %arg6[%c1_99, %c1_100, %c0_101, %c0_102] : memref<3x2x16x8xf32, #tpu.memory_space<vmem>>, vector<1x1x16x8xf32>
    %364 = vector.shape_cast %363 : vector<1x1x16x8xf32> to vector<16x8xf32>
    %cst_103 = arith.constant dense<0.000000e+00> : vector<16x8xf32>
    %365 = tpu.matmul %320, %364, %cst_103 {dimension_numbers = #tpu.dot_dimension_numbers<[1], [0], [0], [1], [0, 0, 1, 1], [], []>, precision = #tpu.contract_precision<fp32>} : vector<16x16xf32>, vector<16x8xf32>, vector<16x8xf32> -> vector<16x8xf32>
    %366 = arith.addf %362, %365 : vector<16x8xf32>
    %c2_104 = arith.constant 2 : index
    %c1_105 = arith.constant 1 : index
    %c0_106 = arith.constant 0 : index
    %c0_107 = arith.constant 0 : index
    %367 = vector.load %arg6[%c2_104, %c1_105, %c0_106, %c0_107] : memref<3x2x16x8xf32, #tpu.memory_space<vmem>>, vector<1x1x16x8xf32>
    %368 = vector.shape_cast %367 : vector<1x1x16x8xf32> to vector<16x8xf32>
    %cst_108 = arith.constant dense<0.000000e+00> : vector<16x8xf32>
    %369 = tpu.matmul %324, %368, %cst_108 {dimension_numbers = #tpu.dot_dimension_numbers<[1], [0], [0], [1], [0, 0, 1, 1], [], []>, precision = #tpu.contract_precision<fp32>} : vector<16x16xf32>, vector<16x8xf32>, vector<16x8xf32> -> vector<16x8xf32>
    %370 = arith.addf %366, %369 : vector<16x8xf32>
    %c0_109 = arith.constant 0 : index
    %c0_110 = arith.constant 0 : index
    %c0_111 = arith.constant 0 : index
    %371 = vector.load %arg5[%c0_109, %c0_110, %c0_111] : memref<2x8x16xf32, #tpu.memory_space<vmem>>, vector<1x8x16xf32>
    %372 = vector.shape_cast %371 : vector<1x8x16xf32> to vector<8x16xf32>
    %cst_112 = arith.constant dense<0.000000e+00> : vector<8x8xf32>
    %373 = tpu.matmul %372, %370, %cst_112 {dimension_numbers = #tpu.dot_dimension_numbers<[1], [0], [0], [1], [0, 0, 1, 1], [], []>, precision = #tpu.contract_precision<fp32>} : vector<8x16xf32>, vector<16x8xf32>, vector<8x8xf32> -> vector<8x8xf32>
    %c0_113 = arith.constant 0 : index
    %c1_114 = arith.constant 1 : index
    %c0_115 = arith.constant 0 : index
    %c0_116 = arith.constant 0 : index
    %374 = vector.load %arg8[%c0_113, %c1_114, %c0_115, %c0_116] : memref<1x8x8x8xf32, #tpu.memory_space<vmem>>, vector<1x1x8x8xf32>
    %375 = vector.shape_cast %374 : vector<1x1x8x8xf32> to vector<8x8xf32>
    %376 = vector.shape_cast %373 : vector<8x8xf32> to vector<1x1x8x8xf32>
    tpu.vector_store %arg8[%c0_113, %c1_114, %c0_115, %c0_116], %376 {strides = array<i32>} : memref<1x8x8x8xf32, #tpu.memory_space<vmem>>, vector<1x1x8x8xf32>,
    %c1_117 = arith.constant 1 : index
    %c0_118 = arith.constant 0 : index
    %c0_119 = arith.constant 0 : index
    %377 = vector.load %arg5[%c1_117, %c0_118, %c0_119] : memref<2x8x16xf32, #tpu.memory_space<vmem>>, vector<1x8x16xf32>
    %378 = vector.shape_cast %377 : vector<1x8x16xf32> to vector<8x16xf32>
    %cst_120 = arith.constant dense<0.000000e+00> : vector<8x8xf32>
    %379 = tpu.matmul %378, %370, %cst_120 {dimension_numbers = #tpu.dot_dimension_numbers<[1], [0], [0], [1], [0, 0, 1, 1], [], []>, precision = #tpu.contract_precision<fp32>} : vector<8x16xf32>, vector<16x8xf32>, vector<8x8xf32> -> vector<8x8xf32>
    %c0_121 = arith.constant 0 : index
    %c3_122 = arith.constant 3 : index
    %c0_123 = arith.constant 0 : index
    %c0_124 = arith.constant 0 : index
    %380 = vector.load %arg8[%c0_121, %c3_122, %c0_123, %c0_124] : memref<1x8x8x8xf32, #tpu.memory_space<vmem>>, vector<1x1x8x8xf32>
    %381 = vector.shape_cast %380 : vector<1x1x8x8xf32> to vector<8x8xf32>
    %382 = vector.shape_cast %379 : vector<8x8xf32> to vector<1x1x8x8xf32>
    tpu.vector_store %arg8[%c0_121, %c3_122, %c0_123, %c0_124], %382 {strides = array<i32>} : memref<1x8x8x8xf32, #tpu.memory_space<vmem>>, vector<1x1x8x8xf32>,
    %c0_125 = arith.constant 0 : index
    %c0_126 = arith.constant 0 : index
    %c0_127 = arith.constant 0 : index
    %c0_128 = arith.constant 0 : index
    %383 = vector.load %arg6[%c0_125, %c0_126, %c0_127, %c0_128] : memref<3x2x16x8xf32, #tpu.memory_space<vmem>>, vector<1x1x16x8xf32>
    %384 = vector.shape_cast %383 : vector<1x1x16x8xf32> to vector<16x8xf32>
    %cst_129 = arith.constant dense<0.000000e+00> : vector<16x8xf32>
    %385 = tpu.matmul %328, %384, %cst_129 {dimension_numbers = #tpu.dot_dimension_numbers<[1], [0], [0], [1], [0, 0, 1, 1], [], []>, precision = #tpu.contract_precision<fp32>} : vector<16x16xf32>, vector<16x8xf32>, vector<16x8xf32> -> vector<16x8xf32>
    %c1_130 = arith.constant 1 : index
    %c0_131 = arith.constant 0 : index
    %c0_132 = arith.constant 0 : index
    %c0_133 = arith.constant 0 : index
    %386 = vector.load %arg6[%c1_130, %c0_131, %c0_132, %c0_133] : memref<3x2x16x8xf32, #tpu.memory_space<vmem>>, vector<1x1x16x8xf32>
    %387 = vector.shape_cast %386 : vector<1x1x16x8xf32> to vector<16x8xf32>
    %cst_134 = arith.constant dense<0.000000e+00> : vector<16x8xf32>
    %388 = tpu.matmul %332, %387, %cst_134 {dimension_numbers = #tpu.dot_dimension_numbers<[1], [0], [0], [1], [0, 0, 1, 1], [], []>, precision = #tpu.contract_precision<fp32>} : vector<16x16xf32>, vector<16x8xf32>, vector<16x8xf32> -> vector<16x8xf32>
    %389 = arith.addf %385, %388 : vector<16x8xf32>
    %c2_135 = arith.constant 2 : index
    %c0_136 = arith.constant 0 : index
    %c0_137 = arith.constant 0 : index
    %c0_138 = arith.constant 0 : index
    %390 = vector.load %arg6[%c2_135, %c0_136, %c0_137, %c0_138] : memref<3x2x16x8xf32, #tpu.memory_space<vmem>>, vector<1x1x16x8xf32>
    %391 = vector.shape_cast %390 : vector<1x1x16x8xf32> to vector<16x8xf32>
    %cst_139 = arith.constant dense<0.000000e+00> : vector<16x8xf32>
    %392 = tpu.matmul %336, %391, %cst_139 {dimension_numbers = #tpu.dot_dimension_numbers<[1], [0], [0], [1], [0, 0, 1, 1], [], []>, precision = #tpu.contract_precision<fp32>} : vector<16x16xf32>, vector<16x8xf32>, vector<16x8xf32> -> vector<16x8xf32>
    %393 = arith.addf %389, %392 : vector<16x8xf32>
    %c0_140 = arith.constant 0 : index
    %c0_141 = arith.constant 0 : index
    %c0_142 = arith.constant 0 : index
    %394 = vector.load %arg5[%c0_140, %c0_141, %c0_142] : memref<2x8x16xf32, #tpu.memory_space<vmem>>, vector<1x8x16xf32>
    %395 = vector.shape_cast %394 : vector<1x8x16xf32> to vector<8x16xf32>
    %cst_143 = arith.constant dense<0.000000e+00> : vector<8x8xf32>
    %396 = tpu.matmul %395, %393, %cst_143 {dimension_numbers = #tpu.dot_dimension_numbers<[1], [0], [0], [1], [0, 0, 1, 1], [], []>, precision = #tpu.contract_precision<fp32>} : vector<8x16xf32>, vector<16x8xf32>, vector<8x8xf32> -> vector<8x8xf32>
    %c0_144 = arith.constant 0 : index
    %c4_145 = arith.constant 4 : index
    %c0_146 = arith.constant 0 : index
    %c0_147 = arith.constant 0 : index
    %397 = vector.load %arg8[%c0_144, %c4_145, %c0_146, %c0_147] : memref<1x8x8x8xf32, #tpu.memory_space<vmem>>, vector<1x1x8x8xf32>
    %398 = vector.shape_cast %397 : vector<1x1x8x8xf32> to vector<8x8xf32>
    %399 = vector.shape_cast %396 : vector<8x8xf32> to vector<1x1x8x8xf32>
    tpu.vector_store %arg8[%c0_144, %c4_145, %c0_146, %c0_147], %399 {strides = array<i32>} : memref<1x8x8x8xf32, #tpu.memory_space<vmem>>, vector<1x1x8x8xf32>,
    %c1_148 = arith.constant 1 : index
    %c0_149 = arith.constant 0 : index
    %c0_150 = arith.constant 0 : index
    %400 = vector.load %arg5[%c1_148, %c0_149, %c0_150] : memref<2x8x16xf32, #tpu.memory_space<vmem>>, vector<1x8x16xf32>
    %401 = vector.shape_cast %400 : vector<1x8x16xf32> to vector<8x16xf32>
    %cst_151 = arith.constant dense<0.000000e+00> : vector<8x8xf32>
    %402 = tpu.matmul %401, %393, %cst_151 {dimension_numbers = #tpu.dot_dimension_numbers<[1], [0], [0], [1], [0, 0, 1, 1], [], []>, precision = #tpu.contract_precision<fp32>} : vector<8x16xf32>, vector<16x8xf32>, vector<8x8xf32> -> vector<8x8xf32>
    %c0_152 = arith.constant 0 : index
    %c6_153 = arith.constant 6 : index
    %c0_154 = arith.constant 0 : index
    %c0_155 = arith.constant 0 : index
    %403 = vector.load %arg8[%c0_152, %c6_153, %c0_154, %c0_155] : memref<1x8x8x8xf32, #tpu.memory_space<vmem>>, vector<1x1x8x8xf32>
    %404 = vector.shape_cast %403 : vector<1x1x8x8xf32> to vector<8x8xf32>
    %405 = vector.shape_cast %402 : vector<8x8xf32> to vector<1x1x8x8xf32>
    tpu.vector_store %arg8[%c0_152, %c6_153, %c0_154, %c0_155], %405 {strides = array<i32>} : memref<1x8x8x8xf32, #tpu.memory_space<vmem>>, vector<1x1x8x8xf32>,
    %c0_156 = arith.constant 0 : index
    %c1_157 = arith.constant 1 : index
    %c0_158 = arith.constant 0 : index
    %c0_159 = arith.constant 0 : index
    %406 = vector.load %arg6[%c0_156, %c1_157, %c0_158, %c0_159] : memref<3x2x16x8xf32, #tpu.memory_space<vmem>>, vector<1x1x16x8xf32>
    %407 = vector.shape_cast %406 : vector<1x1x16x8xf32> to vector<16x8xf32>
    %cst_160 = arith.constant dense<0.000000e+00> : vector<16x8xf32>
    %408 = tpu.matmul %328, %407, %cst_160 {dimension_numbers = #tpu.dot_dimension_numbers<[1], [0], [0], [1], [0, 0, 1, 1], [], []>, precision = #tpu.contract_precision<fp32>} : vector<16x16xf32>, vector<16x8xf32>, vector<16x8xf32> -> vector<16x8xf32>
    %c1_161 = arith.constant 1 : index
    %c1_162 = arith.constant 1 : index
    %c0_163 = arith.constant 0 : index
    %c0_164 = arith.constant 0 : index
    %409 = vector.load %arg6[%c1_161, %c1_162, %c0_163, %c0_164] : memref<3x2x16x8xf32, #tpu.memory_space<vmem>>, vector<1x1x16x8xf32>
    %410 = vector.shape_cast %409 : vector<1x1x16x8xf32> to vector<16x8xf32>
    %cst_165 = arith.constant dense<0.000000e+00> : vector<16x8xf32>
    %411 = tpu.matmul %332, %410, %cst_165 {dimension_numbers = #tpu.dot_dimension_numbers<[1], [0], [0], [1], [0, 0, 1, 1], [], []>, precision = #tpu.contract_precision<fp32>} : vector<16x16xf32>, vector<16x8xf32>, vector<16x8xf32> -> vector<16x8xf32>
    %412 = arith.addf %408, %411 : vector<16x8xf32>
    %c2_166 = arith.constant 2 : index
    %c1_167 = arith.constant 1 : index
    %c0_168 = arith.constant 0 : index
    %c0_169 = arith.constant 0 : index
    %413 = vector.load %arg6[%c2_166, %c1_167, %c0_168, %c0_169] : memref<3x2x16x8xf32, #tpu.memory_space<vmem>>, vector<1x1x16x8xf32>
    %414 = vector.shape_cast %413 : vector<1x1x16x8xf32> to vector<16x8xf32>
    %cst_170 = arith.constant dense<0.000000e+00> : vector<16x8xf32>
    %415 = tpu.matmul %336, %414, %cst_170 {dimension_numbers = #tpu.dot_dimension_numbers<[1], [0], [0], [1], [0, 0, 1, 1], [], []>, precision = #tpu.contract_precision<fp32>} : vector<16x16xf32>, vector<16x8xf32>, vector<16x8xf32> -> vector<16x8xf32>
    %416 = arith.addf %412, %415 : vector<16x8xf32>
    %c0_171 = arith.constant 0 : index
    %c0_172 = arith.constant 0 : index
    %c0_173 = arith.constant 0 : index
    %417 = vector.load %arg5[%c0_171, %c0_172, %c0_173] : memref<2x8x16xf32, #tpu.memory_space<vmem>>, vector<1x8x16xf32>
    %418 = vector.shape_cast %417 : vector<1x8x16xf32> to vector<8x16xf32>
    %cst_174 = arith.constant dense<0.000000e+00> : vector<8x8xf32>
    %419 = tpu.matmul %418, %416, %cst_174 {dimension_numbers = #tpu.dot_dimension_numbers<[1], [0], [0], [1], [0, 0, 1, 1], [], []>, precision = #tpu.contract_precision<fp32>} : vector<8x16xf32>, vector<16x8xf32>, vector<8x8xf32> -> vector<8x8xf32>
    %c0_175 = arith.constant 0 : index
    %c5_176 = arith.constant 5 : index
    %c0_177 = arith.constant 0 : index
    %c0_178 = arith.constant 0 : index
    %420 = vector.load %arg8[%c0_175, %c5_176, %c0_177, %c0_178] : memref<1x8x8x8xf32, #tpu.memory_space<vmem>>, vector<1x1x8x8xf32>
    %421 = vector.shape_cast %420 : vector<1x1x8x8xf32> to vector<8x8xf32>
    %422 = vector.shape_cast %419 : vector<8x8xf32> to vector<1x1x8x8xf32>
    tpu.vector_store %arg8[%c0_175, %c5_176, %c0_177, %c0_178], %422 {strides = array<i32>} : memref<1x8x8x8xf32, #tpu.memory_space<vmem>>, vector<1x1x8x8xf32>,
    %c1_179 = arith.constant 1 : index
    %c0_180 = arith.constant 0 : index
    %c0_181 = arith.constant 0 : index
    %423 = vector.load %arg5[%c1_179, %c0_180, %c0_181] : memref<2x8x16xf32, #tpu.memory_space<vmem>>, vector<1x8x16xf32>
    %424 = vector.shape_cast %423 : vector<1x8x16xf32> to vector<8x16xf32>
    %cst_182 = arith.constant dense<0.000000e+00> : vector<8x8xf32>
    %425 = tpu.matmul %424, %416, %cst_182 {dimension_numbers = #tpu.dot_dimension_numbers<[1], [0], [0], [1], [0, 0, 1, 1], [], []>, precision = #tpu.contract_precision<fp32>} : vector<8x16xf32>, vector<16x8xf32>, vector<8x8xf32> -> vector<8x8xf32>
    %c0_183 = arith.constant 0 : index
    %c7_184 = arith.constant 7 : index
    %c0_185 = arith.constant 0 : index
    %c0_186 = arith.constant 0 : index
    %426 = vector.load %arg8[%c0_183, %c7_184, %c0_185, %c0_186] : memref<1x8x8x8xf32, #tpu.memory_space<vmem>>, vector<1x1x8x8xf32>
    %427 = vector.shape_cast %426 : vector<1x1x8x8xf32> to vector<8x8xf32>
    %428 = vector.shape_cast %425 : vector<8x8xf32> to vector<1x1x8x8xf32>
    tpu.vector_store %arg8[%c0_183, %c7_184, %c0_185, %c0_186], %428 {strides = array<i32>} : memref<1x8x8x8xf32, #tpu.memory_space<vmem>>, vector<1x1x8x8xf32>,
    return
  }
  func.func @transform_0(%arg0: i32, %arg1: i32) -> (i32, i32, i32, i32) {
    %c0_i32 = arith.constant 0 : i32
    %c0_i32_0 = arith.constant 0 : i32
    %c0_i32_1 = arith.constant 0 : i32
    return %arg0, %c0_i32, %arg1, %c0_i32_0 : i32, i32, i32, i32
  }
  func.func @transform_1(%arg0: i32, %arg1: i32) -> (i32, i32, i32, i32) {
    %c2_i32 = arith.constant 2 : i32
    %0 = arith.muli %arg1, %c2_i32 : i32
    %c1_i32 = arith.constant 1 : i32
    %1 = arith.subi %0, %c1_i32 : i32
    %c0_i32 = arith.constant 0 : i32
    %2 = arith.maxsi %1, %c0_i32 : i32
    %c0_i32_0 = arith.constant 0 : i32
    %c0_i32_1 = arith.constant 0 : i32
    %c0_i32_2 = arith.constant 0 : i32
    return %arg0, %c0_i32_0, %2, %c0_i32_1 : i32, i32, i32, i32
  }
  func.func @transform_2(%arg0: i32, %arg1: i32) -> (i32, i32, i32, i32) {
    %c1_i32 = arith.constant 1 : i32
    %0 = arith.addi %arg1, %c1_i32 : i32
    %c2_i32 = arith.constant 2 : i32
    %1 = arith.muli %0, %c2_i32 : i32
    %c1_i32_0 = arith.constant 1 : i32
    %2 = arith.minsi %1, %c1_i32_0 : i32
    %c0_i32 = arith.constant 0 : i32
    %c0_i32_1 = arith.constant 0 : i32
    %c0_i32_2 = arith.constant 0 : i32
    return %arg0, %c0_i32, %2, %c0_i32_1 : i32, i32, i32, i32
  }
  func.func @transform_3(%arg0: i32, %arg1: i32) -> (i32, i32, i32) {
    %c0_i32 = arith.constant 0 : i32
    %c0_i32_0 = arith.constant 0 : i32
    %c0_i32_1 = arith.constant 0 : i32
    %c0_i32_2 = arith.constant 0 : i32
    return %c0_i32, %c0_i32_0, %c0_i32_1 : i32, i32, i32
  }
  func.func @transform_4(%arg0: i32, %arg1: i32) -> (i32, i32, i32, i32) {
    %c0_i32 = arith.constant 0 : i32
    %c0_i32_0 = arith.constant 0 : i32
    %c0_i32_1 = arith.constant 0 : i32
    %c0_i32_2 = arith.constant 0 : i32
    %c0_i32_3 = arith.constant 0 : i32
    return %c0_i32, %c0_i32_0, %c0_i32_1, %c0_i32_2 : i32, i32, i32, i32
  }
  func.func @transform_5(%arg0: i32, %arg1: i32) -> i32 {
    %c0_i32 = arith.constant 0 : i32
    %c0_i32_0 = arith.constant 0 : i32
    return %c0_i32 : i32
  }
  func.func @transform_6(%arg0: i32, %arg1: i32) -> (i32, i32, i32, i32) {
    %c0_i32 = arith.constant 0 : i32
    %c0_i32_0 = arith.constant 0 : i32
    %c0_i32_1 = arith.constant 0 : i32
    return %arg0, %c0_i32, %arg1, %c0_i32_0 : i32, i32, i32, i32
  }
}

</mosaic_0001>

<bundles_post_ra>
// kernel: downsample.1
= control target key start
LH: loop header
LB: loop body
LE: loop exit
PB: predicated region body
PF: predicated region fallthrough
CT: control target
= control target key end

     0   :  { %s14406_s0 = inlined_call_operand.vmem [shape: f32[2,4,16,16], index: 0, kind: input, shape index: {}, may-alias: {0,1,2}]   ;;  %s14407_s1 = inlined_call_operand.vmem [shape: f32[2,4,16,16], index: 1, kind: input, shape index: {}, may-alias: {0,1,2}]   ;;  %s14408_s2 = inlined_call_operand.vmem [shape: f32[2,4,16,16], index: 2, kind: input, shape index: {}, may-alias: {0,1,2}]   ;;  %s14409_s3 = inlined_call_operand.vmem [shape: f32[2,8,16], index: 3, kind: input, shape index: {}]   ;;  %s14410_s4 = inlined_call_operand.vmem [shape: f32[3,2,16,8], index: 4, kind: input, shape index: {}]   ;;  %s14411_s5 = inlined_call_operand.vmem [shape: f32[72], index: 5, kind: input, shape index: {}]   ;;  %s14412_s6 = inlined_call_operand.hbm [shape: f32[2,8,8,8], index: 6, kind: output, shape index: {}]  }
   0x1   :  { %14418 = sst [smem:[#allocation13_spill]] %s14406_s0 }
   0x2   :  { %14419 = sst [smem:[#allocation14_spill]] %s14407_s1 }
   0x3   :  { %11 = vsyncpa [#allocation7], 0 }
   0x4   :  { %12 = vsyncpa [#allocation6], 0 }
   0x5   :  { %14 = vsyncpa [#allocation6 + $0x1], 0  ;;  %s12575_s21 = smov 0   ;;  %s12577_s22 = smov 0  }
   0x6   :  { %s12579_s23 = smov 0   ;;  %s12581_s24 = smov 0  }
   0x7   :  { %s12583_s25 = smov 0   ;;  %s12585_s26 = smov 0  }
   0x8 LB: > { %s10940_s27 = sadd.s32 4294967295, %s12532_s26   ;;  %s10941_s28 = sadd.s32 4294967294, %s12532_s26   ;;  %s12532_s26 = sphi %s12585_s26, %s20_s26   ;;  %s12528_s25 = sphi %s12583_s25, %s14437_s25   ;;  %s12524_s24 = sphi %s12581_s24, %s14436_s24   ;;  %s12520_s23 = sphi %s12579_s23, %s14435_s23   ;;  %s12516_s22 = sphi %s12577_s22, %s14434_s22   ;;  %s12512_s21 = sphi %s12575_s21, %s14433_s21  }
   0x9   : > { %s32_s29 = sadd.s32 1, %s12528_s25  ;;  %s77_s30 = sadd.s32 1, %s12520_s23 }
   0xa   : > { %p34_p0 = scmp.ge.s32.totalorder %s32_s29, 2  ;;  %p84_p1 = scmp.ne.s32.totalorder %s12520_s23, %s12516_s22 }
   0xb   : > { %p85_p2 = scmp.eq.s32.totalorder %s12532_s26, 0  ;;  %p215_p3 = scmp.eq.s32.totalorder %s10940_s27, 1 }
   0xc   : > { %s14439_s29 = smov (%p34_p0, %s32_s29), 0  ;;  %p220_p6 = scmp.ne.s32.totalorder %s12516_s22, %s12512_s21 }
   0xd   : > { %p12614_p4 = por %p85_p2, %p84_p1  ;;  %p12618_p5 = por %p215_p3, %p84_p1 }
   0xe   : > { %s72_s9 = ssub.s32 %s12528_s25, %s14439_s29  ;;  %p221_p8 = scmp.eq.s32.totalorder %s10941_s28, 1 }
   0xf   : > { %s14421_s8 = scalar_select %p12618_p5, 1, 0 }
  0x10   : > { %p75_p7 = scmp.eq.s32.totalorder %s72_s9, 0  ;;  %p10942_p9 = scmp.ge.s32.totalorder %s12532_s26, 1 }
  0x11   : > { %p228_p10 = scmp.lt.s32.totalorder %s12532_s26, 3  ;;  %p12631_p11 = por %p221_p8, %p220_p6 }
  0x12   : > { %s12629_s10 = scalar_select %p75_p7, %s12520_s23, %s77_s30  }
  0x13   : > { %s14422_s11 = scalar_select %p12631_p11, 1, 0 }
  0x14   : > { %p12635_p12 = pnand %p10942_p9, %p228_p10  ;;  %p12639_p13 = scmp.eq.s32.totalorder %s10940_s27, 0 }
  0x15   : > { %s247_s16 = sshll.u32 %s14411_s5, 4  ;;  %s248_s16 = int_to_ptr.vmem [resolvable:$true] %s247_s16 }
  0x16   : > { %p12349_p0 = pneg %p12635_p12  ;;  %s12437_s17 = scalar_lea.vmem %s248_s16, 16 }
  0x17   : > { %p12438_p2 = scmp.ne.s32.totalorder %s248_s16, %s12437_s17  ;;  %p12445_p8 = scmp.lt.s32.totalorder %s248_s16, %s248_s16 }
  0x18   : > { %p12350_p1 = pnand %p12639_p13, %p12349_p0  ;;  %p12446_p9 = scmp.lt.s32.totalorder %s12437_s17, %s12437_s17 }
  0x1a   : > { %p12439_p3 = pneg %p12350_p1  ;;  %p12447_p10 = por %p12446_p9, %p12445_p8 }
  0x1c   : > { %p12440_p6 = pnand %p12439_p3, %p12438_p2 }
  0x1e   : > { %p12441_p7 = pneg %p12440_p6 }
  0x20   : > { %p12448_p11 = pnand %p12447_p10, %p12441_p7 }
  0x22   : > { %12451 = shalt.err (!%p12448_p11)
}
  0x23   : > { %s12534_s18 = smov [#allocation5]   ;;  %p10944_p5 = scmp.ge.s32.totalorder %s12532_s26, 2 }
  0x24   : > { %12352 = dma.vmem_to_smem (!%p12350_p1), %s248_s16, 16, %s12534_s18, [#allocation7]  }
  0x25   : > { %254 = sbr.rel (%p10944_p5) target bundleno = 61 (0x3d), region = 28 }
  0x2a   : > { %270 = sbr.rel (!%p12614_p4) target bundleno = 54 (0x36), region = 36  ;;  %s272_s19 = sand.u32 (%p12614_p4), 1, %s12520_s23  }
  0x2b   : > { %s11065_s20 = sshll.u32 (%p12614_p4), %s12528_s25, 6  ;;  %s10945_s27 = sshll.u32 (%p12614_p4), %s272_s19, 5 }
  0x2c   : > { %s14425_s1 = sld [smem:[#allocation14_spill]] (%p12614_p4)  ;;  %s274_s14 = scalar_lea.vmem (%p12614_p4), [#allocation3], %s10945_s27 }
  0x32   : > { %s282_s9 = scalar_lea.vmem %s14425_s1, %s11065_s20 }
  0x33   : > { %v317_v0 = vld [vmem:[%s282_s9] sm:$0xff]  ;;  %v319_v1 = vld [vmem:[%s282_s9 + $0x10] sm:$0xff] }
  0x34   : > { %v321_v2 = vld [vmem:[%s282_s9 + $0x20] sm:$0xff]  ;;  %318 = vst [vmem:[%s274_s14] sm:$0xff] %v317_v0  ;;  %320 = vst [vmem:[%s274_s14 + $0x8] sm:$0xff] %v319_v1  ;;  %v323_v3 = vld [vmem:[%s282_s9 + $0x30] sm:$0xff] }
  0x35   : > { %322 = vst [vmem:[%s274_s14 + $0x10] sm:$0xff] %v321_v2  ;;  %324 = vst [vmem:[%s274_s14 + $0x18] sm:$0xff] %v323_v3 }
  0x36 PF: > { %330 = sbr.rel (!%p12614_p4) target bundleno = 61 (0x3d), region = 74  ;;  %s332_s15 = sand.u32 (%p12614_p4), 1, %s12520_s23  }
  0x37   : > { %s11070_s16 = sshll.u32 (%p12614_p4), %s12528_s25, 6  ;;  %s10948_s17 = sshll.u32 (%p12614_p4), %s332_s15, 5 }
  0x38   : > { %s11067_s18 = sadd.s32 (%p12614_p4), 8, %s11070_s16  ;;  %s334_s27 = scalar_lea.vmem (%p12614_p4), [#allocation4], %s10948_s17 }
  0x39   : > { %s342_s28 = scalar_lea.vmem (%p12614_p4), %s14408_s2, %s11067_s18 }
  0x3a   : > { %v377_v4 = vld [vmem:[%s342_s28] sm:$0xff] (%p12614_p4)  ;;  %v379_v5 = vld [vmem:[%s342_s28 + $0x10] sm:$0xff] (%p12614_p4) }
  0x3b   : > { %v381_v6 = vld [vmem:[%s342_s28 + $0x20] sm:$0xff]  ;;  %378 = vst [vmem:[%s334_s27] sm:$0xff] %v377_v4  ;;  %380 = vst [vmem:[%s334_s27 + $0x8] sm:$0xff] %v379_v5  ;;  %v383_v7 = vld [vmem:[%s342_s28 + $0x30] sm:$0xff] }
  0x3c   : > { %382 = vst [vmem:[%s334_s27 + $0x10] sm:$0xff] %v381_v6  ;;  %384 = vst [vmem:[%s334_s27 + $0x18] sm:$0xff] %v383_v7 }
  0x3d PF: > { %393 = sbr.rel (%p12635_p12) target bundleno = 1494 (0x5d6), region = 112 }
  0x42   : > { %s12670_s7 = sand.u32 1, %s12516_s22  }
  0x43   : > { %s10952_s30 = sshll.u32 %s12670_s7, 5 }
  0x44   : > { %s398_s9 = scalar_lea.vmem [#allocation3], %s10952_s30  ;;  %s12673_s14 = scalar_lea.vmem [#allocation4], %s10952_s30 }
  0x45   : > { %12503 = dma.done.wait (%p12639_p13), [#allocation7], 16  }
  0x46   : > { %12505 = vsyncadd (%p12639_p13), [#allocation7], 4294967280 }
  0x47   : > { %413 = sfence }
  0x48   : > { %v11030_v8 = vld [vmem:[%s14410_s4 + $0x28] sm:$0xff]  ;;  %v11029_v9 = vld [vmem:[%s14410_s4 + $0x20] sm:$0xff]  ;;  %p451_p4 = scmp.lt.s32.totalorder %s12524_s24, 1  ;;  %vm483_vm0 = vcmask 122880   ;;  %v476_v14 = vld [vmem:[%s398_s9 + $0x17] sm:$0x1] }
  0x49   : > { %v474_v10 = vld [vmem:[%s398_s9 + $0x7] sm:$0x1]  ;;  %v12686_v11 = vand.u32 4294901760, %v11030_v8  ;;  %v12688_v12 = vand.u32 4294901760, %v11029_v9  ;;  %v475_v13 = vld [vmem:[%s398_s9 + $0xf] sm:$0x1] }
  0x4a   : > { %s452_s13 = scalar_select %p451_p4, %s12524_s24, 1  ;;  %v477_v15 = vld [vmem:[%s398_s9 + $0x1f] sm:$0x1]  ;;  %v479_v16 = vmul.f32 0.0, %v474_v10  ;;  %v480_v17 = vmul.f32 0.0, %v475_v13  ;;  %v481_v18 = vmul.f32 0.0, %v476_v14 }
  0x4b   : > { %11503 = vmatprep.subr.mxu0 %v12686_v11  ;;  %v12693_v19 = vsub.f32 %v11030_v8, %v12686_v11  ;;  %v12696_v20 = vsub.f32 %v11029_v9, %v12688_v12  ;;  %v482_v21 = vmul.f32 0.0, %v477_v15  ;;  %vm496_vm1 = vcmask 130048   ;;  %v505_v22 = vld [vmem:[%s12673_s14] sm:$0x1]  ;;  %v506_v23 = vld [vmem:[%s12673_s14 + $0x8] sm:$0x1] }
  0x4c   : > { %11504 = vmatpush3.msra.mxu0 %v12686_v11  ;;  %s11068_s18 = sshll.u32 %s452_s13, 6  ;;  %484 = vst.msk [vmem:[#allocation2 + $0x7] sm:$0x1] %vm483_vm0, %v479_v16  ;;  %485 = vst.msk [vmem:[#allocation2 + $0x27] sm:$0x1] %vm483_vm0, %v480_v17  ;;  %v510_v26 = vmul.f32 0.0, %v505_v22 }
  0x4d   : > { %486 = vst.msk [vmem:[#allocation2 + $0x47] sm:$0x1] %vm483_vm0, %v481_v18  ;;  %v507_v24 = vld [vmem:[%s12673_s14 + $0x10] sm:$0x1]  ;;  %v508_v25 = vld [vmem:[%s12673_s14 + $0x18] sm:$0x1]  ;;  %11505 = vmatprep.subr.mxu0 %v12688_v12 }
  0x4e   : > { %v12707_v27 = vand.u32 4294901760, %v12693_v19  ;;  %v12711_v28 = vand.u32 4294901760, %v12696_v20  ;;  %s14426_s0 = sld [smem:[#allocation13_spill]]  ;;  %487 = vst.msk [vmem:[#allocation2 + $0x67] sm:$0x1] %vm483_vm0, %v482_v21  ;;  %v511_v29 = vmul.f32 0.0, %v506_v23  ;;  %11506 = vmatpush3.msra.mxu0 %v12688_v12 }
  0x4f   : > { %v512_v30 = vmul.f32 0.0, %v507_v24  ;;  %s12717_s27 = sld [smem:[#allocation5 + $0x1]]  ;;  %v513_v34 = vmul.f32 0.0, %v508_v25  ;;  %514 = vst.msk [vmem:[#allocation2 + $0x18] sm:$0x1] %vm483_vm0, %v510_v26  ;;  %11517 = vmatprep.subr.mxu0 %v12693_v19  ;;  %v978_v44 = vld [vmem:[%s14410_s4 + $0x8] sm:$0xff] }
  0x50   : > { %s12721_s30 = sld [smem:[#allocation5 + $0x4]]  ;;  %v1107_v35 = vsub.f32 %v12693_v19, %v12707_v27  ;;  %v1114_v36 = vsub.f32 %v12696_v20, %v12711_v28  ;;  %515 = vst.msk [vmem:[#allocation2 + $0x38] sm:$0x1] %vm483_vm0, %v511_v29  ;;  %v977_v47 = vld [vmem:[%s14410_s4] sm:$0xff]  ;;  %v12769_v52 = vand.u32 4294901760, %v978_v44  ;;  %vm12536_vm2 = vmmov 0  }
  0x51   : > { %516 = vst.msk [vmem:[#allocation2 + $0x58] sm:$0x1] %vm483_vm0, %v512_v30  ;;  %s12732_s9 = sld [smem:[#allocation5 + $0x7]]  ;;  %517 = vst.msk [vmem:[#allocation2 + $0x78] sm:$0x1] %vm483_vm0, %v513_v34  ;;  %v12782_v58 = vand.u32 4294901760, %v977_v47 }
  0x52   : > { %s12739_s14 = sld [smem:[#allocation5 + $0xa]]  ;;  %v1108_v42 = vand.u32 4294901760, %v1107_v35  ;;  %v1115_v43 = vand.u32 4294901760, %v1114_v36  ;;  %14427 = vst [vmem:[#allocation11_spill] sm:$0xff] %v12769_v52  ;;  %v12803_v6 = vsub.f32 %v978_v44, %v12769_v52  ;;  %vm2974_vm3 = vcmask 64512   ;;  %p14431_p12 = scmp.ne.s32.totalorder %s14421_s8, 0 }
  0x53   : > { %s12743_s15 = sld [smem:[#allocation5 + $0xd]]  ;;  %14428 = vst [vmem:[#allocation12_spill] sm:$0xff] %v12782_v58  ;;  %v12811_v10 = vsub.f32 %v977_v47, %v12782_v58 }
  0x54   : > { %s458_s28 = scalar_lea.vmem %s14426_s0, %s11068_s18  ;;  %s12745_s16 = sld [smem:[#allocation5 + $0x10]]  ;;  %11510 = vmatprep.subr.mxu1 %v1108_v42  ;;  %v12833_v26 = vand.u32 4294901760, %v12803_v6 }
  0x55   : > { %v488_v31 = vld [vmem:[%s458_s28] sm:$0xff]  ;;  %v489_v32 = vld [vmem:[%s458_s28 + $0x8] sm:$0xff]  ;;  %v490_v33 = vld [vmem:[%s458_s28 + $0x10] sm:$0xff]  ;;  %s12747_s12 = sld [smem:[#allocation5 + $0x13]]  ;;  %11511 = vmatpush3.msra.mxu1 %v1108_v42  ;;  %v527_v45 = vstv %s12717_s27 }
  0x56   : > { %v491_v37 = vld [vmem:[%s458_s28 + $0x18] sm:$0xff]  ;;  %v492_v38 = vld [vmem:[%s458_s28 + $0x20] sm:$0xff]  ;;  %v493_v39 = vld [vmem:[%s458_s28 + $0x28] sm:$0xff]  ;;  %497 = vst.msk [vmem:[#allocation2 + $0x8] sm:$0xff] %vm496_vm1, %v488_v31  ;;  %v565_v46 = vstv %s12721_s30  ;;  %s12754_s18 = sld [smem:[#allocation5 + $0x16]]  ;;  %11512 = vmatprep.subr.mxu1 %v1115_v43  ;;  %v1615_v52 = vsub.f32 %v12803_v6, %v12833_v26 }
  0x57   : > { %498 = vst.msk [vmem:[#allocation2 + $0x10] sm:$0xff] %vm496_vm1, %v489_v32  ;;  %499 = vst.msk [vmem:[#allocation2 + $0x28] sm:$0xff] %vm496_vm1, %v490_v33  ;;  %v494_v40 = vld [vmem:[%s458_s28 + $0x30] sm:$0xff]  ;;  %v495_v41 = vld [vmem:[%s458_s28 + $0x38] sm:$0xff]  ;;  %v603_v48 = vstv %s12732_s9  ;;  %s12760_s28 = sld [smem:[#allocation5 + $0x19]]  ;;  %11513 = vmatpush3.msra.mxu1 %v1115_v43  ;;  %v12842_v33 = vand.u32 4294901760, %v12811_v10 }
  0x58   : > { %500 = vst.msk [vmem:[#allocation2 + $0x30] sm:$0xff] %vm496_vm1, %v491_v37  ;;  %501 = vst.msk [vmem:[#allocation2 + $0x48] sm:$0xff] %vm496_vm1, %v492_v38  ;;  %v642_v51 = vstv %s12739_s14  ;;  %s12767_s17 = sld [smem:[#allocation5 + $0x1c]]  ;;  %11524 = vmatprep.subr.mxu1 %v12686_v11 }
  0x59   : > { %502 = vst.msk [vmem:[#allocation2 + $0x50] sm:$0xff] %vm496_vm1, %v493_v39  ;;  %503 = vst.msk [vmem:[#allocation2 + $0x68] sm:$0xff] %vm496_vm1, %v494_v40  ;;  %s12779_s27 = sld [smem:[#allocation5 + $0x1f]]  ;;  %v680_v62 = vstv %s12743_s15 }
  0x5a   : > { %504 = vst.msk [vmem:[#allocation2 + $0x70] sm:$0xff] %vm496_vm1, %v495_v41  ;;  %s12790_s30 = sld [smem:[#allocation5 + $0x22]]  ;;  %v718_v5 = vstv %s12745_s16 }
  0x5b   : > { %s12795_s9 = sld [smem:[#allocation5]]  ;;  %v757_v16 = vstv %s12747_s12 }
  0x5c   : > { %s12805_s14 = sld [smem:[#allocation5 + $0x3]]  ;;  %v795_v23 = vstv %s12754_s18 }
  0x5d   : > { %v12762_v49 = vld [vmem:[#allocation2 + $0x7] sm:$0xff]  ;;  %s12813_s15 = sld [smem:[#allocation5 + $0x6]]  ;;  %v833_v38 = vstv %s12760_s28 }
  0x5e   : > { %v12764_v50 = vld [vmem:[#allocation2 + $0x8] sm:$0xff]  ;;  %v528_v54 = vmul.f32 %v527_v45, %v12762_v49  ;;  %v12774_v55 = vld [vmem:[#allocation2 + $0x10] sm:$0xff]  ;;  %s12821_s16 = sld [smem:[#allocation5 + $0x9]] }
  0x5f   : > { %v12771_v53 = vld [vmem:[#allocation2 + $0xf] sm:$0xff]  ;;  %v566_v56 = vmul.f32 %v565_v46, %v12764_v50  ;;  %v12785_v60 = vld [vmem:[#allocation2 + $0x27] sm:$0xff]  ;;  %v567_v3 = vmul.f32 %v565_v46, %v12774_v55  ;;  %s12829_s13 = sld [smem:[#allocation5 + $0xc]]  ;;  %v872_v46 = vstv %s12767_s17 }
  0x60   : > { %v12777_v57 = vld [vmem:[#allocation2 + $0x9] sm:$0xff]  ;;  %v12792_v0 = vld [vmem:[#allocation2 + $0x11] sm:$0xff]  ;;  %v643_v1 = vmul.f32 %v642_v51, %v12785_v60  ;;  %v529_v2 = vmul.f32 %v527_v45, %v12771_v53  ;;  %s12835_s12 = sld [smem:[#allocation5 + $0xf]] }
  0x61   : > { %v604_v59 = vmul.f32 %v603_v48, %v12777_v57  ;;  %v12787_v61 = vld [vmem:[#allocation2 + $0x28] sm:$0xff]  ;;  %v568_v63 = vadd.f32 %v566_v56, %v528_v54  ;;  %v605_v13 = vmul.f32 %v603_v48, %v12792_v0  ;;  %v12816_v14 = vld [vmem:[#allocation2 + $0x30] sm:$0xff]  ;;  %s12851_s18 = sld [smem:[#allocation5 + $0x12]]  ;;  %v521_v41 = vstv %s12795_s9 }
  0x62   : > { %v12799_v4 = vld [vmem:[#allocation2 + $0x29] sm:$0xff]  ;;  %v681_v9 = vmul.f32 %v680_v62, %v12787_v61  ;;  %v12823_v18 = vld [vmem:[#allocation2 + $0x31] sm:$0xff]  ;;  %v569_v25 = vadd.f32 %v567_v3, %v529_v2  ;;  %v682_v29 = vmul.f32 %v680_v62, %v12816_v14  ;;  %v559_v42 = vstv %s12805_s14  ;;  %s12861_s19 = sld [smem:[#allocation5 + $0x15]] }
  0x63   : > { %v606_v7 = vadd.f32 %v604_v59, %v568_v63  ;;  %v12807_v8 = vld [vmem:[#allocation2 + $0x2f] sm:$0xff]  ;;  %v12818_v15 = vld [vmem:[#allocation2 + $0x47] sm:$0xff]  ;;  %v719_v21 = vmul.f32 %v718_v5, %v12799_v4  ;;  %v720_v34 = vmul.f32 %v718_v5, %v12823_v18  ;;  %v597_v43 = vstv %s12813_s15  ;;  %s12871_s20 = sld [smem:[#allocation5 + $0x18]] }
  0x64   : > { %v12826_v22 = vld [vmem:[#allocation2 + $0x48] sm:$0xff]  ;;  %v644_v24 = vmul.f32 %v642_v51, %v12807_v8  ;;  %v758_v32 = vmul.f32 %v757_v16, %v12818_v15  ;;  %v12845_v35 = vld [vmem:[#allocation2 + $0x50] sm:$0xff]  ;;  %v607_v39 = vadd.f32 %v605_v13, %v569_v25  ;;  %v522_v48 = vmul.f32 %v521_v41, %v12762_v49  ;;  %s12884_s28 = sld [smem:[#allocation5 + $0x1b]] }
  0x65   : > { %v645_v17 = vadd.f32 %v643_v1, %v606_v7  ;;  %v12838_v31 = vld [vmem:[#allocation2 + $0x4f] sm:$0xff]  ;;  %v796_v36 = vmul.f32 %v795_v23, %v12826_v22  ;;  %v12857_v45 = vld [vmem:[#allocation2 + $0x67] sm:$0xff]  ;;  %v797_v54 = vmul.f32 %v795_v23, %v12845_v35  ;;  %v560_v59 = vmul.f32 %v559_v42, %v12764_v50  ;;  %s12890_s17 = sld [smem:[#allocation5 + $0x1e]] }
  0x66   : > { %v12848_v37 = vld [vmem:[#allocation2 + $0x49] sm:$0xff]  ;;  %v759_v44 = vmul.f32 %v757_v16, %v12838_v31  ;;  %v646_v47 = vadd.f32 %v644_v24, %v607_v39  ;;  %v910_v63 = vstv %s12779_s27  ;;  %v598_v2 = vmul.f32 %v597_v43, %v12777_v57  ;;  %v12873_v7 = vld [vmem:[#allocation2 + $0x51] sm:$0xff]  ;;  %s12895_s27 = sld [smem:[#allocation5 + $0x21]] }
  0x67   : > { %v683_v30 = vadd.f32 %v681_v9, %v645_v17  ;;  %v834_v56 = vmul.f32 %v833_v38, %v12848_v37  ;;  %v12866_v62 = vld [vmem:[#allocation2 + $0x68] sm:$0xff]  ;;  %v636_v3 = vstv %s12821_s16  ;;  %v873_v13 = vmul.f32 %v872_v46, %v12857_v45  ;;  %s12906_s9 = sld [smem:[#allocation5 + $0x5]] }
  0x68   : > { %v684_v1 = vadd.f32 %v682_v29, %v646_v47  ;;  %v12875_v9 = vld [vmem:[#allocation2 + $0x6f] sm:$0xff]  ;;  %v562_v16 = vadd.f32 %v560_v59, %v522_v48  ;;  %v637_v17 = vmul.f32 %v636_v3, %v12785_v60  ;;  %v948_v23 = vstv %s12790_s30  ;;  %s12901_s30 = sld [smem:[#allocation5 + $0x2]] }
  0x69   : > { %v721_v40 = vadd.f32 %v719_v21, %v683_v30  ;;  %v12879_v21 = vld [vmem:[#allocation2 + $0x69] sm:$0xff]  ;;  %v674_v25 = vstv %s12829_s13  ;;  %v712_v29 = vstv %s12835_s12  ;;  %v835_v47 = vmul.f32 %v833_v38, %v12873_v7  ;;  %s12916_s14 = sld [smem:[#allocation5 + $0x8]] }
  0x6a   : > { %v722_v24 = vadd.f32 %v720_v34, %v684_v1  ;;  %v600_v39 = vadd.f32 %v598_v2, %v562_v16  ;;  %v874_v48 = vmul.f32 %v872_v46, %v12875_v9  ;;  %v949_v1 = vmul.f32 %v948_v23, %v12879_v21  ;;  %s12921_s15 = sld [smem:[#allocation5 + $0xb]] }
  0x6b   : > { %v760_v51 = vadd.f32 %v758_v32, %v721_v40  ;;  %v12886_v32 = vld [vmem:[#allocation2 + $0x70] sm:$0xff]  ;;  %v675_v40 = vmul.f32 %v674_v25, %v12787_v61  ;;  %v523_v46 = vmul.f32 %v521_v41, %v12771_v53  ;;  %v599_v41 = vmul.f32 %v597_v43, %v12792_v0  ;;  %s12929_s16 = sld [smem:[#allocation5 + $0xe]] }
  0x6c   : > { %v761_v34 = vadd.f32 %v759_v44, %v722_v24  ;;  %v639_v2 = vadd.f32 %v637_v17, %v600_v39  ;;  %v912_v16 = vmul.f32 %v910_v63, %v12886_v32  ;;  %v789_v44 = vstv %s12861_s19  ;;  %s12933_s13 = sld [smem:[#allocation5 + $0x11]] }
  0x6d   : > { %v798_v5 = vadd.f32 %v796_v36, %v760_v51  ;;  %v911_v36 = vmul.f32 %v910_v63, %v12866_v62  ;;  %v751_v51 = vstv %s12851_s18  ;;  %v827_v63 = vstv %s12871_s20  ;;  %s12941_s12 = sld [smem:[#allocation5 + $0x14]] }
  0x6e   : > { %v799_v38 = vadd.f32 %v797_v54, %v761_v34  ;;  %v752_v58 = vmul.f32 %v751_v51, %v12818_v15  ;;  %v828_v43 = vmul.f32 %v827_v63, %v12848_v37  ;;  %s12967_s18 = sld [smem:[#allocation5 + $0x17]] }
  0x6f   : > { %v836_v30 = vadd.f32 %v834_v56, %v798_v5  ;;  %v12897_v56 = vld [vmem:[#allocation2 + $0x71] sm:$0xff]  ;;  %v713_v5 = vmul.f32 %v712_v29, %v12799_v4  ;;  %s12973_s19 = sld [smem:[#allocation5 + $0x1a]] }
  0x70   : > { %v950_v17 = vmul.f32 %v948_v23, %v12897_v56  ;;  %v837_v39 = vadd.f32 %v835_v47, %v799_v38  ;;  %v676_v23 = vmul.f32 %v674_v25, %v12816_v14  ;;  %v866_v47 = vstv %s12884_s28  ;;  %s12991_s20 = sld [smem:[#allocation5 + $0x1d]] }
  0x71   : > { %v875_v59 = vadd.f32 %v873_v13, %v836_v30  ;;  %v561_v13 = vmul.f32 %v559_v42, %v12774_v55  ;;  %v677_v30 = vadd.f32 %v675_v40, %v639_v2  ;;  %v638_v40 = vmul.f32 %v636_v3, %v12807_v8  ;;  %s13006_s28 = sld [smem:[#allocation5 + $0x20]] }
  0x72   : > { %v876_v42 = vadd.f32 %v874_v48, %v837_v39  ;;  %v904_v48 = vstv %s12890_s17  ;;  %v867_v25 = vmul.f32 %v866_v47, %v12857_v45  ;;  %v533_v39 = vstv %s12901_s30  ;;  %s13026_s0 = sld [smem:[#allocation5 + $0x23]]  ;;  %s10955_s30 = sshll.u32 %s12670_s7, 6 }
  0x73   : > { %v913_v24 = vadd.f32 %v911_v36, %v875_v59  ;;  %v715_v34 = vadd.f32 %v713_v5, %v677_v30  ;;  %v790_v36 = vmul.f32 %v789_v44, %v12826_v22  ;;  %v563_v2 = vadd.f32 %v561_v13, %v523_v46  ;;  %s13525_s17 = sld [smem:[#allocation5 + $0x27]] }
  0x74   : > { %v914_v38 = vadd.f32 %v912_v16, %v876_v42  ;;  %v714_v46 = vmul.f32 %v712_v29, %v12823_v18  ;;  %v571_v13 = vstv %s12906_s9  ;;  %v753_v29 = vmul.f32 %v751_v51, %v12838_v31  ;;  %s13468_s9 = scalar_lea.vmem [#allocation8], %s10955_s30  ;;  %s13535_s1 = sld [smem:[#allocation5 + $0x3d]] }
  0x75   : > { %v951_v54 = vadd.f32 %v949_v1, %v913_v24  ;;  %v754_v1 = vadd.f32 %v752_v58, %v715_v34  ;;  %v942_v24 = vstv %s12895_s27  ;;  %v601_v30 = vadd.f32 %v599_v41, %v563_v2  ;;  %s13540_s27 = sld [smem:[#allocation5 + $0x2a]] }
  0x76   : > { %v952_v16 = vadd.f32 %v950_v17, %v914_v38  ;;  %v905_v41 = vmul.f32 %v904_v48, %v12866_v62  ;;  %v791_v38 = vmul.f32 %v789_v44, %v12845_v35  ;;  %v829_v44 = vmul.f32 %v827_v63, %v12873_v7  ;;  %s13553_s30 = sld [smem:[#allocation5 + $0x2d]] }
  0x77   : > { %v983_v59 = vsel %vm496_vm1, %v951_v54, 0  ;;  %v792_v3 = vadd.f32 %v790_v36, %v754_v1  ;;  %v640_v34 = vadd.f32 %v638_v40, %v601_v30  ;;  %v534_v36 = vmul.f32 %v533_v39, %v12762_v49 }
  0x78   : > { %v12925_v5 = vand.u32 4294901760, %v983_v59  ;;  %v986_v17 = vsel %vm496_vm1, %v952_v16, 0  ;;  %v572_v40 = vmul.f32 %v571_v13, %v12764_v50  ;;  %v648_v30 = vstv %s12921_s15  ;;  %s10967_s15 = sld [smem:[#allocation5 + $0x28]] }
  0x79   : > { %v830_v54 = vadd.f32 %v828_v43, %v792_v3  ;;  %v12957_v1 = vand.u32 4294901760, %v986_v17  ;;  %v678_v2 = vadd.f32 %v676_v23, %v640_v34  ;;  %v609_v3 = vstv %s12916_s14  ;;  %s10961_s14 = sld [smem:[#allocation5 + $0x25]] }
  0x7a   : > { %v12936_v58 = vsub.f32 %v983_v59, %v12925_v5  ;;  %11514 = vmatprep.mubr.f32.mxu1 %v12925_v5  ;;  %v943_v59 = vmul.f32 %v942_v24, %v12879_v21  ;;  %v574_v16 = vadd.f32 %v572_v40, %v534_v36  ;;  %v868_v34 = vmul.f32 %v866_v47, %v12875_v9 }
  0x7b   : > { %v869_v43 = vadd.f32 %v867_v25, %v830_v54  ;;  %v12970_v51 = vsub.f32 %v986_v17, %v12957_v1  ;;  %11515 = vmatmul.mubr.f32.vlgmr.msra.gmra.mxu1 %v12957_v1  ;;  %v716_v25 = vadd.f32 %v714_v46, %v678_v2  ;;  %v610_v54 = vmul.f32 %v609_v3, %v12777_v57 }
  0x7c   : > { %v12950_v42 = vand.u32 4294901760, %v12936_v58  ;;  %11525 = vmatpush3.msra.mxu1 %v12686_v11  ;;  %v649_v46 = vmul.f32 %v648_v30, %v12785_v60  ;;  %v686_v63 = vstv %s12929_s16  ;;  %v724_v60 = vstv %s12933_s13  ;;  %s13474_s16 = sld [smem:[#allocation5 + $0x2b]] }
  0x7d   : > { %v907_v23 = vadd.f32 %v905_v41, %v869_v43  ;;  %v12987_v41 = vand.u32 4294901760, %v12970_v51  ;;  %11526 = vmatprep.subr.mxu1 %v12688_v12  ;;  %v755_v17 = vadd.f32 %v753_v29, %v716_v25  ;;  %v612_v57 = vadd.f32 %v610_v54, %v574_v16  ;;  %s13476_s13 = sld [smem:[#allocation5 + $0x2e]] }
  0x7e   : > { %v1058_v49 = vsub.f32 %v12936_v58, %v12950_v42  ;;  %11528 = vmatprep.mubr.f32.mxu1 %v12950_v42  ;;  %11527 = vmatpush3.msra.mxu1 %v12688_v12  ;;  %v763_v43 = vstv %s12941_s12  ;;  %v1622_v40 = vsub.f32 %v12811_v10, %v12842_v33  ;;  %v906_v25 = vmul.f32 %v904_v48, %v12886_v32  ;;  %s13485_s12 = sld [smem:[#allocation5 + $0x31]] }
  0x7f   : > { %v945_v36 = vadd.f32 %v943_v59, %v907_v23  ;;  %v1068_v2 = vsub.f32 %v12970_v51, %v12987_v41  ;;  %11529 = vmatmul.mubr.f32.vlgmr.msra.gmra.mxu1 %v12987_v41  ;;  %11538 = vmatprep.subr.mxu1 %v12686_v11  ;;  %v793_v29 = vadd.f32 %v791_v38, %v755_v17  ;;  %v839_v48 = vstv %s12973_s19  ;;  %v11032_v17 = vld [vmem:[%s14410_s4 + $0x48] sm:$0xff]  ;;  %s13506_s19 = sld [smem:[#allocation5 + $0x37]] }
  0x80   : > { %v12975_v50 = vand.u32 4294901760, %v1058_v49  ;;  %v687_v59 = vmul.f32 %v686_v63, %v12787_v61  ;;  %11539 = vmatpush3.msra.mxu1 %v12686_v11  ;;  %11542 = vmatprep.mubr.f32.mxu1 %v12925_v5  ;;  %v651_v23 = vadd.f32 %v649_v46, %v612_v57  ;;  %v725_v38 = vmul.f32 %v724_v60, %v12799_v4 }
  0x81   : > { %v1491_v47 = vsel %vm496_vm1, %v945_v36, 0  ;;  %v13017_v61 = vand.u32 4294901760, %v1068_v2  ;;  %11540 = vmatprep.subr.mxu1 %v12688_v12  ;;  %v1616_v11 = vand.u32 4294901760, %v1615_v52  ;;  %v831_v16 = vadd.f32 %v829_v44, %v793_v29 }
  0x82   : > { %11507 = vmatprep.mubr.f32.mxu0 %v12975_v50  ;;  %v13012_v49 = vand.u32 4294901760, %v1491_v47  ;;  %11541 = vmatpush3.msra.mxu1 %v12688_v12  ;;  %v689_v54 = vadd.f32 %v687_v59, %v651_v23  ;;  %v764_v46 = vmul.f32 %v763_v43, %v12818_v15  ;;  %v801_v36 = vstv %s12967_s18  ;;  %s13497_s18 = sld [smem:[#allocation5 + $0x34]] }
  0x83   : > { %11508 = vmatmul.mubr.f32.vlgmr.msra.gmra.mxu0 %v13017_v61  ;;  %11543 = vmatmul.mubr.f32.vlgmr.msra.gmra.mxu1 %v12957_v1  ;;  %v944_v52 = vmul.f32 %v942_v24, %v12897_v56  ;;  %v870_v12 = vadd.f32 %v868_v34, %v831_v16  ;;  %v1623_v44 = vand.u32 4294901760, %v1622_v40  ;;  %v802_v2 = vmul.f32 %v801_v36, %v12826_v22  ;;  %v14429_v16 = vld [vmem:[#allocation11_spill] sm:$0xff] }
  0x84   : > { %v13030_v4 = vsub.f32 %v1491_v47, %v13012_v49  ;;  %11518 = vmatpush3.msra.mxu0 %v12693_v19  ;;  %11521 = vmatprep.mubr.f32.mxu0 %v12936_v58  ;;  %v727_v57 = vadd.f32 %v725_v38, %v689_v54  ;;  %v535_v24 = vmul.f32 %v533_v39, %v12771_v53  ;;  %v878_v47 = vstv %s12991_s20  ;;  %s13518_s20 = sld [smem:[#allocation5 + $0x3a]] }
  0x85   : > { %11519 = vmatprep.subr.mxu0 %v12696_v20  ;;  %11552 = vmatprep.subr.mxu1 %v1616_v11  ;;  %v908_v19 = vadd.f32 %v906_v25, %v870_v12  ;;  %v573_v34 = vmul.f32 %v571_v13, %v12774_v55  ;;  %v840_v59 = vmul.f32 %v839_v48, %v12848_v37  ;;  %v13069_v55 = vand.u32 4294901760, %v11032_v17  ;;  %v11031_v37 = vld [vmem:[%s14410_s4 + $0x40] sm:$0xff]  ;;  %v14430_v12 = vld [vmem:[#allocation12_spill] sm:$0xff] }
  0x86   : > { %v13045_v15 = vand.u32 4294901760, %v13030_v4  ;;  %11520 = vmatpush3.msra.mxu0 %v12696_v20  ;;  %11553 = vmatpush3.msra.mxu1 %v1616_v11  ;;  %v766_v29 = vadd.f32 %v764_v46, %v727_v57  ;;  %v611_v20 = vmul.f32 %v609_v3, %v12792_v0  ;;  %v916_v39 = vstv %s13006_s28  ;;  %s13523_s28 = sld [smem:[#allocation5 + $0x24]] }
  0x87   : > { %11522 = vmatmul.mubr.f32.vlgmr.msra.gmra.mxu0 %v12970_v51  ;;  %11531 = vmatprep.subr.mxu0 %v12707_v27  ;;  %v946_v53 = vadd.f32 %v944_v52, %v908_v19  ;;  %v879_v23 = vmul.f32 %v878_v47, %v12857_v45  ;;  %v954_v3 = vstv %s13026_s0  ;;  %v575_v38 = vadd.f32 %v573_v34, %v535_v24  ;;  %s13549_s0 = sld [smem:[#allocation5 + $0x40]] }
  0x88   : > { %v1566_v22 = vsub.f32 %v13030_v4, %v13045_v15  ;;  %11532 = vmatpush3.msra.mxu0 %v12707_v27  ;;  %11535 = vmatprep.mubr.f32.mxu0 %v12925_v5  ;;  %v804_v40 = vadd.f32 %v802_v2, %v766_v29  ;;  %v650_v27 = vmul.f32 %v648_v30, %v12807_v8  ;;  %v13102_v8 = vand.u32 4294901760, %v11031_v37 }
  0x89   : > { %11533 = vmatprep.subr.mxu0 %v12711_v28  ;;  %11554 = vmatprep.subr.mxu1 %v1623_v44  ;;  %v1494_v0 = vsel %vm496_vm1, %v946_v53, 0  ;;  %v917_v45 = vmul.f32 %v916_v39, %v12866_v62  ;;  %v13100_v54 = vsub.f32 %v11032_v17, %v13069_v55  ;;  %v613_v30 = vadd.f32 %v611_v20, %v575_v38 }
  0x8a   : > { %v13077_v13 = vand.u32 4294901760, %v1566_v22  ;;  %11534 = vmatpush3.msra.mxu0 %v12711_v28  ;;  %11555 = vmatpush3.msra.mxu1 %v1623_v44  ;;  %v13092_v11 = vand.u32 4294901760, %v1494_v0  ;;  %v842_v25 = vadd.f32 %v840_v59, %v804_v40  ;;  %v688_v28 = vmul.f32 %v686_v63, %v12816_v14 }
  0x8b   : > { %11536 = vmatmul.mubr.f32.vlgmr.msra.gmra.mxu0 %v12957_v1  ;;  %11545 = vmatprep.subr.mxu0 %v14429_v16  ;;  %v955_v52 = vmul.f32 %v954_v3, %v12879_v21  ;;  %v726_v14 = vmul.f32 %v724_v60, %v12823_v18  ;;  %v652_v63 = vadd.f32 %v650_v27, %v613_v30  ;;  %v13138_v2 = vand.u32 4294901760, %v13100_v54 }
  0x8c   : > { %11546 = vmatpush3.msra.mxu0 %v14429_v16  ;;  %11549 = vmatprep.mubr.f32.mxu0 %v13077_v13  ;;  %v13110_v62 = vsub.f32 %v1494_v0, %v13092_v11  ;;  %v881_v46 = vadd.f32 %v879_v23, %v842_v25  ;;  %v13128_v21 = vsub.f32 %v11031_v37, %v13102_v8 }
  0x8d   : > { %11547 = vmatprep.subr.mxu0 %v14430_v12  ;;  %11556 = vmatprep.mubr.f32.mxu1 %v13012_v49  ;;  %v765_v18 = vmul.f32 %v763_v43, %v12838_v31  ;;  %v690_v60 = vadd.f32 %v688_v28, %v652_v63  ;;  %v803_v24 = vmul.f32 %v801_v36, %v12845_v35 }
  0x8e   : > { %11548 = vmatpush3.msra.mxu0 %v14430_v12  ;;  %v13122_v44 = vand.u32 4294901760, %v13110_v62  ;;  %11557 = vmatmul.mubr.f32.vlgmr.msra.gmra.mxu1 %v13092_v11  ;;  %v919_v17 = vadd.f32 %v917_v45, %v881_v46  ;;  %v13151_v22 = vand.u32 4294901760, %v13128_v21  ;;  %v841_v29 = vmul.f32 %v839_v48, %v12873_v7 }
  0x8f   : > { %11559 = vmatprep.subr.mxu0 %v12803_v6  ;;  %11566 = vmatprep.subr.mxu1 %v14429_v16  ;;  %v728_v31 = vadd.f32 %v726_v14, %v690_v60  ;;  %v2126_v59 = vsub.f32 %v13100_v54, %v13138_v2  ;;  %v880_v53 = vmul.f32 %v878_v47, %v12875_v9 }
  0x90   : > { %v1576_v57 = vsub.f32 %v13110_v62, %v13122_v44  ;;  %11567 = vmatpush3.msra.mxu1 %v14429_v16  ;;  %11570 = vmatprep.mubr.f32.mxu1 %v13045_v15  ;;  %v957_v19 = vadd.f32 %v955_v52, %v919_v17  ;;  %v918_v20 = vmul.f32 %v916_v39, %v12886_v32 }
  0x91   : > { %11568 = vmatprep.subr.mxu1 %v14430_v12  ;;  %v767_v36 = vadd.f32 %v765_v18, %v728_v31  ;;  %v956_v37 = vmul.f32 %v954_v3, %v12897_v56 }
  0x92   : > { %v13144_v43 = vand.u32 4294901760, %v1576_v57  ;;  %11569 = vmatpush3.msra.mxu1 %v14430_v12  ;;  %v2002_v34 = vsel %vm496_vm1, %v957_v19, 0 }
  0x93   : > { %11571 = vmatmul.mubr.f32.vlgmr.msra.gmra.mxu1 %v13122_v44  ;;  %11580 = vmatprep.subr.mxu1 %v14429_v16  ;;  %v13156_v35 = vand.u32 4294901760, %v2002_v34  ;;  %v805_v48 = vadd.f32 %v803_v24, %v767_v36 }
  0x94   : > { %11550 = vmatmul.mubr.f32.vlgmr.msra.gmra.mxu0 %v13144_v43  ;;  %11581 = vmatpush3.msra.mxu1 %v14429_v16 }
  0x95   : > { %11560 = vmatpush3.msra.mxu0 %v12803_v6  ;;  %11563 = vmatprep.mubr.f32.mxu0 %v13030_v4  ;;  %v13168_v7 = vsub.f32 %v2002_v34, %v13156_v35  ;;  %v2133_v6 = vsub.f32 %v13128_v21, %v13151_v22  ;;  %v843_v47 = vadd.f32 %v841_v29, %v805_v48 }
  0x96   : > { %11561 = vmatprep.subr.mxu0 %v12811_v10  ;;  %11582 = vmatprep.subr.mxu1 %v14430_v12 }
  0x97   : > { %11562 = vmatpush3.msra.mxu0 %v12811_v10  ;;  %11583 = vmatpush3.msra.mxu1 %v14430_v12  ;;  %v13180_v9 = vand.u32 4294901760, %v13168_v7  ;;  %v2127_v10 = vand.u32 4294901760, %v2126_v59  ;;  %v882_v32 = vadd.f32 %v880_v53, %v843_v47  ;;  %v2134_v39 = vand.u32 4294901760, %v2133_v6 }
  0x98   : > { %11564 = vmatmul.mubr.f32.vlgmr.msra.gmra.mxu0 %v13110_v62  ;;  %11573 = vmatprep.subr.mxu0 %v12833_v26 }
  0x99   : > { %11574 = vmatpush3.msra.mxu0 %v12833_v26  ;;  %11577 = vmatprep.mubr.f32.mxu0 %v13012_v49  ;;  %v2077_v40 = vsub.f32 %v13168_v7, %v13180_v9  ;;  %v920_v26 = vadd.f32 %v918_v20, %v882_v32 }
  0x9a   : > { %11575 = vmatprep.subr.mxu0 %v12842_v33  ;;  %11584 = vmatprep.mubr.f32.mxu1 %v13012_v49 }
  0x9b   : > { %11576 = vmatpush3.msra.mxu0 %v12842_v33  ;;  %11585 = vmatmul.mubr.f32.vlgmr.msra.gmra.mxu1 %v13092_v11  ;;  %v13197_v23 = vand.u32 4294901760, %v2077_v40  ;;  %v958_v56 = vadd.f32 %v956_v37, %v920_v26 }
  0x9c   : > { %11578 = vmatmul.mubr.f32.vlgmr.msra.gmra.mxu0 %v13092_v11  ;;  %11587 = vmatprep.subr.mxu0 %v13069_v55 }
  0x9d   : > { %11594 = vmatprep.subr.mxu1 %v2127_v10  ;;  %11588 = vmatpush3.msra.mxu0 %v13069_v55  ;;  %v2005_v33 = vsel %vm496_vm1, %v958_v56, 0  ;;  %v2511_v56 = vld [vmem:[%s14409_s3] sm:$0xff] }
  0x9e   : > { %11595 = vmatpush3.msra.mxu1 %v2127_v10  ;;  %11589 = vmatprep.subr.mxu0 %v13102_v8  ;;  %v13204_v0 = vand.u32 4294901760, %v2005_v33 }
  0x9f   : > { %11596 = vmatprep.subr.mxu1 %v2134_v39  ;;  %11590 = vmatpush3.msra.mxu0 %v13102_v8 }
  0xa0   : > { %11591 = vmatprep.mubr.f32.mxu0 %v13197_v23  ;;  %11597 = vmatpush3.msra.mxu1 %v2134_v39  ;;  %v13209_v27 = vsub.f32 %v2005_v33, %v13204_v0 }
  0xa1   : > { %11598 = vmatprep.mubr.f32.mxu1 %v13156_v35  ;;  %11601 = vmatprep.subr.mxu0 %v13100_v54 }
  0xa2   : > { %11599 = vmatmul.mubr.f32.vlgmr.msra.gmra.mxu1 %v13204_v0  ;;  %11608 = vmatprep.subr.mxu1 %v13069_v55  ;;  %v13216_v3 = vand.u32 4294901760, %v13209_v27 }
  0xa3   : > { %11609 = vmatpush3.msra.mxu1 %v13069_v55  ;;  %11612 = vmatprep.mubr.f32.mxu1 %v13180_v9 }
  0xa4   : > { %11610 = vmatprep.subr.mxu1 %v13102_v8  ;;  %v2087_v38 = vsub.f32 %v13209_v27, %v13216_v3 }
  0xa5   : > { %11611 = vmatpush3.msra.mxu1 %v13102_v8 }
  0xa6   : > { %11613 = vmatmul.mubr.f32.vlgmr.msra.gmra.mxu1 %v13216_v3  ;;  %11622 = vmatprep.subr.mxu1 %v13069_v55  ;;  %v13226_v25 = vand.u32 4294901760, %v2087_v38 }
  0xa7   : > { %11623 = vmatpush3.msra.mxu1 %v13069_v55  ;;  %11626 = vmatprep.mubr.f32.mxu1 %v13156_v35  ;;  %v12535_v55 = vmov 0.0  }
  0xa8   : > { %11624 = vmatprep.subr.mxu1 %v13102_v8  ;;  %11592 = vmatmul.mubr.f32.vlgmr.msra.gmra.mxu0 %v13226_v25 }
  0xa9   : > { %11625 = vmatpush3.msra.mxu1 %v13102_v8  ;;  %11602 = vmatpush3.msra.mxu0 %v13100_v54 }
  0xaa   : > { %11627 = vmatmul.mubr.f32.vlgmr.msra.gmra.mxu1 %v13204_v0  ;;  %11605 = vmatprep.mubr.f32.mxu0 %v13168_v7 }
  0xab   : > { %11603 = vmatprep.subr.mxu0 %v13128_v21  ;;  %11636 = vmatprep.subr.mxu1 %v12535_v55 }
  0xac   : > { %11604 = vmatpush3.msra.mxu0 %v13128_v21  ;;  %11640 = vmatprep.mubr.msk.f32.mxu1 %vm12536_vm2, %v12535_v55 }
  0xad   : > { %11606 = vmatmul.mubr.f32.vlgmr.msra.gmra.mxu0 %v13209_v27  ;;  %11615 = vmatprep.subr.mxu0 %v13138_v2 }
  0xae   : > { %11616 = vmatpush3.msra.mxu0 %v13138_v2  ;;  %11619 = vmatprep.mubr.f32.mxu0 %v13156_v35 }
  0xaf   : > { %11617 = vmatprep.subr.mxu0 %v13151_v22 }
  0xb0   : > { %11618 = vmatpush3.msra.mxu0 %v13151_v22 }
  0xb1   : > { %11620 = vmatmul.mubr.f32.vlgmr.msra.gmra.mxu0 %v13204_v0  ;;  %11629 = vmatprep.subr.mxu0 %v12535_v55 }
  0xb2   : > { %11633 = vmatprep.mubr.msk.f32.mxu0 %vm12536_vm2, %v12535_v55 }
 0x13b   : > { %v11516_v45 = vpop.f32.mrf.mxu1 }
 0x13d   : > { %v1152_v16 = vpop.f32.mrf.mxu1 }
 0x13f   : > { %v11530_v54 = vpop.f32.mrf.mxu1 }
 0x141   : > { %v1316_v8 = vpop.f32.mrf.mxu1 }
 0x143   : > { %v11509_v28 = vpop.f32.mrf.mxu0  ;;  %v11544_v46 = vpop.f32.mrf.mxu1 }
 0x144   : > { %v1159_v21 = vadd.f32 %v11516_v45, %v11509_v28 }
 0x145   : > { %v1061_v30 = vpop.f32.mrf.mxu0  ;;  %v1480_v14 = vpop.f32.mrf.mxu1 }
 0x146   : > { %v1153_v57 = vadd.f32 %v1152_v16, %v1061_v30 }
 0x147   : > { %v11523_v52 = vpop.f32.mrf.mxu0 }
 0x148   : > { %v1242_v2 = vadd.f32 %v11523_v52, %v1159_v21 }
 0x149   : > { %v1234_v12 = vpop.f32.mrf.mxu0 }
 0x14a   : > { %v1235_v19 = vadd.f32 %v1234_v12, %v1153_v57  ;;  %v1325_v34 = vadd.f32 %v11530_v54, %v1242_v2  ;;  %v2513_v54 = vsel %vm496_vm1, %v2511_v56, 0 }
 0x14b   : > { %v11537_v63 = vpop.f32.mrf.mxu0 }
 0x14c   : > { %v1317_v29 = vadd.f32 %v1316_v8, %v1235_v19  ;;  %v1408_v59 = vadd.f32 %v11537_v63, %v1325_v34 }
 0x14d   : > { %v1401_v18 = vpop.f32.mrf.mxu0 }
 0x14e   : > { %v11558_v17 = vpop.f32.mrf.mxu1  ;;  %v1402_v48 = vadd.f32 %v1401_v18, %v1317_v29  ;;  %v1487_v20 = vadd.f32 %v11544_v46, %v1408_v59  ;;  %v13253_v46 = vand.u32 4294901760, %v2513_v54 }
 0x150   : > { %v1660_v60 = vpop.f32.mrf.mxu1  ;;  %v1481_v37 = vadd.f32 %v1480_v14, %v1402_v48  ;;  %v13256_v57 = vsub.f32 %v2513_v54, %v13253_v46 }
 0x153   : > { %v11572_v24 = vpop.f32.mrf.mxu1 }
 0x154   : > { %v11551_v31 = vpop.f32.mrf.mxu0 }
 0x155   : > { %v1824_v36 = vpop.f32.mrf.mxu1  ;;  %v1580_v40 = vadd.f32 %v11551_v31, %v1487_v20 }
 0x156   : > { %v1569_v22 = vpop.f32.mrf.mxu0 }
 0x157   : > { %v1570_v26 = vadd.f32 %v1569_v22, %v1481_v37  ;;  %v1667_v33 = vadd.f32 %v11558_v17, %v1580_v40  ;;  %v11033_v37 = vld [vmem:[%s14409_s3 + $0x8] sm:$0xff] }
 0x158   : > { %v11565_v53 = vpop.f32.mrf.mxu0 }
 0x159   : > { %v1661_v16 = vadd.f32 %v1660_v60, %v1570_v26  ;;  %v1750_v8 = vadd.f32 %v11565_v53, %v1667_v33  ;;  %v13259_v53 = vand.u32 4294901760, %v13256_v57 }
 0x15a   : > { %v1742_v47 = vpop.f32.mrf.mxu0 }
 0x15b   : > { %v11586_v6 = vpop.f32.mrf.mxu1  ;;  %v1743_v52 = vadd.f32 %v1742_v47, %v1661_v16  ;;  %v1833_v14 = vadd.f32 %v11572_v24, %v1750_v8  ;;  %v2979_v16 = vsel %vm496_vm1, %v11033_v37, 0 }
 0x15c   : > { %v11579_v32 = vpop.f32.mrf.mxu0 }
 0x15d   : > { %v1988_v10 = vpop.f32.mrf.mxu1  ;;  %v1825_v17 = vadd.f32 %v1824_v36, %v1743_v52  ;;  %v1916_v31 = vadd.f32 %v11579_v32, %v1833_v14  ;;  %v2585_v32 = vsub.f32 %v13256_v57, %v13259_v53 }
 0x15e   : > { %v1909_v38 = vpop.f32.mrf.mxu0 }
 0x15f   : > { %v1910_v48 = vadd.f32 %v1909_v38, %v1825_v17  ;;  %v1995_v36 = vadd.f32 %v11586_v6, %v1916_v31  ;;  %v13269_v8 = vand.u32 4294901760, %v2585_v32  ;;  %v11038_v31 = vld [vmem:[%s14410_s4 + $0x38] sm:$0xff] }
 0x161   : > { %v1989_v56 = vadd.f32 %v1988_v10, %v1910_v48 }
 0x162   : > { %v11600_v39 = vpop.f32.mrf.mxu1 }
 0x164   : > { %v2171_v45 = vpop.f32.mrf.mxu1 }
 0x166   : > { %v11614_v30 = vpop.f32.mrf.mxu1 }
 0x168   : > { %v11593_v28 = vpop.f32.mrf.mxu0  ;;  %v2335_v18 = vpop.f32.mrf.mxu1 }
 0x169   : > { %v2178_v63 = vadd.f32 %v11600_v39, %v11593_v28  ;;  %v13271_v28 = vand.u32 4294901760, %v2979_v16 }
 0x16a   : > { %v2080_v12 = vpop.f32.mrf.mxu0  ;;  %v11628_v59 = vpop.f32.mrf.mxu1 }
 0x16b   : > { %v2172_v2 = vadd.f32 %v2171_v45, %v2080_v12  ;;  %v13283_v12 = vsub.f32 %v2979_v16, %v13271_v28  ;;  %v11040_v16 = vld [vmem:[%s14410_s4 + $0x58] sm:$0xff] }
 0x16c   : > { %v2499_v26 = vpop.f32.mrf.mxu1 }
 0x16d   : > { %v11607_v21 = vpop.f32.mrf.mxu0  ;;  %v13291_v17 = vand.u32 4294901760, %v13283_v12 }
 0x16e   : > { %v2261_v19 = vadd.f32 %v11607_v21, %v2178_v63 }
 0x16f   : > { %v2253_v60 = vpop.f32.mrf.mxu0 }
 0x170   : > { %v2344_v34 = vadd.f32 %v11614_v30, %v2261_v19  ;;  %v2254_v22 = vadd.f32 %v2253_v60, %v2172_v2  ;;  %v3051_v19 = vsub.f32 %v13283_v12, %v13291_v17 }
 0x171   : > { %v11621_v29 = vpop.f32.mrf.mxu0 }
 0x172   : > { %v2336_v24 = vadd.f32 %v2335_v18, %v2254_v22  ;;  %v2427_v20 = vadd.f32 %v11621_v29, %v2344_v34  ;;  %v13308_v60 = vand.u32 4294901760, %v3051_v19  ;;  %v11037_v34 = vld [vmem:[%s14410_s4 + $0x30] sm:$0xff]  ;;  %v13326_v22 = vand.u32 4294901760, %v11038_v31 }
 0x173   : > { %v2420_v47 = vpop.f32.mrf.mxu0  ;;  %v13331_v29 = vand.u32 4294901760, %v11037_v34 }
 0x174   : > { %v2506_v40 = vadd.f32 %v11628_v59, %v2427_v20  ;;  %v2421_v39 = vadd.f32 %v2420_v47, %v2336_v24  ;;  %v3565_v59 = vsub.f32 %v11038_v31, %v13326_v22 }
 0x175   : > { %v3572_v48 = vsub.f32 %v11037_v34, %v13331_v29 }
 0x176   : > { %v2510_v33 = vadd.f32 %v2506_v40, %v1995_v36  ;;  %v2500_v45 = vadd.f32 %v2499_v26, %v2421_v39  ;;  %v3566_v24 = vand.u32 4294901760, %v3565_v59  ;;  %v11036_v36 = vld [vmem:[%s14410_s4 + $0x18] sm:$0xff]  ;;  %v11035_v39 = vld [vmem:[%s14410_s4 + $0x10] sm:$0xff] }
 0x177   : > { %v3573_v20 = vand.u32 4294901760, %v3572_v48  ;;  %v13374_v32 = vand.u32 4294901760, %v11036_v36 }
 0x178   : > { %v13267_v38 = vand.u32 4294901760, %v2510_v33  ;;  %v2509_v54 = vadd.f32 %v2500_v45, %v1989_v56  ;;  %v3567_v47 = vsub.f32 %v3565_v59, %v3566_v24  ;;  %v13379_v56 = vand.u32 4294901760, %v11035_v39 }
 0x179   : > { %v3574_v37 = vsub.f32 %v3572_v48, %v3573_v20 }
 0x17a   : > { %v2622_v6 = vsub.f32 %v2510_v33, %v13267_v38  ;;  %v13274_v30 = vand.u32 4294901760, %v2509_v54  ;;  %11630 = vmatpush3.msra.mxu0 %v13267_v38  ;;  %v3568_v40 = vand.u32 4294901760, %v3567_v47  ;;  %v4067_v33 = vsub.f32 %v11036_v36, %v13374_v32 }
 0x17b   : > { %11631 = vmatprep.subr.mxu0 %v12535_v55  ;;  %v3575_v26 = vand.u32 4294901760, %v3574_v37 }
 0x17c   : > { %v2629_v10 = vsub.f32 %v2509_v54, %v13274_v30  ;;  %11632 = vmatpush3.msra.mxu0 %v13274_v30  ;;  %v2623_v52 = vand.u32 4294901760, %v2622_v6  ;;  %v13410_v54 = vand.u32 4294901760, %v11040_v16 }
 0x17d   : > { %11643 = vmatprep.subr.mxu0 %v12535_v55  ;;  %11634 = vmatmul.mubr.f32.vlgmr.msra.gmra.mxu0 %v13269_v8 }
 0x17e   : > { %11644 = vmatpush3.msra.mxu0 %v2622_v6  ;;  %11647 = vmatprep.mubr.msk.f32.mxu0 %vm12536_vm2, %v12535_v55  ;;  %v2624_v14 = vsub.f32 %v2622_v6, %v2623_v52  ;;  %v2630_v63 = vand.u32 4294901760, %v2629_v10 }
 0x17f   : > { %11645 = vmatprep.subr.mxu0 %v12535_v55 }
 0x180   : > { %11646 = vmatpush3.msra.mxu0 %v2629_v10  ;;  %v2625_v21 = vand.u32 4294901760, %v2624_v14  ;;  %v2631_v18 = vsub.f32 %v2629_v10, %v2630_v63 }
 0x181   : > { %11657 = vmatprep.subr.mxu0 %v12535_v55  ;;  %11648 = vmatmul.mubr.f32.vlgmr.msra.gmra.mxu0 %v13256_v57 }
 0x182   : > { %11637 = vmatpush3.msra.mxu1 %v2625_v21  ;;  %11658 = vmatpush3.msra.mxu0 %v2623_v52  ;;  %v2632_v2 = vand.u32 4294901760, %v2631_v18 }
 0x183   : > { %11638 = vmatprep.subr.mxu1 %v12535_v55  ;;  %11659 = vmatprep.subr.mxu0 %v12535_v55 }
 0x184   : > { %11639 = vmatpush3.msra.mxu1 %v2632_v2  ;;  %11660 = vmatpush3.msra.mxu0 %v2630_v63 }
 0x185   : > { %11641 = vmatmul.mubr.f32.vlgmr.msra.gmra.mxu1 %v13253_v46  ;;  %11650 = vmatprep.subr.mxu1 %v12535_v55 }
 0x186   : > { %11661 = vmatprep.mubr.msk.f32.mxu0 %vm12536_vm2, %v12535_v55  ;;  %11671 = vmatprep.subr.mxu0 %v12535_v55 }
 0x187   : > { %11651 = vmatpush3.msra.mxu1 %v13267_v38  ;;  %11662 = vmatmul.mubr.f32.vlgmr.msra.gmra.mxu0 %v13253_v46 }
 0x188   : > { %11672 = vmatpush3.msra.mxu0 %v13267_v38  ;;  %11652 = vmatprep.subr.mxu1 %v12535_v55 }
 0x189   : > { %11673 = vmatprep.subr.mxu0 %v12535_v55  ;;  %11653 = vmatpush3.msra.mxu1 %v13274_v30 }
 0x18a   : > { %11654 = vmatprep.mubr.msk.f32.mxu1 %vm12536_vm2, %v12535_v55  ;;  %11674 = vmatpush3.msra.mxu0 %v13274_v30 }
 0x18b   : > { %11655 = vmatmul.mubr.f32.vlgmr.msra.gmra.mxu1 %v13259_v53  ;;  %11664 = vmatprep.subr.mxu1 %v12535_v55 }
 0x18c   : > { %11675 = vmatprep.mubr.msk.f32.mxu0 %vm12536_vm2, %v12535_v55  ;;  %11685 = vmatprep.subr.mxu0 %v12535_v55 }
 0x18d   : > { %11665 = vmatpush3.msra.mxu1 %v13267_v38  ;;  %11676 = vmatmul.mubr.f32.vlgmr.msra.gmra.mxu0 %v13308_v60 }
 0x18e   : > { %11686 = vmatpush3.msra.mxu0 %v2622_v6  ;;  %11666 = vmatprep.subr.mxu1 %v12535_v55 }
 0x18f   : > { %11687 = vmatprep.subr.mxu0 %v12535_v55  ;;  %11667 = vmatpush3.msra.mxu1 %v13274_v30 }
 0x190   : > { %11668 = vmatprep.mubr.msk.f32.mxu1 %vm12536_vm2, %v12535_v55  ;;  %11688 = vmatpush3.msra.mxu0 %v2629_v10 }
 0x191   : > { %11669 = vmatmul.mubr.f32.vlgmr.msra.gmra.mxu1 %v13253_v46  ;;  %11678 = vmatprep.subr.mxu1 %v12535_v55 }
 0x192   : > { %11689 = vmatprep.mubr.msk.f32.mxu0 %vm12536_vm2, %v12535_v55  ;;  %11699 = vmatprep.subr.mxu0 %v12535_v55 }
 0x193   : > { %11679 = vmatpush3.msra.mxu1 %v2625_v21  ;;  %11690 = vmatmul.mubr.f32.vlgmr.msra.gmra.mxu0 %v13283_v12 }
 0x194   : > { %11700 = vmatpush3.msra.mxu0 %v2623_v52  ;;  %11680 = vmatprep.subr.mxu1 %v12535_v55 }
 0x195   : > { %11701 = vmatprep.subr.mxu0 %v12535_v55  ;;  %11681 = vmatpush3.msra.mxu1 %v2632_v2 }
 0x196   : > { %11682 = vmatprep.mubr.msk.f32.mxu1 %vm12536_vm2, %v12535_v55  ;;  %11702 = vmatpush3.msra.mxu0 %v2630_v63 }
 0x197   : > { %11683 = vmatmul.mubr.f32.vlgmr.msra.gmra.mxu1 %v13271_v28  ;;  %11692 = vmatprep.subr.mxu1 %v12535_v55 }
 0x198   : > { %11693 = vmatpush3.msra.mxu1 %v13267_v38  ;;  %11696 = vmatprep.mubr.msk.f32.mxu1 %vm12536_vm2, %v12535_v55 }
 0x199   : > { %11694 = vmatprep.subr.mxu1 %v12535_v55  ;;  %11703 = vmatprep.mubr.msk.f32.mxu0 %vm12536_vm2, %v12535_v55 }
 0x19a   : > { %11695 = vmatpush3.msra.mxu1 %v13274_v30  ;;  %11704 = vmatmul.mubr.f32.vlgmr.msra.gmra.mxu0 %v13271_v28 }
 0x19b   : > { %11697 = vmatmul.mubr.f32.vlgmr.msra.gmra.mxu1 %v13291_v17  ;;  %11706 = vmatprep.subr.mxu1 %v12535_v55 }
 0x19c   : > { %11713 = vmatprep.subr.mxu0 %v13326_v22  ;;  %11707 = vmatpush3.msra.mxu1 %v13267_v38 }
 0x19d   : > { %11714 = vmatpush3.msra.mxu0 %v13326_v22  ;;  %11708 = vmatprep.subr.mxu1 %v12535_v55 }
 0x19e   : > { %11715 = vmatprep.subr.mxu0 %v13331_v29  ;;  %11709 = vmatpush3.msra.mxu1 %v13274_v30 }
 0x19f   : > { %11710 = vmatprep.mubr.msk.f32.mxu1 %vm12536_vm2, %v12535_v55  ;;  %11716 = vmatpush3.msra.mxu0 %v13331_v29 }
 0x1a0   : > { %11717 = vmatprep.mubr.f32.mxu0 %v12975_v50  ;;  %11711 = vmatmul.mubr.f32.vlgmr.msra.gmra.mxu1 %v13271_v28  ;;  %v4074_v50 = vsub.f32 %v11035_v39, %v13379_v56 }
 0x1a1   : > { %11718 = vmatmul.mubr.f32.vlgmr.msra.gmra.mxu0 %v13017_v61  ;;  %11720 = vmatprep.subr.mxu1 %v3568_v40  ;;  %v4068_v61 = vand.u32 4294901760, %v4067_v33 }
 0x1a2   : > { %11727 = vmatprep.subr.mxu0 %v3565_v59  ;;  %11721 = vmatpush3.msra.mxu1 %v3568_v40  ;;  %v4075_v45 = vand.u32 4294901760, %v4074_v50 }
 0x1a3   : > { %11728 = vmatpush3.msra.mxu0 %v3565_v59  ;;  %11722 = vmatprep.subr.mxu1 %v3575_v26 }
 0x1a4   : > { %11729 = vmatprep.subr.mxu0 %v3572_v48  ;;  %11723 = vmatpush3.msra.mxu1 %v3575_v26 }
 0x1a5   : > { %11724 = vmatprep.mubr.f32.mxu1 %v12925_v5  ;;  %11730 = vmatpush3.msra.mxu0 %v3572_v48 }
 0x1a6   : > { %11731 = vmatprep.mubr.f32.mxu0 %v12936_v58  ;;  %11725 = vmatmul.mubr.f32.vlgmr.msra.gmra.mxu1 %v12957_v1  ;;  %v4069_v58 = vsub.f32 %v4067_v33, %v4068_v61 }
 0x1a7   : > { %11732 = vmatmul.mubr.f32.vlgmr.msra.gmra.mxu0 %v12970_v51  ;;  %11734 = vmatprep.subr.mxu1 %v13326_v22  ;;  %v4076_v51 = vsub.f32 %v4074_v50, %v4075_v45 }
 0x1a8   : > { %11741 = vmatprep.subr.mxu0 %v3566_v24  ;;  %11735 = vmatpush3.msra.mxu1 %v13326_v22 }
 0x1a9   : > { %11742 = vmatpush3.msra.mxu0 %v3566_v24  ;;  %11736 = vmatprep.subr.mxu1 %v13331_v29  ;;  %v4077_v38 = vand.u32 4294901760, %v4076_v51 }
 0x1aa   : > { %11743 = vmatprep.subr.mxu0 %v3573_v20  ;;  %11737 = vmatpush3.msra.mxu1 %v13331_v29 }
 0x1ab   : > { %11738 = vmatprep.mubr.f32.mxu1 %v12950_v42  ;;  %11744 = vmatpush3.msra.mxu0 %v3573_v20  ;;  %v4070_v42 = vand.u32 4294901760, %v4069_v58 }
 0x1ac   : > { %11745 = vmatprep.mubr.f32.mxu0 %v12925_v5  ;;  %11739 = vmatmul.mubr.f32.vlgmr.msra.gmra.mxu1 %v12987_v41  ;;  %v11039_v41 = vld [vmem:[%s14410_s4 + $0x50] sm:$0xff] }
 0x1ad   : > { %11746 = vmatmul.mubr.f32.vlgmr.msra.gmra.mxu0 %v12957_v1  ;;  %11748 = vmatprep.subr.mxu1 %v13326_v22  ;;  %v13415_v6 = vand.u32 4294901760, %v11039_v41 }
 0x1ae   : > { %11755 = vmatprep.subr.mxu0 %v13374_v32  ;;  %11749 = vmatpush3.msra.mxu1 %v13326_v22 }
 0x1af   : > { %11756 = vmatpush3.msra.mxu0 %v13374_v32  ;;  %11750 = vmatprep.subr.mxu1 %v13331_v29 }
 0x1b0   : > { %11757 = vmatprep.subr.mxu0 %v13379_v56  ;;  %11751 = vmatpush3.msra.mxu1 %v13331_v29 }
 0x1b1   : > { %11752 = vmatprep.mubr.f32.mxu1 %v12925_v5  ;;  %11758 = vmatpush3.msra.mxu0 %v13379_v56  ;;  %v4572_v5 = vsub.f32 %v11040_v16, %v13410_v54 }
 0x1b2   : > { %11759 = vmatprep.mubr.f32.mxu0 %v13077_v13  ;;  %11753 = vmatmul.mubr.f32.vlgmr.msra.gmra.mxu1 %v12957_v1  ;;  %v4579_v13 = vsub.f32 %v11039_v41, %v13415_v6 }
 0x1b3   : > { %11760 = vmatmul.mubr.f32.vlgmr.msra.gmra.mxu0 %v13144_v43  ;;  %11762 = vmatprep.subr.mxu1 %v4070_v42  ;;  %v4573_v1 = vand.u32 4294901760, %v4572_v5 }
 0x1b4   : > { %11769 = vmatprep.subr.mxu0 %v4067_v33  ;;  %11763 = vmatpush3.msra.mxu1 %v4070_v42  ;;  %v4580_v43 = vand.u32 4294901760, %v4579_v13 }
 0x1b5   : > { %11770 = vmatpush3.msra.mxu0 %v4067_v33  ;;  %11764 = vmatprep.subr.mxu1 %v4077_v38 }
 0x1b6   : > { %11771 = vmatprep.subr.mxu0 %v4074_v50  ;;  %11765 = vmatpush3.msra.mxu1 %v4077_v38 }
 0x1b7   : > { %11766 = vmatprep.mubr.f32.mxu1 %v13012_v49  ;;  %11772 = vmatpush3.msra.mxu0 %v4074_v50 }
 0x1b8   : > { %11773 = vmatprep.mubr.f32.mxu0 %v13030_v4  ;;  %11767 = vmatmul.mubr.f32.vlgmr.msra.gmra.mxu1 %v13092_v11  ;;  %v4574_v4 = vsub.f32 %v4572_v5, %v4573_v1 }
 0x1b9   : > { %11774 = vmatmul.mubr.f32.vlgmr.msra.gmra.mxu0 %v13110_v62  ;;  %11776 = vmatprep.subr.mxu1 %v13374_v32  ;;  %v4581_v62 = vsub.f32 %v4579_v13, %v4580_v43 }
 0x1ba   : > { %11783 = vmatprep.subr.mxu0 %v4068_v61  ;;  %11777 = vmatpush3.msra.mxu1 %v13374_v32 }
 0x1bb   : > { %11784 = vmatpush3.msra.mxu0 %v4068_v61  ;;  %11778 = vmatprep.subr.mxu1 %v13379_v56 }
 0x1bc   : > { %11785 = vmatprep.subr.mxu0 %v4075_v45  ;;  %11779 = vmatpush3.msra.mxu1 %v13379_v56 }
 0x1bd   : > { %11780 = vmatprep.mubr.f32.mxu1 %v13045_v15  ;;  %11786 = vmatpush3.msra.mxu0 %v4075_v45  ;;  %v4575_v15 = vand.u32 4294901760, %v4574_v4 }
 0x1be   : > { %11787 = vmatprep.mubr.f32.mxu0 %v13012_v49  ;;  %11781 = vmatmul.mubr.f32.vlgmr.msra.gmra.mxu1 %v13122_v44  ;;  %v4582_v44 = vand.u32 4294901760, %v4581_v62 }
 0x1bf   : > { %11788 = vmatmul.mubr.f32.vlgmr.msra.gmra.mxu0 %v13092_v11  ;;  %11790 = vmatprep.subr.mxu1 %v13374_v32 }
 0x1c0   : > { %11797 = vmatprep.subr.mxu0 %v13410_v54  ;;  %11791 = vmatpush3.msra.mxu1 %v13374_v32 }
 0x1c1   : > { %11798 = vmatpush3.msra.mxu0 %v13410_v54  ;;  %11792 = vmatprep.subr.mxu1 %v13379_v56 }
 0x1c2   : > { %11799 = vmatprep.subr.mxu0 %v13415_v6  ;;  %11793 = vmatpush3.msra.mxu1 %v13379_v56 }
 0x1c3   : > { %11794 = vmatprep.mubr.f32.mxu1 %v13012_v49  ;;  %11800 = vmatpush3.msra.mxu0 %v13415_v6 }
 0x1c4   : > { %11801 = vmatprep.mubr.f32.mxu0 %v13197_v23  ;;  %11795 = vmatmul.mubr.f32.vlgmr.msra.gmra.mxu1 %v13092_v11 }
 0x1c5   : > { %11802 = vmatmul.mubr.f32.vlgmr.msra.gmra.mxu0 %v13226_v25  ;;  %11804 = vmatprep.subr.mxu1 %v4575_v15 }
 0x1c6   : > { %11811 = vmatprep.subr.mxu0 %v4572_v5  ;;  %11805 = vmatpush3.msra.mxu1 %v4575_v15  ;;  %v13478_v15 = vld [vmem:[#allocation2 + $0x7] sm:$0xff] }
 0x1c7   : > { %11812 = vmatpush3.msra.mxu0 %v4572_v5  ;;  %11806 = vmatprep.subr.mxu1 %v4582_v44  ;;  %v583_v5 = vstv %s10967_s15  ;;  %s13569_s15 = sld [smem:[#allocation5 + $0x30]] }
 0x1c8   : > { %11813 = vmatprep.subr.mxu0 %v4579_v13  ;;  %11807 = vmatpush3.msra.mxu1 %v4582_v44 }
 0x1c9   : > { %11808 = vmatprep.mubr.f32.mxu1 %v13156_v35  ;;  %11814 = vmatpush3.msra.mxu0 %v4579_v13 }
 0x1ca   : > { %11815 = vmatprep.mubr.f32.mxu0 %v13168_v7  ;;  %11809 = vmatmul.mubr.f32.vlgmr.msra.gmra.mxu1 %v13204_v0 }
 0x1cb   : > { %11816 = vmatmul.mubr.f32.vlgmr.msra.gmra.mxu0 %v13209_v27  ;;  %11818 = vmatprep.subr.mxu1 %v13410_v54 }
 0x1cc   : > { %11825 = vmatprep.subr.mxu0 %v4573_v1  ;;  %11819 = vmatpush3.msra.mxu1 %v13410_v54 }
 0x1cd   : > { %11826 = vmatpush3.msra.mxu0 %v4573_v1  ;;  %11820 = vmatprep.subr.mxu1 %v13415_v6 }
 0x1ce   : > { %11827 = vmatprep.subr.mxu0 %v4580_v43  ;;  %11821 = vmatpush3.msra.mxu1 %v13415_v6 }
 0x1cf   : > { %11822 = vmatprep.mubr.f32.mxu1 %v13180_v9  ;;  %11828 = vmatpush3.msra.mxu0 %v4580_v43 }
 0x1d0   : > { %11829 = vmatprep.mubr.f32.mxu0 %v13156_v35  ;;  %11823 = vmatmul.mubr.f32.vlgmr.msra.gmra.mxu1 %v13216_v3 }
 0x1d1   : > { %11830 = vmatmul.mubr.f32.vlgmr.msra.gmra.mxu0 %v13204_v0  ;;  %11832 = vmatprep.subr.mxu1 %v13410_v54 }
 0x1d2   : > { %11833 = vmatpush3.msra.mxu1 %v13410_v54  ;;  %11836 = vmatprep.mubr.f32.mxu1 %v13156_v35 }
 0x1d3   : > { %11834 = vmatprep.subr.mxu1 %v13415_v6  ;;  %11839 = vmatprep.subr.mxu0 %v12535_v55 }
 0x1d4   : > { %11835 = vmatpush3.msra.mxu1 %v13415_v6  ;;  %11843 = vmatprep.mubr.msk.f32.mxu0 %vm12536_vm2, %v12535_v55  ;;  %v545_v6 = vstv %s10961_s14  ;;  %s13562_s14 = sld [smem:[#allocation5 + $0x43]] }
 0x1d5   : > { %11837 = vmatmul.mubr.f32.vlgmr.msra.gmra.mxu1 %v13204_v0  ;;  %11846 = vmatprep.subr.mxu1 %v12535_v55  ;;  %v546_v44 = vmul.f32 %v13478_v15, %v545_v6 }
 0x1d6   : > { %11850 = vmatprep.mubr.msk.f32.mxu1 %vm12536_vm2, %v12535_v55 }
 0x23d   : > { %v2588_v49 = vpop.f32.mrf.mxu0 }
 0x23f   : > { %v11635_v11 = vpop.f32.mrf.mxu0 }
 0x241   : > { %v2745_v35 = vpop.f32.mrf.mxu0 }
 0x243   : > { %v11649_v7 = vpop.f32.mrf.mxu0 }
 0x244   : > { %v621_v7 = vstv %s13474_s16  ;;  %s13578_s16 = sld [smem:[#allocation5 + $0x46]] }
 0x245   : > { %v2669_v9 = vpop.f32.mrf.mxu1 }
 0x246   : > { %v2670_v23 = vadd.f32 %v2669_v9, %v2588_v49  ;;  %v13481_v49 = vld [vmem:[#allocation2 + $0x8] sm:$0xff] }
 0x247   : > { %v11642_v27 = vpop.f32.mrf.mxu1  ;;  %v2897_v3 = vpop.f32.mrf.mxu0  ;;  %v584_v11 = vmul.f32 %v13481_v49, %v583_v5 }
 0x248   : > { %v2746_v25 = vadd.f32 %v2745_v35, %v2670_v23  ;;  %v13487_v23 = vld [vmem:[#allocation2 + $0xf] sm:$0xff] }
 0x249   : > { %v11663_v30 = vpop.f32.mrf.mxu0  ;;  %v547_v27 = vmul.f32 %v13487_v23, %v545_v6 }
 0x24b   : > { %v2820_v10 = vpop.f32.mrf.mxu1 }
 0x24c   : > { %v2821_v52 = vadd.f32 %v2820_v10, %v2746_v25 }
 0x24d   : > { %v11656_v14 = vpop.f32.mrf.mxu1  ;;  %v3054_v0 = vpop.f32.mrf.mxu0 }
 0x24e   : > { %v2898_v63 = vadd.f32 %v2897_v3, %v2821_v52  ;;  %v13490_v3 = vld [vmem:[#allocation2 + $0x10] sm:$0xff]  ;;  %v586_v52 = vadd.f32 %v584_v11, %v546_v44 }
 0x24f   : > { %v11677_v21 = vpop.f32.mrf.mxu0  ;;  %v585_v25 = vmul.f32 %v13490_v3, %v583_v5  ;;  %v13493_v14 = vld [vmem:[#allocation2 + $0x9] sm:$0xff]  ;;  %v13542_v11 = vld [vmem:[#allocation2 + $0x31] sm:$0xff] }
 0x250   : > { %v660_v21 = vstv %s13476_s13  ;;  %v13532_v5 = vld [vmem:[#allocation2 + $0x29] sm:$0xff]  ;;  %s13585_s13 = sld [smem:[#allocation5 + $0x33]] }
 0x251   : > { %v2970_v18 = vpop.f32.mrf.mxu1 }
 0x252   : > { %v2971_v2 = vadd.f32 %v2970_v18, %v2898_v63 }
 0x253   : > { %v11670_v19 = vpop.f32.mrf.mxu1  ;;  %v3211_v31 = vpop.f32.mrf.mxu0 }
 0x254   : > { %2975 = vst.msk [vmem:[%s13468_s9] sm:$0xff] %vm2974_vm3, %v2971_v2 }
 0x255   : > { %v11691_v34 = vpop.f32.mrf.mxu0 }
 0x257   : > { %v3135_v22 = vpop.f32.mrf.mxu1 }
 0x258   : > { %v3136_v29 = vadd.f32 %v3135_v22, %v3054_v0  ;;  %v622_v0 = vmul.f32 %v13493_v14, %v621_v7  ;;  %v587_v22 = vadd.f32 %v585_v25, %v547_v27  ;;  %v13545_v25 = vld [vmem:[#allocation2 + $0x47] sm:$0xff] }
 0x259   : > { %v11684_v59 = vpop.f32.mrf.mxu1 }
 0x25a   : > { %v3212_v48 = vadd.f32 %v3211_v31, %v3136_v29  ;;  %v3363_v24 = vpop.f32.mrf.mxu0  ;;  %v13499_v31 = vld [vmem:[#allocation2 + $0x11] sm:$0xff]  ;;  %v624_v59 = vadd.f32 %v622_v0, %v586_v52  ;;  %v813_v52 = vstv %s13518_s20  ;;  %s13613_s20 = sld [smem:[#allocation5 + $0x2c]] }
 0x25b   : > { %v3286_v20 = vpop.f32.mrf.mxu1  ;;  %v623_v34 = vmul.f32 %v13499_v31, %v621_v7 }
 0x25c   : > { %v3287_v47 = vadd.f32 %v3286_v20, %v3212_v48  ;;  %v11705_v37 = vpop.f32.mrf.mxu0  ;;  %v13502_v48 = vld [vmem:[#allocation2 + $0x27] sm:$0xff]  ;;  %v698_v20 = vstv %s13485_s12  ;;  %s13590_s12 = sld [smem:[#allocation5 + $0x26]] }
 0x25d   : > { %v11698_v36 = vpop.f32.mrf.mxu1 }
 0x25e   : > { %v3364_v40 = vadd.f32 %v3363_v24, %v3287_v47  ;;  %v661_v24 = vmul.f32 %v13502_v48, %v660_v21 }
 0x260   : > { %v3436_v39 = vpop.f32.mrf.mxu1 }
 0x261   : > { %v3437_v26 = vadd.f32 %v3436_v39, %v3364_v40  ;;  %v11719_v32 = vpop.f32.mrf.mxu0  ;;  %v13510_v40 = vld [vmem:[#allocation2 + $0x2f] sm:$0xff] }
 0x262   : > { %v11712_v56 = vpop.f32.mrf.mxu1  ;;  %v662_v39 = vmul.f32 %v13510_v40, %v660_v21  ;;  %v539_v21 = vstv %s13523_s28  ;;  %s13620_s28 = sld [smem:[#allocation5 + $0x39]] }
 0x263   : > { %11034 = vst.msk [vmem:[%s13468_s9 + $0x10] sm:$0xff] %vm2974_vm3, %v3437_v26  ;;  %v3521_v33 = vpop.f32.mrf.mxu0  ;;  %v625_v26 = vadd.f32 %v623_v34, %v587_v22 }
 0x266   : > { %v11726_v50 = vpop.f32.mrf.mxu1 }
 0x267   : > { %v11733_v61 = vpop.f32.mrf.mxu0  ;;  %v3619_v42 = vadd.f32 %v11726_v50, %v11719_v32  ;;  %v13515_v50 = vld [vmem:[#allocation2 + $0x28] sm:$0xff] }
 0x268   : > { %v3612_v45 = vpop.f32.mrf.mxu1 }
 0x269   : > { %v3694_v58 = vpop.f32.mrf.mxu0  ;;  %v3613_v54 = vadd.f32 %v3612_v45, %v3521_v33  ;;  %v3702_v13 = vadd.f32 %v11733_v61, %v3619_v42  ;;  %v663_v33 = vadd.f32 %v661_v24, %v624_v59  ;;  %v699_v61 = vmul.f32 %v13515_v50, %v698_v20 }
 0x26b   : > { %v3695_v4 = vadd.f32 %v3694_v58, %v3613_v54  ;;  %v736_v58 = vstv %s13497_s18  ;;  %v701_v6 = vadd.f32 %v699_v61, %v663_v33  ;;  %s13597_s18 = sld [smem:[#allocation5 + $0x29]] }
 0x26c   : > { %v11740_v51 = vpop.f32.mrf.mxu1 }
 0x26d   : > { %v11747_v16 = vpop.f32.mrf.mxu0  ;;  %v3785_v9 = vadd.f32 %v11740_v51, %v3702_v13  ;;  %v737_v13 = vmul.f32 %v13532_v5, %v736_v58 }
 0x26e   : > { %v3776_v41 = vpop.f32.mrf.mxu1 }
 0x26f   : > { %v3861_v38 = vpop.f32.mrf.mxu0  ;;  %v3777_v30 = vadd.f32 %v3776_v41, %v3695_v4  ;;  %v3868_v18 = vadd.f32 %v11747_v16, %v3785_v9  ;;  %v13527_v16 = vld [vmem:[#allocation2 + $0x30] sm:$0xff]  ;;  %v664_v41 = vadd.f32 %v662_v39, %v625_v26  ;;  %v739_v27 = vadd.f32 %v737_v13, %v701_v6  ;;  %v13558_v39 = vld [vmem:[#allocation2 + $0x48] sm:$0xff] }
 0x270   : > { %v700_v42 = vmul.f32 %v13527_v16, %v698_v20  ;;  %v851_v26 = vstv %s13535_s1  ;;  %v13571_v13 = vld [vmem:[#allocation2 + $0x50] sm:$0xff]  ;;  %s13649_s1 = sld [smem:[#allocation5 + $0x3c]] }
 0x271   : > { %v3862_v29 = vadd.f32 %v3861_v38, %v3777_v30 }
 0x272   : > { %v11754_v1 = vpop.f32.mrf.mxu1  ;;  %v702_v7 = vadd.f32 %v700_v42, %v664_v41  ;;  %v541_v41 = vmul.f32 %v13487_v23, %v539_v21 }
 0x273   : > { %v11761_v43 = vpop.f32.mrf.mxu0  ;;  %v3947_v47 = vadd.f32 %v11754_v1, %v3868_v18  ;;  %v577_v18 = vstv %s13525_s17  ;;  %s13636_s17 = sld [smem:[#allocation5 + $0x2f]] }
 0x274   : > { %v3940_v62 = vpop.f32.mrf.mxu1 }
 0x275   : > { %v4023_v35 = vpop.f32.mrf.mxu0  ;;  %v3941_v32 = vadd.f32 %v3940_v62, %v3862_v29  ;;  %v4034_v51 = vadd.f32 %v11761_v43, %v3947_v47  ;;  %v775_v43 = vstv %s13506_s19  ;;  %v13555_v29 = vld [vmem:[#allocation2 + $0x4f] sm:$0xff]  ;;  %s13603_s19 = sld [smem:[#allocation5 + $0x36]] }
 0x276   : > { %v776_v30 = vmul.f32 %v13545_v25, %v775_v43 }
 0x277   : > { %v4024_v38 = vadd.f32 %v4023_v35, %v3941_v32  ;;  %v738_v35 = vmul.f32 %v13542_v11, %v736_v58  ;;  %v540_v58 = vmul.f32 %v13478_v15, %v539_v21 }
 0x278   : > { %v11768_v10 = vpop.f32.mrf.mxu1  ;;  %v778_v47 = vadd.f32 %v776_v30, %v739_v27  ;;  %v890_v30 = vstv %s13549_s0  ;;  %s13680_s0 = sld [smem:[#allocation5 + $0x3f]] }
 0x279   : > { %v11775_v63 = vpop.f32.mrf.mxu0  ;;  %v4121_v4 = vadd.f32 %v11768_v10, %v4034_v51  ;;  %v740_v59 = vadd.f32 %v738_v35, %v702_v7  ;;  %v578_v51 = vmul.f32 %v13481_v49, %v577_v18 }
 0x27a   : > { %v4114_v2 = vpop.f32.mrf.mxu1 }
 0x27b   : > { %v4196_v19 = vpop.f32.mrf.mxu0  ;;  %v4115_v9 = vadd.f32 %v4114_v2, %v4024_v38  ;;  %v4204_v10 = vadd.f32 %v11775_v63, %v4121_v4  ;;  %v777_v2 = vmul.f32 %v13555_v29, %v775_v43  ;;  %v814_v63 = vmul.f32 %v13558_v39, %v813_v52 }
 0x27c   : > { %v615_v38 = vstv %s13540_s27  ;;  %s13666_s27 = sld [smem:[#allocation5 + $0x32]] }
 0x27d   : > { %v4197_v24 = vadd.f32 %v4196_v19, %v4115_v9  ;;  %v579_v19 = vmul.f32 %v13490_v3, %v577_v18  ;;  %v779_v43 = vadd.f32 %v777_v2, %v740_v59  ;;  %v816_v35 = vadd.f32 %v814_v63, %v778_v47  ;;  %v13587_v59 = vld [vmem:[#allocation2 + $0x51] sm:$0xff] }
 0x27e   : > { %v11782_v37 = vpop.f32.mrf.mxu1  ;;  %v654_v18 = vstv %s13553_s30  ;;  %s13691_s30 = sld [smem:[#allocation5 + $0x35]] }
 0x27f   : > { %v13508_v36 = vpop.f32.mrf.mxu0  ;;  %v4287_v42 = vadd.f32 %v11782_v37, %v4204_v10  ;;  %v13575_v37 = vld [vmem:[#allocation2 + $0x49] sm:$0xff]  ;;  %v580_v10 = vadd.f32 %v578_v51, %v540_v58 }
 0x280   : > { %v13513_v56 = vpop.f32.mrf.mxu1  ;;  %v852_v7 = vmul.f32 %v13575_v37, %v851_v26 }
 0x281   : > { %v13520_v45 = vpop.f32.mrf.mxu0  ;;  %v4279_v4 = vadd.f32 %v13513_v56, %v4197_v24  ;;  %v617_v56 = vmul.f32 %v13499_v31, %v615_v38  ;;  %v853_v24 = vmul.f32 %v13587_v59, %v851_v26  ;;  %v655_v26 = vmul.f32 %v13502_v48, %v654_v18 }
 0x282   : > { %v854_v63 = vadd.f32 %v852_v7, %v816_v35 }
 0x284   : > { %v13530_v54 = vpop.f32.mrf.mxu1 }
 0x285   : > { %v11803_v1 = vpop.f32.mrf.mxu0 }
 0x286   : > { %v13538_v62 = vpop.f32.mrf.mxu1 }
 0x287   : > { %v4528_v44 = vpop.f32.mrf.mxu0 }
 0x28a   : > { %v11810_v0 = vpop.f32.mrf.mxu1 }
 0x28b   : > { %v4626_v34 = vadd.f32 %v11810_v0, %v11803_v1  ;;  %v11817_v22 = vpop.f32.mrf.mxu0  ;;  %v815_v1 = vmul.f32 %v13571_v13, %v813_v52  ;;  %v616_v0 = vmul.f32 %v13493_v14, %v615_v38  ;;  %v4370_v52 = vadd.f32 %v13508_v36, %v4287_v42 }
 0x28c   : > { %v4619_v20 = vpop.f32.mrf.mxu1  ;;  %v4364_v36 = vadd.f32 %v13520_v45, %v4279_v4  ;;  %v692_v38 = vstv %s13569_s15  ;;  %s13710_s15 = sld [smem:[#allocation5 + $0x38]] }
 0x28d   : > { %v4709_v32 = vadd.f32 %v11817_v22, %v4626_v34  ;;  %v4620_v33 = vadd.f32 %v4619_v20, %v4528_v44  ;;  %v4701_v61 = vpop.f32.mrf.mxu0  ;;  %v581_v34 = vadd.f32 %v579_v19, %v541_v41  ;;  %v817_v20 = vadd.f32 %v815_v1, %v779_v43  ;;  %v13605_v43 = vld [vmem:[#allocation2 + $0x6f] sm:$0xff] }
 0x28e   : > { %v618_v42 = vadd.f32 %v616_v0, %v580_v10  ;;  %v656_v41 = vmul.f32 %v13510_v40, %v654_v18  ;;  %v4449_v19 = vadd.f32 %v13530_v54, %v4370_v52  ;;  %v892_v4 = vmul.f32 %v13605_v43, %v890_v30 }
 0x28f   : > { %v4702_v6 = vadd.f32 %v4701_v61, %v4620_v33  ;;  %v928_v61 = vstv %s13562_s14  ;;  %v855_v7 = vadd.f32 %v853_v24, %v817_v20  ;;  %v966_v10 = vstv %s13578_s16  ;;  %v13625_v24 = vld [vmem:[#allocation2 + $0x69] sm:$0xff]  ;;  %s13700_s14 = sld [smem:[#allocation5 + $0x42]] }
 0x290   : > { %v11824_v44 = vpop.f32.mrf.mxu1  ;;  %v657_v52 = vadd.f32 %v655_v26, %v618_v42  ;;  %v967_v20 = vmul.f32 %v13625_v24, %v966_v10  ;;  %s13720_s16 = sld [smem:[#allocation5 + $0x45]] }
 0x291   : > { %v4792_v9 = vadd.f32 %v11824_v44, %v4709_v32  ;;  %v11831_v27 = vpop.f32.mrf.mxu0  ;;  %v13593_v32 = vld [vmem:[#allocation2 + $0x67] sm:$0xff] }
 0x292   : > { %v4783_v21 = vpop.f32.mrf.mxu1  ;;  %v891_v33 = vmul.f32 %v13593_v32, %v890_v30  ;;  %v13608_v44 = vld [vmem:[#allocation2 + $0x68] sm:$0xff]  ;;  %v694_v30 = vmul.f32 %v13527_v16, %v692_v38 }
 0x293   : > { %v4875_v22 = vadd.f32 %v11831_v27, %v4792_v9  ;;  %v4784_v2 = vadd.f32 %v4783_v21, %v4702_v6  ;;  %v4868_v47 = vpop.f32.mrf.mxu0  ;;  %v619_v6 = vadd.f32 %v617_v56, %v581_v34  ;;  %v929_v35 = vmul.f32 %v13608_v44, %v928_v61 }
 0x294   : > { %v4443_v9 = vadd.f32 %v13538_v62, %v4364_v36  ;;  %v893_v0 = vadd.f32 %v891_v33, %v854_v63  ;;  %v693_v21 = vmul.f32 %v13515_v50, %v692_v38  ;;  %v730_v34 = vstv %s13585_s13 }
 0x295   : > { %v4869_v58 = vadd.f32 %v4868_v47, %v4784_v2  ;;  %v11838_v51 = vpop.f32.mrf.mxu1  ;;  %v658_v62 = vadd.f32 %v656_v41, %v619_v6  ;;  %v894_v36 = vadd.f32 %v892_v4, %v855_v7  ;;  %v551_v33 = vstv %s13590_s12 }
 0x296   : > { %v4954_v45 = vadd.f32 %v11838_v51, %v4875_v22  ;;  %v13622_v22 = vld [vmem:[#allocation2 + $0x70] sm:$0xff]  ;;  %v695_v51 = vadd.f32 %v693_v21, %v657_v52  ;;  %v731_v42 = vmul.f32 %v13532_v5, %v730_v34  ;;  %v732_v26 = vmul.f32 %v13542_v11, %v730_v34 }
 0x297   : > { %v4947_v1 = vpop.f32.mrf.mxu1  ;;  %v930_v2 = vmul.f32 %v13622_v22, %v928_v61  ;;  %v931_v61 = vadd.f32 %v929_v35, %v893_v0  ;;  %v696_v38 = vadd.f32 %v694_v30, %v658_v62  ;;  %v552_v6 = vmul.f32 %v13478_v15, %v551_v33  ;;  %v13669_v15 = vld [vmem:[#allocation2 + $0x71] sm:$0xff] }
 0x298   : > { %v4958_v27 = vadd.f32 %v4954_v45, %v4449_v19  ;;  %v4948_v54 = vadd.f32 %v4947_v1, %v4869_v58  ;;  %v589_v58 = vstv %s13597_s18  ;;  %v769_v45 = vstv %s13603_s19  ;;  %s13734_s18 = sld [smem:[#allocation5 + $0x3b]] }
 0x299   : > { %v553_v1 = vmul.f32 %v13487_v23, %v551_v33  ;;  %v590_v4 = vmul.f32 %v13481_v49, %v589_v58  ;;  %v968_v49 = vmul.f32 %v13669_v15, %v966_v10  ;;  %v733_v23 = vadd.f32 %v731_v42, %v695_v51 }
 0x29a   : > { %v13617_v56 = vand.u32 4294901760, %v4958_v27  ;;  %v4957_v18 = vadd.f32 %v4948_v54, %v4443_v9  ;;  %v627_v9 = vstv %s13613_s20  ;;  %v771_v54 = vmul.f32 %v13555_v29, %v769_v45 }
 0x29b   : > { %v807_v52 = vstv %s13620_s28  ;;  %v734_v21 = vadd.f32 %v732_v26, %v696_v38  ;;  %v932_v10 = vadd.f32 %v930_v2, %v894_v36  ;;  %v592_v30 = vadd.f32 %v590_v4, %v552_v6  ;;  %s13760_s28 = sld [smem:[#allocation5 + $0x3e]] }
 0x29c   : > { %v13629_v47 = vsub.f32 %v4958_v27, %v13617_v56  ;;  %v13631_v63 = vand.u32 4294901760, %v4957_v18  ;;  %11840 = vmatpush3.msra.mxu0 %v13617_v56  ;;  %v770_v27 = vmul.f32 %v13545_v25, %v769_v45  ;;  %v629_v62 = vmul.f32 %v13499_v31, %v627_v9 }
 0x29d   : > { %11841 = vmatprep.subr.mxu0 %v12535_v55  ;;  %v666_v33 = vstv %s13636_s17  ;;  %v969_v2 = vadd.f32 %v967_v20, %v931_v61  ;;  %v809_v36 = vmul.f32 %v13571_v13, %v807_v52  ;;  %v845_v31 = vstv %s13649_s1  ;;  %s13789_s17 = sld [smem:[#allocation5 + $0x41]] }
 0x29e   : > { %v13642_v41 = vsub.f32 %v4957_v18, %v13631_v63  ;;  %11842 = vmatpush3.msra.mxu0 %v13631_v63  ;;  %v13646_v19 = vand.u32 4294901760, %v13629_v47  ;;  %v628_v18 = vmul.f32 %v13493_v14, %v627_v9  ;;  %v808_v14 = vmul.f32 %v13558_v39, %v807_v52  ;;  %s13817_s1 = sld [smem:[#allocation5 + $0x44]] }
 0x29f   : > { %11853 = vmatprep.subr.mxu0 %v12535_v55  ;;  %11844 = vmatmul.mubr.f32.vlgmr.msra.gmra.mxu0 %v13269_v8  ;;  %v591_v8 = vmul.f32 %v13490_v3, %v589_v58  ;;  %v773_v51 = vadd.f32 %v771_v54, %v734_v21  ;;  %v970_v42 = vadd.f32 %v968_v49, %v932_v10  ;;  %v704_v61 = vstv %s13666_s27  ;;  %s13841_s27 = sld [smem:[#allocation5 + $0x47]] }
 0x2a0   : > { %11854 = vmatpush3.msra.mxu0 %v13629_v47  ;;  %11857 = vmatprep.mubr.msk.f32.mxu0 %vm12536_vm2, %v12535_v55  ;;  %v5072_v35 = vsub.f32 %v13629_v47, %v13646_v19  ;;  %v13662_v7 = vand.u32 4294901760, %v13642_v41  ;;  %v630_v26 = vadd.f32 %v628_v18, %v592_v30  ;;  %v667_v45 = vmul.f32 %v13502_v48, %v666_v33 }
 0x2a1   : > { %11855 = vmatprep.subr.mxu0 %v12535_v55  ;;  %v593_v58 = vadd.f32 %v591_v8, %v553_v1  ;;  %v668_v20 = vmul.f32 %v13510_v40, %v666_v33  ;;  %v846_v1 = vmul.f32 %v13575_v37, %v845_v31  ;;  %v5894_v48 = vsel %vm496_vm1, %v969_v2, 0 }
 0x2a2   : > { %11856 = vmatpush3.msra.mxu0 %v13642_v41  ;;  %v13675_v0 = vand.u32 4294901760, %v5072_v35  ;;  %v5079_v3 = vsub.f32 %v13642_v41, %v13662_v7  ;;  %v847_v40 = vmul.f32 %v13587_v59, %v845_v31  ;;  %v884_v4 = vstv %s13680_s0 }
 0x2a3   : > { %11867 = vmatprep.subr.mxu0 %v12535_v55  ;;  %11858 = vmatmul.mubr.f32.vlgmr.msra.gmra.mxu0 %v13256_v57  ;;  %v772_v57 = vadd.f32 %v770_v27, %v733_v23  ;;  %v631_v38 = vadd.f32 %v629_v62, %v593_v58  ;;  %v811_v35 = vadd.f32 %v809_v36, %v773_v51  ;;  %v5897_v8 = vsel %vm496_vm1, %v970_v42, 0  ;;  %v11045_v23 = vld [vmem:[%s14410_s4 + $0x28] sm:$0xff] }
 0x2a4   : > { %11847 = vmatpush3.msra.mxu1 %v13675_v0  ;;  %11868 = vmatpush3.msra.mxu0 %v13646_v19  ;;  %v13687_v34 = vand.u32 4294901760, %v5079_v3  ;;  %v669_v9 = vadd.f32 %v667_v45, %v630_v26  ;;  %v705_v49 = vmul.f32 %v13515_v50, %v704_v61  ;;  %v706_v27 = vmul.f32 %v13527_v16, %v704_v61  ;;  %v11044_v16 = vld [vmem:[%s14410_s4 + $0x20] sm:$0xff] }
 0x2a5   : > { %11848 = vmatprep.subr.mxu1 %v12535_v55  ;;  %11869 = vmatprep.subr.mxu0 %v12535_v55  ;;  %v810_v6 = vadd.f32 %v808_v14, %v772_v57  ;;  %v742_v54 = vstv %s13691_s30  ;;  %v670_v3 = vadd.f32 %v668_v20, %v631_v38  ;;  %v13738_v50 = vand.u32 4294901760, %v5894_v48  ;;  %s10796_s30 = scalar_lea.sflag [#allocation6], %s12670_s7 }
 0x2a6   : > { %11849 = vmatpush3.msra.mxu1 %v13687_v34  ;;  %11870 = vmatpush3.msra.mxu0 %v13662_v7  ;;  %v885_v21 = vmul.f32 %v13593_v32, %v884_v4  ;;  %v13747_v10 = vand.u32 4294901760, %v5897_v8  ;;  %v922_v30 = vstv %s13700_s14  ;;  %v849_v18 = vadd.f32 %v847_v40, %v811_v35  ;;  %s12537_s14 = smov [#allocation8]  }
 0x2a7   : > { %11851 = vmatmul.mubr.f32.vlgmr.msra.gmra.mxu1 %v13253_v46  ;;  %11860 = vmatprep.subr.mxu1 %v12535_v55  ;;  %v848_v52 = vadd.f32 %v846_v1, %v810_v6  ;;  %v13753_v62 = vand.u32 4294901760, %v11045_v23  ;;  %v707_v33 = vadd.f32 %v705_v49, %v669_v9  ;;  %v743_v58 = vmul.f32 %v13532_v5, %v742_v54 }
 0x2a8   : > { %11871 = vmatprep.mubr.msk.f32.mxu0 %vm12536_vm2, %v12535_v55  ;;  %11881 = vmatprep.subr.mxu0 %v12535_v55  ;;  %v744_v57 = vmul.f32 %v13542_v11, %v742_v54  ;;  %v781_v14 = vstv %s13710_s15  ;;  %v708_v2 = vadd.f32 %v706_v27, %v670_v3  ;;  %v13767_v36 = vsub.f32 %v5894_v48, %v13738_v50  ;;  %s12456_s15 = sshll.u32 %s12537_s14, 4  ;;  %s12457_s15 = int_to_ptr.vmem [resolvable:$false] %s12456_s15 }
 0x2a9   : > { %11861 = vmatpush3.msra.mxu1 %v13617_v56  ;;  %11872 = vmatmul.mubr.f32.vlgmr.msra.gmra.mxu0 %v13253_v46  ;;  %v887_v5 = vadd.f32 %v885_v21, %v848_v52  ;;  %v13774_v11 = vsub.f32 %v5897_v8, %v13747_v10  ;;  %v924_v31 = vmul.f32 %v13622_v22, %v922_v30  ;;  %v960_v51 = vstv %s13720_s16  ;;  %s12458_s16 = scalar_lea.vmem %s12457_s15, 2048 }
 0x2aa   : > { %11882 = vmatpush3.msra.mxu0 %v13617_v56  ;;  %11862 = vmatprep.subr.mxu1 %v12535_v55  ;;  %v13781_v26 = vsub.f32 %v11045_v23, %v13753_v62  ;;  %v745_v45 = vadd.f32 %v743_v58, %v707_v33  ;;  %v782_v20 = vmul.f32 %v13545_v25, %v781_v14  ;;  %v819_v61 = vstv %s13734_s18 }
 0x2ab   : > { %11883 = vmatprep.subr.mxu0 %v12535_v55  ;;  %11863 = vmatpush3.msra.mxu1 %v13631_v63  ;;  %v746_v38 = vadd.f32 %v744_v57, %v708_v2  ;;  %v961_v25 = vmul.f32 %v13625_v24, %v960_v51  ;;  %v13803_v1 = vand.u32 4294901760, %v13774_v11  ;;  %v857_v35 = vstv %s13760_s28  ;;  %s11069_s28 = sshll.u32 %s12524_s24, 10 }
 0x2ac   : > { %11864 = vmatprep.mubr.msk.f32.mxu1 %vm12536_vm2, %v12535_v55  ;;  %11884 = vmatpush3.msra.mxu0 %v13631_v63  ;;  %v13809_v48 = vand.u32 4294901760, %v13781_v26  ;;  %v784_v40 = vadd.f32 %v782_v20, %v745_v45  ;;  %v858_v27 = vmul.f32 %v13575_v37, %v857_v35  ;;  %v859_v54 = vmul.f32 %v13587_v59, %v857_v35  ;;  %v5890_v59 = vld [vmem:[%s14410_s4 + $0x8] sm:$0xff]  ;;  %s14354_s0 = scalar_lea.hbm %s14412_s6, %s11069_s28 }
 0x2ad   : > { %11865 = vmatmul.mubr.f32.vlgmr.msra.gmra.mxu1 %v13259_v53  ;;  %11874 = vmatprep.subr.mxu1 %v12535_v55  ;;  %v886_v53 = vmul.f32 %v13605_v43, %v884_v4  ;;  %v821_v4 = vmul.f32 %v13571_v13, %v819_v61  ;;  %v896_v3 = vstv %s13789_s17  ;;  %v972_v45 = vstv %s13841_s27  ;;  %s10810_s17 = sshll.u32 %s13468_s9, 4  ;;  %s14356_s17 = int_to_ptr.vmem [resolvable:$true] %s10810_s17 }
 0x2ae   : > { %11885 = vmatprep.mubr.msk.f32.mxu0 %vm12536_vm2, %v12535_v55  ;;  %11895 = vmatprep.subr.mxu0 %v12535_v55  ;;  %v6018_v49 = vsub.f32 %v13781_v26, %v13809_v48  ;;  %v897_v33 = vmul.f32 %v13593_v32, %v896_v3  ;;  %v898_v57 = vmul.f32 %v13605_v43, %v896_v3  ;;  %s12452_s24 = scalar_lea.vmem %s14356_s17, 1024  ;;  %p12459_p1 = scmp.lt.s32.totalorder %s14356_s17, %s12457_s15 }
 0x2af   : > { %11875 = vmatpush3.msra.mxu1 %v13617_v56  ;;  %11886 = vmatmul.mubr.f32.vlgmr.msra.gmra.mxu0 %v13308_v60  ;;  %v13764_v60 = vand.u32 4294901760, %v11044_v16  ;;  %v888_v42 = vadd.f32 %v886_v53, %v849_v18  ;;  %p12453_p11 = scmp.ne.s32.totalorder %s14356_s17, %s12452_s24  ;;  %p12460_p2 = scmp.lt.s32.totalorder %s12458_s16, %s12452_s24 }
 0x2b0   : > { %11896 = vmatpush3.msra.mxu0 %v13629_v47  ;;  %11876 = vmatprep.subr.mxu1 %v12535_v55  ;;  %v923_v47 = vmul.f32 %v13608_v44, %v922_v30  ;;  %v6019_v30 = vand.u32 4294901760, %v6018_v49 }
 0x2b1   : > { %11897 = vmatprep.subr.mxu0 %v12535_v55  ;;  %11877 = vmatpush3.msra.mxu1 %v13631_v63  ;;  %p12454_p13 = pnand %p12453_p11, %p14431_p12  ;;  %p12461_p3 = por %p12460_p2, %p12459_p1 }
 0x2b2   : > { %11878 = vmatprep.mubr.msk.f32.mxu1 %vm12536_vm2, %v12535_v55  ;;  %11898 = vmatpush3.msra.mxu0 %v13642_v41  ;;  %v783_v41 = vmul.f32 %v13555_v29, %v781_v14  ;;  %v925_v6 = vadd.f32 %v923_v47, %v887_v5  ;;  %v13800_v29 = vand.u32 4294901760, %v13767_v36  ;;  %v934_v14 = vstv %s13817_s1 }
 0x2b3   : > { %11879 = vmatmul.mubr.f32.vlgmr.msra.gmra.mxu1 %v13253_v46  ;;  %11888 = vmatprep.subr.mxu1 %v12535_v55  ;;  %v13794_v46 = vsub.f32 %v11044_v16, %v13764_v60  ;;  %v13873_v5 = vand.u32 4294901760, %v5890_v59  ;;  %p12455_p0 = pneg %p12454_p13 }
 0x2b4   : > { %11899 = vmatprep.mubr.msk.f32.mxu0 %vm12536_vm2, %v12535_v55  ;;  %11909 = vmatprep.subr.mxu0 %v12535_v55  ;;  %v785_v8 = vadd.f32 %v783_v41, %v746_v38  ;;  %v5969_v13 = vsub.f32 %v13767_v36, %v13800_v29  ;;  %v974_v38 = vmul.f32 %v13669_v15, %v972_v45 }
 0x2b5   : > { %11889 = vmatpush3.msra.mxu1 %v13675_v0  ;;  %11900 = vmatmul.mubr.f32.vlgmr.msra.gmra.mxu0 %v13283_v12  ;;  %v962_v0 = vmul.f32 %v13669_v15, %v960_v51  ;;  %v926_v12 = vadd.f32 %v924_v31, %v888_v42  ;;  %v935_v31 = vmul.f32 %v13608_v44, %v934_v14  ;;  %p12462_p6 = pnand %p12461_p3, %p12455_p0 }
 0x2b6   : > { %11910 = vmatpush3.msra.mxu0 %v13646_v19  ;;  %11890 = vmatprep.subr.mxu1 %v12535_v55  ;;  %v820_v19 = vmul.f32 %v13558_v39, %v819_v61  ;;  %v963_v39 = vadd.f32 %v961_v25, %v925_v6  ;;  %v823_v52 = vadd.f32 %v821_v4, %v785_v8  ;;  %v13850_v37 = vand.u32 4294901760, %v5969_v13  ;;  %v11047_v8 = vld [vmem:[%s14410_s4 + $0x48] sm:$0xff] }
 0x2b7   : > { %11911 = vmatprep.subr.mxu0 %v12535_v55  ;;  %11891 = vmatpush3.msra.mxu1 %v13687_v34  ;;  %v13822_v34 = vand.u32 4294901760, %v13794_v46  ;;  %v964_v9 = vadd.f32 %v962_v0, %v926_v12  ;;  %v936_v42 = vmul.f32 %v13622_v22, %v934_v14  ;;  %v13894_v41 = vsub.f32 %v5890_v59, %v13873_v5 }
 0x2b8   : > { %11892 = vmatprep.mubr.msk.f32.mxu1 %vm12536_vm2, %v12535_v55  ;;  %11912 = vmatpush3.msra.mxu0 %v13662_v7  ;;  %v5979_v7 = vsub.f32 %v13774_v11, %v13803_v1  ;;  %v822_v23 = vadd.f32 %v820_v19, %v784_v40  ;;  %v6402_v16 = vsel %vm496_vm1, %v963_v39, 0  ;;  %v861_v2 = vadd.f32 %v859_v54, %v823_v52 }
 0x2b9   : > { %11893 = vmatmul.mubr.f32.vlgmr.msra.gmra.mxu1 %v13271_v28  ;;  %11902 = vmatprep.subr.mxu1 %v12535_v55  ;;  %v6025_v21 = vsub.f32 %v13794_v46, %v13822_v34  ;;  %v13866_v58 = vand.u32 4294901760, %v6402_v16  ;;  %v13915_v25 = vand.u32 4294901760, %v13894_v41  ;;  %v13962_v49 = vand.u32 4294901760, %v11047_v8 }
 0x2ba   : > { %11903 = vmatpush3.msra.mxu1 %v13617_v56  ;;  %11906 = vmatprep.mubr.msk.f32.mxu1 %vm12536_vm2, %v12535_v55  ;;  %v13858_v53 = vand.u32 4294901760, %v5979_v7  ;;  %v860_v18 = vadd.f32 %v858_v27, %v822_v23  ;;  %v900_v20 = vadd.f32 %v898_v57, %v861_v2 }
 0x2bb   : > { %11904 = vmatprep.subr.mxu1 %v12535_v55  ;;  %11913 = vmatprep.mubr.msk.f32.mxu0 %vm12536_vm2, %v12535_v55  ;;  %v6026_v32 = vand.u32 4294901760, %v6025_v21  ;;  %v13885_v51 = vsub.f32 %v6402_v16, %v13866_v58  ;;  %v6526_v40 = vsub.f32 %v13894_v41, %v13915_v25  ;;  %v7034_v3 = vsub.f32 %v11047_v8, %v13962_v49 }
 0x2bc   : > { %11905 = vmatpush3.msra.mxu1 %v13631_v63  ;;  %11914 = vmatmul.mubr.f32.vlgmr.msra.gmra.mxu0 %v13271_v28  ;;  %v899_v47 = vadd.f32 %v897_v33, %v860_v18  ;;  %v938_v6 = vadd.f32 %v936_v42, %v900_v20 }
 0x2bd   : > { %11907 = vmatmul.mubr.f32.vlgmr.msra.gmra.mxu1 %v13291_v17  ;;  %11916 = vmatprep.subr.mxu1 %v12535_v55  ;;  %v6405_v17 = vsel %vm496_vm1, %v964_v9, 0  ;;  %v13906_v61 = vand.u32 4294901760, %v13885_v51  ;;  %v6527_v13 = vand.u32 4294901760, %v6526_v40  ;;  %v7035_v59 = vand.u32 4294901760, %v7034_v3 }
 0x2be   : > { %11923 = vmatprep.subr.mxu0 %v13753_v62  ;;  %11917 = vmatpush3.msra.mxu1 %v13617_v56  ;;  %v5889_v56 = vld [vmem:[%s14410_s4] sm:$0xff]  ;;  %v937_v22 = vadd.f32 %v935_v31, %v899_v47  ;;  %v976_v12 = vadd.f32 %v974_v38, %v938_v6 }
 0x2bf   : > { %11924 = vmatpush3.msra.mxu0 %v13753_v62  ;;  %11918 = vmatprep.subr.mxu1 %v12535_v55  ;;  %v13880_v43 = vand.u32 4294901760, %v5889_v56  ;;  %v6477_v0 = vsub.f32 %v13885_v51, %v13906_v61  ;;  %v7036_v33 = vsub.f32 %v7034_v3, %v7035_v59 }
 0x2c0   : > { %11925 = vmatprep.subr.mxu0 %v13764_v60  ;;  %11919 = vmatpush3.msra.mxu1 %v13631_v63  ;;  %v13875_v63 = vand.u32 4294901760, %v6405_v17 }
 0x2c1   : > { %11920 = vmatprep.mubr.msk.f32.mxu1 %vm12536_vm2, %v12535_v55  ;;  %11926 = vmatpush3.msra.mxu0 %v13764_v60  ;;  %v13900_v44 = vsub.f32 %v5889_v56, %v13880_v43  ;;  %v13943_v35 = vand.u32 4294901760, %v6477_v0  ;;  %v7037_v2 = vand.u32 4294901760, %v7036_v33 }
 0x2c2   : > { %11927 = vmatprep.mubr.f32.mxu0 %v13850_v37  ;;  %11921 = vmatmul.mubr.f32.vlgmr.msra.gmra.mxu1 %v13271_v28  ;;  %v13891_v28 = vsub.f32 %v6405_v17, %v13875_v63 }
 0x2c3   : > { %11928 = vmatmul.mubr.f32.vlgmr.msra.gmra.mxu0 %v13858_v53  ;;  %11930 = vmatprep.subr.mxu1 %v6019_v30 }
 0x2c4   : > { %11937 = vmatprep.subr.mxu0 %v13781_v26  ;;  %11931 = vmatpush3.msra.mxu1 %v6019_v30 }
 0x2c5   : > { %11938 = vmatpush3.msra.mxu0 %v13781_v26  ;;  %11932 = vmatprep.subr.mxu1 %v6026_v32  ;;  %v973_v26 = vmul.f32 %v13625_v24, %v972_v45  ;;  %v13922_v24 = vand.u32 4294901760, %v13900_v44 }
 0x2c6   : > { %11939 = vmatprep.subr.mxu0 %v13794_v46  ;;  %11933 = vmatpush3.msra.mxu1 %v6026_v32 }
 0x2c7   : > { %11934 = vmatprep.mubr.f32.mxu1 %v13738_v50  ;;  %11940 = vmatpush3.msra.mxu0 %v13794_v46  ;;  %v13912_v46 = vand.u32 4294901760, %v13891_v28  ;;  %v975_v15 = vadd.f32 %v973_v26, %v937_v22  ;;  %v6533_v19 = vsub.f32 %v13900_v44, %v13922_v24 }
 0x2c8   : > { %11941 = vmatprep.mubr.f32.mxu0 %v13767_v36  ;;  %11935 = vmatmul.mubr.f32.vlgmr.msra.gmra.mxu1 %v13747_v10 }
 0x2c9   : > { %11942 = vmatmul.mubr.f32.vlgmr.msra.gmra.mxu0 %v13774_v11  ;;  %11944 = vmatprep.subr.mxu1 %v13753_v62  ;;  %v6912_v4 = vsel %vm496_vm1, %v975_v15, 0  ;;  %v6534_v9 = vand.u32 4294901760, %v6533_v19 }
 0x2ca   : > { %11951 = vmatprep.subr.mxu0 %v13809_v48  ;;  %11945 = vmatpush3.msra.mxu1 %v13753_v62  ;;  %v13958_v7 = vand.u32 4294901760, %v6912_v4 }
 0x2cb   : > { %11952 = vmatpush3.msra.mxu0 %v13809_v48  ;;  %11946 = vmatprep.subr.mxu1 %v13764_v60  ;;  %v6487_v48 = vsub.f32 %v13891_v28, %v13912_v46 }
 0x2cc   : > { %11953 = vmatprep.subr.mxu0 %v13822_v34  ;;  %11947 = vmatpush3.msra.mxu1 %v13764_v60  ;;  %v13973_v27 = vsub.f32 %v6912_v4, %v13958_v7 }
 0x2cd   : > { %11948 = vmatprep.mubr.f32.mxu1 %v13800_v29  ;;  %11954 = vmatpush3.msra.mxu0 %v13822_v34  ;;  %v6915_v34 = vsel %vm496_vm1, %v976_v12, 0  ;;  %v13951_v39 = vand.u32 4294901760, %v6487_v48 }
 0x2ce   : > { %11955 = vmatprep.mubr.f32.mxu0 %v13738_v50  ;;  %11949 = vmatmul.mubr.f32.vlgmr.msra.gmra.mxu1 %v13803_v1  ;;  %v13964_v23 = vand.u32 4294901760, %v6915_v34  ;;  %v13987_v21 = vand.u32 4294901760, %v13973_v27 }
 0x2cf   : > { %11956 = vmatmul.mubr.f32.vlgmr.msra.gmra.mxu0 %v13747_v10  ;;  %11958 = vmatprep.subr.mxu1 %v13753_v62 }
 0x2d0   : > { %11965 = vmatprep.subr.mxu0 %v13873_v5  ;;  %11959 = vmatpush3.msra.mxu1 %v13753_v62  ;;  %v11046_v62 = vld [vmem:[%s14410_s4 + $0x40] sm:$0xff]  ;;  %v13977_v54 = vsub.f32 %v6915_v34, %v13964_v23  ;;  %v6987_v30 = vsub.f32 %v13973_v27, %v13987_v21 }
 0x2d1   : > { %11966 = vmatpush3.msra.mxu0 %v13873_v5  ;;  %11960 = vmatprep.subr.mxu1 %v13764_v60 }
 0x2d2   : > { %11967 = vmatprep.subr.mxu0 %v13880_v43  ;;  %11961 = vmatpush3.msra.mxu1 %v13764_v60  ;;  %v13969_v60 = vand.u32 4294901760, %v11046_v62  ;;  %v13992_v16 = vand.u32 4294901760, %v13977_v54  ;;  %v14012_v57 = vand.u32 4294901760, %v6987_v30 }
 0x2d3   : > { %11962 = vmatprep.mubr.f32.mxu1 %v13738_v50  ;;  %11968 = vmatpush3.msra.mxu0 %v13880_v43 }
 0x2d4   : > { %11969 = vmatprep.mubr.f32.mxu0 %v13943_v35  ;;  %11963 = vmatmul.mubr.f32.vlgmr.msra.gmra.mxu1 %v13747_v10  ;;  %v7041_v52 = vsub.f32 %v11046_v62, %v13969_v60  ;;  %v6997_v18 = vsub.f32 %v13977_v54, %v13992_v16 }
 0x2d5   : > { %11970 = vmatmul.mubr.f32.vlgmr.msra.gmra.mxu0 %v13951_v39  ;;  %11972 = vmatprep.subr.mxu1 %v6527_v13 }
 0x2d6   : > { %11979 = vmatprep.subr.mxu0 %v13894_v41  ;;  %11973 = vmatpush3.msra.mxu1 %v6527_v13  ;;  %v7042_v17 = vand.u32 4294901760, %v7041_v52  ;;  %v14016_v14 = vand.u32 4294901760, %v6997_v18 }
 0x2d7   : > { %11980 = vmatpush3.msra.mxu0 %v13894_v41  ;;  %11974 = vmatprep.subr.mxu1 %v6534_v9 }
 0x2d8   : > { %11981 = vmatprep.subr.mxu0 %v13900_v44  ;;  %11975 = vmatpush3.msra.mxu1 %v6534_v9  ;;  %v7043_v56 = vsub.f32 %v7041_v52, %v7042_v17 }
 0x2d9   : > { %11976 = vmatprep.mubr.f32.mxu1 %v13866_v58  ;;  %11982 = vmatpush3.msra.mxu0 %v13900_v44 }
 0x2da   : > { %11983 = vmatprep.mubr.f32.mxu0 %v13885_v51  ;;  %11977 = vmatmul.mubr.f32.vlgmr.msra.gmra.mxu1 %v13875_v63  ;;  %v7044_v32 = vand.u32 4294901760, %v7043_v56 }
 0x2db   : > { %11984 = vmatmul.mubr.f32.vlgmr.msra.gmra.mxu0 %v13891_v28  ;;  %11986 = vmatprep.subr.mxu1 %v13873_v5 }
 0x2dc   : > { %11993 = vmatprep.subr.mxu0 %v13915_v25  ;;  %11987 = vmatpush3.msra.mxu1 %v13873_v5 }
 0x2dd   : > { %11994 = vmatpush3.msra.mxu0 %v13915_v25  ;;  %11988 = vmatprep.subr.mxu1 %v13880_v43 }
 0x2de   : > { %11995 = vmatprep.subr.mxu0 %v13922_v24  ;;  %11989 = vmatpush3.msra.mxu1 %v13880_v43 }
 0x2df   : > { %11990 = vmatprep.mubr.f32.mxu1 %v13906_v61  ;;  %11996 = vmatpush3.msra.mxu0 %v13922_v24 }
 0x2e0   : > { %11997 = vmatprep.mubr.f32.mxu0 %v13866_v58  ;;  %11991 = vmatmul.mubr.f32.vlgmr.msra.gmra.mxu1 %v13912_v46 }
 0x2e1   : > { %11998 = vmatmul.mubr.f32.vlgmr.msra.gmra.mxu0 %v13875_v63  ;;  %12000 = vmatprep.subr.mxu1 %v13873_v5 }
 0x2e2   : > { %12007 = vmatprep.subr.mxu0 %v13962_v49  ;;  %12001 = vmatpush3.msra.mxu1 %v13873_v5 }
 0x2e3   : > { %12008 = vmatpush3.msra.mxu0 %v13962_v49  ;;  %12002 = vmatprep.subr.mxu1 %v13880_v43 }
 0x2e4   : > { %12009 = vmatprep.subr.mxu0 %v13969_v60  ;;  %12003 = vmatpush3.msra.mxu1 %v13880_v43 }
 0x2e5   : > { %12004 = vmatprep.mubr.f32.mxu1 %v13866_v58  ;;  %12010 = vmatpush3.msra.mxu0 %v13969_v60 }
 0x2e6   : > { %12011 = vmatprep.mubr.f32.mxu0 %v14012_v57  ;;  %12005 = vmatmul.mubr.f32.vlgmr.msra.gmra.mxu1 %v13875_v63 }
 0x2e7   : > { %12012 = vmatmul.mubr.f32.vlgmr.msra.gmra.mxu0 %v14016_v14  ;;  %12014 = vmatprep.subr.mxu1 %v7037_v2 }
 0x2e8   : > { %12021 = vmatprep.subr.mxu0 %v7034_v3  ;;  %12015 = vmatpush3.msra.mxu1 %v7037_v2 }
 0x2e9   : > { %12022 = vmatpush3.msra.mxu0 %v7034_v3  ;;  %12016 = vmatprep.subr.mxu1 %v7044_v32 }
 0x2ea   : > { %12023 = vmatprep.subr.mxu0 %v7041_v52  ;;  %12017 = vmatpush3.msra.mxu1 %v7044_v32 }
 0x2eb   : > { %12018 = vmatprep.mubr.f32.mxu1 %v13958_v7  ;;  %12024 = vmatpush3.msra.mxu0 %v7041_v52 }
 0x2ec   : > { %12025 = vmatprep.mubr.f32.mxu0 %v13973_v27  ;;  %12019 = vmatmul.mubr.f32.vlgmr.msra.gmra.mxu1 %v13964_v23 }
 0x2ed   : > { %12026 = vmatmul.mubr.f32.vlgmr.msra.gmra.mxu0 %v13977_v54  ;;  %12028 = vmatprep.subr.mxu1 %v13962_v49 }
 0x2ee   : > { %12035 = vmatprep.subr.mxu0 %v7035_v59  ;;  %12029 = vmatpush3.msra.mxu1 %v13962_v49 }
 0x2ef   : > { %12036 = vmatpush3.msra.mxu0 %v7035_v59  ;;  %12030 = vmatprep.subr.mxu1 %v13969_v60 }
 0x2f0   : > { %12037 = vmatprep.subr.mxu0 %v7042_v17  ;;  %12031 = vmatpush3.msra.mxu1 %v13969_v60 }
 0x2f1   : > { %12032 = vmatprep.mubr.f32.mxu1 %v13987_v21  ;;  %12038 = vmatpush3.msra.mxu0 %v7042_v17 }
 0x2f2   : > { %12039 = vmatprep.mubr.f32.mxu0 %v13958_v7  ;;  %12033 = vmatmul.mubr.f32.vlgmr.msra.gmra.mxu1 %v13992_v16 }
 0x2f3   : > { %12040 = vmatmul.mubr.f32.vlgmr.msra.gmra.mxu0 %v13964_v23  ;;  %12042 = vmatprep.subr.mxu1 %v13962_v49 }
 0x2f4   : > { %12043 = vmatpush3.msra.mxu1 %v13962_v49  ;;  %12046 = vmatprep.mubr.f32.mxu1 %v13958_v7 }
 0x2f5   : > { %12044 = vmatprep.subr.mxu1 %v13969_v60  ;;  %12049 = vmatprep.subr.mxu0 %v12535_v55 }
 0x2f6   : > { %12045 = vmatpush3.msra.mxu1 %v13969_v60  ;;  %12053 = vmatprep.mubr.msk.f32.mxu0 %vm12536_vm2, %v12535_v55 }
 0x2f7   : > { %12047 = vmatmul.mubr.f32.vlgmr.msra.gmra.mxu1 %v13964_v23  ;;  %12056 = vmatprep.subr.mxu1 %v12535_v55 }
 0x2f8   : > { %12060 = vmatprep.mubr.msk.f32.mxu1 %vm12536_vm2, %v12535_v55 }
 0x35f   : > { %v5036_v5 = vpop.f32.mrf.mxu0 }
 0x361   : > { %v11845_v43 = vpop.f32.mrf.mxu0 }
 0x363   : > { %v5193_v47 = vpop.f32.mrf.mxu0 }
 0x365   : > { %v11859_v31 = vpop.f32.mrf.mxu0 }
 0x367   : > { %v5117_v42 = vpop.f32.mrf.mxu1 }
 0x368   : > { %v5118_v45 = vadd.f32 %v5117_v42, %v5036_v5 }
 0x369   : > { %v11852_v20 = vpop.f32.mrf.mxu1  ;;  %v5345_v41 = vpop.f32.mrf.mxu0 }
 0x36a   : > { %v5194_v44 = vadd.f32 %v5193_v47, %v5118_v45 }
 0x36b   : > { %v11873_v22 = vpop.f32.mrf.mxu0 }
 0x36d   : > { %v5268_v26 = vpop.f32.mrf.mxu1 }
 0x36e   : > { %v5269_v38 = vadd.f32 %v5268_v26, %v5194_v44 }
 0x36f   : > { %v11866_v6 = vpop.f32.mrf.mxu1  ;;  %v5501_v25 = vpop.f32.mrf.mxu0 }
 0x370   : > { %v5346_v24 = vadd.f32 %v5345_v41, %v5269_v38 }
 0x371   : > { %v11887_v15 = vpop.f32.mrf.mxu0 }
 0x373   : > { %v5418_v0 = vpop.f32.mrf.mxu1 }
 0x374   : > { %v5419_v12 = vadd.f32 %v5418_v0, %v5346_v24 }
 0x375   : > { %v11880_v48 = vpop.f32.mrf.mxu1  ;;  %v5658_v40 = vpop.f32.mrf.mxu0 }
 0x376   : > { %11041 = vst.msk [vmem:[%s13468_s9 + $0x8] sm:$0xff] %vm2974_vm3, %v5419_v12 }
 0x377   : > { %v11901_v19 = vpop.f32.mrf.mxu0 }
 0x379   : > { %v5582_v4 = vpop.f32.mrf.mxu1 }
 0x37a   : > { %v5583_v8 = vadd.f32 %v5582_v4, %v5501_v25 }
 0x37b   : > { %v11894_v34 = vpop.f32.mrf.mxu1 }
 0x37c   : > { %v5659_v13 = vadd.f32 %v5658_v40, %v5583_v8  ;;  %v5810_v62 = vpop.f32.mrf.mxu0 }
 0x37d   : > { %v5733_v9 = vpop.f32.mrf.mxu1 }
 0x37e   : > { %v5734_v49 = vadd.f32 %v5733_v9, %v5659_v13  ;;  %v11915_v60 = vpop.f32.mrf.mxu0 }
 0x37f   : > { %v11908_v3 = vpop.f32.mrf.mxu1 }
 0x380   : > { %v5811_v52 = vadd.f32 %v5810_v62, %v5734_v49 }
 0x382   : > { %v5883_v59 = vpop.f32.mrf.mxu1 }
 0x383   : > { %v5884_v17 = vadd.f32 %v5883_v59, %v5811_v52  ;;  %v11929_v30 = vpop.f32.mrf.mxu0  ;;  %v7421_v59 = vld [vmem:[%s14409_s3] sm:$0xff] }
 0x384   : > { %v11922_v18 = vpop.f32.mrf.mxu1 }
 0x385   : > { %11043 = vst.msk [vmem:[%s13468_s9 + $0x18] sm:$0xff] %vm2974_vm3, %v5884_v17  ;;  %v5972_v33 = vpop.f32.mrf.mxu0 }
 0x388   : > { %v11936_v56 = vpop.f32.mrf.mxu1 }
 0x389   : > { %v11943_v2 = vpop.f32.mrf.mxu0  ;;  %v6070_v31 = vadd.f32 %v11936_v56, %v11929_v30  ;;  %v7423_v56 = vsel %vm496_vm1, %v7421_v59, 0 }
 0x38a   : > { %v6063_v32 = vpop.f32.mrf.mxu1 }
 0x38b   : > { %v6145_v5 = vpop.f32.mrf.mxu0  ;;  %v6064_v20 = vadd.f32 %v6063_v32, %v5972_v33  ;;  %v6153_v41 = vadd.f32 %v11943_v2, %v6070_v31 }
 0x38d   : > { %v6146_v26 = vadd.f32 %v6145_v5, %v6064_v20 }
 0x38e   : > { %v11950_v43 = vpop.f32.mrf.mxu1 }
 0x38f   : > { %v11957_v47 = vpop.f32.mrf.mxu0  ;;  %v6236_v25 = vadd.f32 %v11950_v43, %v6153_v41 }
 0x390   : > { %v6227_v42 = vpop.f32.mrf.mxu1 }
 0x391   : > { %v6312_v45 = vpop.f32.mrf.mxu0  ;;  %v6228_v24 = vadd.f32 %v6227_v42, %v6146_v26  ;;  %v6319_v12 = vadd.f32 %v11957_v47, %v6236_v25  ;;  %v14057_v47 = vand.u32 4294901760, %v7423_v56 }
 0x393   : > { %v6313_v19 = vadd.f32 %v6312_v45, %v6228_v24  ;;  %v14060_v26 = vsub.f32 %v7423_v56, %v14057_v47 }
 0x394   : > { %v11964_v44 = vpop.f32.mrf.mxu1 }
 0x395   : > { %v11971_v22 = vpop.f32.mrf.mxu0  ;;  %v6398_v4 = vadd.f32 %v11964_v44, %v6319_v12 }
 0x396   : > { %v6391_v38 = vpop.f32.mrf.mxu1 }
 0x397   : > { %v6480_v6 = vpop.f32.mrf.mxu0  ;;  %v6392_v13 = vadd.f32 %v6391_v38, %v6313_v19  ;;  %v6491_v49 = vadd.f32 %v11971_v22, %v6398_v4  ;;  %v14063_v19 = vand.u32 4294901760, %v14060_v26 }
 0x399   : > { %v6481_v60 = vadd.f32 %v6480_v6, %v6392_v13 }
 0x39a   : > { %v11978_v15 = vpop.f32.mrf.mxu1 }
 0x39b   : > { %v11985_v0 = vpop.f32.mrf.mxu0  ;;  %v6578_v17 = vadd.f32 %v11978_v15, %v6491_v49 }
 0x39c   : > { %v6571_v48 = vpop.f32.mrf.mxu1 }
 0x39d   : > { %v6653_v40 = vpop.f32.mrf.mxu0  ;;  %v6572_v33 = vadd.f32 %v6571_v48, %v6481_v60  ;;  %v6661_v2 = vadd.f32 %v11985_v0, %v6578_v17 }
 0x39f   : > { %v6654_v31 = vadd.f32 %v6653_v40, %v6572_v33 }
 0x3a0   : > { %v11992_v8 = vpop.f32.mrf.mxu1 }
 0x3a1   : > { %v11999_v34 = vpop.f32.mrf.mxu0  ;;  %v6744_v44 = vadd.f32 %v11992_v8, %v6661_v2  ;;  %v11049_v8 = vld [vmem:[%s14409_s3 + $0x8] sm:$0xff] }
 0x3a2   : > { %v6735_v62 = vpop.f32.mrf.mxu1  ;;  %v7888_v33 = vsel %vm496_vm1, %v11049_v8, 0  ;;  %v11052_v8 = vld [vmem:[%s14410_s4 + $0x18] sm:$0xff] }
 0x3a3   : > { %v6820_v9 = vpop.f32.mrf.mxu0  ;;  %v6736_v38 = vadd.f32 %v6735_v62, %v6654_v31  ;;  %v6827_v15 = vadd.f32 %v11999_v34, %v6744_v44  ;;  %v7495_v34 = vsub.f32 %v14060_v26, %v14063_v19 }
 0x3a5   : > { %v6821_v40 = vadd.f32 %v6820_v9, %v6736_v38  ;;  %v14073_v2 = vand.u32 4294901760, %v7495_v34  ;;  %v14178_v34 = vand.u32 4294901760, %v11052_v8 }
 0x3a6   : > { %v12006_v3 = vpop.f32.mrf.mxu1 }
 0x3a7   : > { %v12013_v52 = vpop.f32.mrf.mxu0  ;;  %v6906_v60 = vadd.f32 %v12006_v3, %v6827_v15 }
 0x3a8   : > { %v6899_v30 = vpop.f32.mrf.mxu1 }
 0x3a9   : > { %v6990_v18 = vpop.f32.mrf.mxu0  ;;  %v6900_v59 = vadd.f32 %v6899_v30, %v6821_v40 }
 0x3ac   : > { %v12020_v32 = vpop.f32.mrf.mxu1 }
 0x3ad   : > { %v7088_v5 = vadd.f32 %v12020_v32, %v12013_v52  ;;  %v12027_v43 = vpop.f32.mrf.mxu0  ;;  %v14075_v32 = vand.u32 4294901760, %v7888_v33 }
 0x3ae   : > { %v7081_v42 = vpop.f32.mrf.mxu1 }
 0x3af   : > { %v7171_v45 = vadd.f32 %v12027_v43, %v7088_v5  ;;  %v7082_v20 = vadd.f32 %v7081_v42, %v6990_v18  ;;  %v7163_v41 = vpop.f32.mrf.mxu0  ;;  %v14087_v31 = vsub.f32 %v7888_v33, %v14075_v32  ;;  %v11056_v33 = vld [vmem:[%s14410_s4 + $0x58] sm:$0xff] }
 0x3b1   : > { %v7164_v22 = vadd.f32 %v7163_v41, %v7082_v20  ;;  %v14095_v44 = vand.u32 4294901760, %v14087_v31 }
 0x3b2   : > { %v12034_v6 = vpop.f32.mrf.mxu1 }
 0x3b3   : > { %v7254_v25 = vadd.f32 %v12034_v6, %v7171_v45  ;;  %v12041_v24 = vpop.f32.mrf.mxu0  ;;  %v7960_v38 = vsub.f32 %v14087_v31, %v14095_v44 }
 0x3b4   : > { %v7245_v0 = vpop.f32.mrf.mxu1 }
 0x3b5   : > { %v7337_v12 = vadd.f32 %v12041_v24, %v7254_v25  ;;  %v7246_v48 = vadd.f32 %v7245_v0, %v7164_v22  ;;  %v7330_v4 = vpop.f32.mrf.mxu0  ;;  %v14112_v6 = vand.u32 4294901760, %v7960_v38  ;;  %v11054_v25 = vld [vmem:[%s14410_s4 + $0x38] sm:$0xff]  ;;  %v11053_v24 = vld [vmem:[%s14410_s4 + $0x30] sm:$0xff] }
 0x3b6   : > { %v14130_v15 = vand.u32 4294901760, %v11054_v25  ;;  %v14135_v0 = vand.u32 4294901760, %v11053_v24 }
 0x3b7   : > { %v7331_v13 = vadd.f32 %v7330_v4, %v7246_v48  ;;  %v12048_v49 = vpop.f32.mrf.mxu1 }
 0x3b8   : > { %v7416_v62 = vadd.f32 %v12048_v49, %v7337_v12  ;;  %v8472_v12 = vsub.f32 %v11054_v25, %v14130_v15  ;;  %v8479_v48 = vsub.f32 %v11053_v24, %v14135_v0 }
 0x3b9   : > { %v7409_v52 = vpop.f32.mrf.mxu1 }
 0x3ba   : > { %v7420_v17 = vadd.f32 %v7416_v62, %v6906_v60  ;;  %v7410_v18 = vadd.f32 %v7409_v52, %v7331_v13  ;;  %v8473_v40 = vand.u32 4294901760, %v8472_v12  ;;  %v8480_v4 = vand.u32 4294901760, %v8479_v48  ;;  %v11051_v62 = vld [vmem:[%s14410_s4 + $0x10] sm:$0xff] }
 0x3bc   : > { %v14071_v56 = vand.u32 4294901760, %v7420_v17  ;;  %v7419_v9 = vadd.f32 %v7410_v18, %v6900_v59  ;;  %v8474_v13 = vsub.f32 %v8472_v12, %v8473_v40  ;;  %v8481_v49 = vsub.f32 %v8479_v48, %v8480_v4 }
 0x3bd   : > { %v14183_v59 = vand.u32 4294901760, %v11051_v62 }
 0x3be   : > { %v7532_v5 = vsub.f32 %v7420_v17, %v14071_v56  ;;  %v14078_v3 = vand.u32 4294901760, %v7419_v9  ;;  %12050 = vmatpush3.msra.mxu0 %v14071_v56  ;;  %v8475_v60 = vand.u32 4294901760, %v8474_v13  ;;  %v8482_v52 = vand.u32 4294901760, %v8481_v49 }
 0x3bf   : > { %12051 = vmatprep.subr.mxu0 %v12535_v55  ;;  %v8974_v17 = vsub.f32 %v11052_v8, %v14178_v34 }
 0x3c0   : > { %v7539_v30 = vsub.f32 %v7419_v9, %v14078_v3  ;;  %12052 = vmatpush3.msra.mxu0 %v14078_v3  ;;  %v7533_v43 = vand.u32 4294901760, %v7532_v5  ;;  %v14214_v9 = vand.u32 4294901760, %v11056_v33 }
 0x3c1   : > { %12063 = vmatprep.subr.mxu0 %v12535_v55  ;;  %12054 = vmatmul.mubr.f32.vlgmr.msra.gmra.mxu0 %v14073_v2 }
 0x3c2   : > { %12064 = vmatpush3.msra.mxu0 %v7532_v5  ;;  %12067 = vmatprep.mubr.msk.f32.mxu0 %vm12536_vm2, %v12535_v55  ;;  %v7534_v42 = vsub.f32 %v7532_v5, %v7533_v43  ;;  %v7540_v45 = vand.u32 4294901760, %v7539_v30 }
 0x3c3   : > { %12065 = vmatprep.subr.mxu0 %v12535_v55 }
 0x3c4   : > { %12066 = vmatpush3.msra.mxu0 %v7539_v30  ;;  %v7535_v20 = vand.u32 4294901760, %v7534_v42  ;;  %v7541_v41 = vsub.f32 %v7539_v30, %v7540_v45 }
 0x3c5   : > { %12077 = vmatprep.subr.mxu0 %v12535_v55  ;;  %12068 = vmatmul.mubr.f32.vlgmr.msra.gmra.mxu0 %v14060_v26 }
 0x3c6   : > { %12057 = vmatpush3.msra.mxu1 %v7535_v20  ;;  %12078 = vmatpush3.msra.mxu0 %v7533_v43  ;;  %v7542_v22 = vand.u32 4294901760, %v7541_v41 }
 0x3c7   : > { %12058 = vmatprep.subr.mxu1 %v12535_v55  ;;  %12079 = vmatprep.subr.mxu0 %v12535_v55 }
 0x3c8   : > { %12059 = vmatpush3.msra.mxu1 %v7542_v22  ;;  %12080 = vmatpush3.msra.mxu0 %v7540_v45 }
 0x3c9   : > { %12061 = vmatmul.mubr.f32.vlgmr.msra.gmra.mxu1 %v14057_v47  ;;  %12070 = vmatprep.subr.mxu1 %v12535_v55 }
 0x3ca   : > { %12081 = vmatprep.mubr.msk.f32.mxu0 %vm12536_vm2, %v12535_v55  ;;  %12091 = vmatprep.subr.mxu0 %v12535_v55 }
 0x3cb   : > { %12071 = vmatpush3.msra.mxu1 %v14071_v56  ;;  %12082 = vmatmul.mubr.f32.vlgmr.msra.gmra.mxu0 %v14057_v47 }
 0x3cc   : > { %12092 = vmatpush3.msra.mxu0 %v14071_v56  ;;  %12072 = vmatprep.subr.mxu1 %v12535_v55 }
 0x3cd   : > { %12093 = vmatprep.subr.mxu0 %v12535_v55  ;;  %12073 = vmatpush3.msra.mxu1 %v14078_v3 }
 0x3ce   : > { %12074 = vmatprep.mubr.msk.f32.mxu1 %vm12536_vm2, %v12535_v55  ;;  %12094 = vmatpush3.msra.mxu0 %v14078_v3 }
 0x3cf   : > { %12075 = vmatmul.mubr.f32.vlgmr.msra.gmra.mxu1 %v14063_v19  ;;  %12084 = vmatprep.subr.mxu1 %v12535_v55 }
 0x3d0   : > { %12095 = vmatprep.mubr.msk.f32.mxu0 %vm12536_vm2, %v12535_v55  ;;  %12105 = vmatprep.subr.mxu0 %v12535_v55 }
 0x3d1   : > { %12085 = vmatpush3.msra.mxu1 %v14071_v56  ;;  %12096 = vmatmul.mubr.f32.vlgmr.msra.gmra.mxu0 %v14112_v6 }
 0x3d2   : > { %12106 = vmatpush3.msra.mxu0 %v7532_v5  ;;  %12086 = vmatprep.subr.mxu1 %v12535_v55 }
 0x3d3   : > { %12107 = vmatprep.subr.mxu0 %v12535_v55  ;;  %12087 = vmatpush3.msra.mxu1 %v14078_v3 }
 0x3d4   : > { %12088 = vmatprep.mubr.msk.f32.mxu1 %vm12536_vm2, %v12535_v55  ;;  %12108 = vmatpush3.msra.mxu0 %v7539_v30 }
 0x3d5   : > { %12089 = vmatmul.mubr.f32.vlgmr.msra.gmra.mxu1 %v14057_v47  ;;  %12098 = vmatprep.subr.mxu1 %v12535_v55 }
 0x3d6   : > { %12109 = vmatprep.mubr.msk.f32.mxu0 %vm12536_vm2, %v12535_v55  ;;  %12119 = vmatprep.subr.mxu0 %v12535_v55 }
 0x3d7   : > { %12099 = vmatpush3.msra.mxu1 %v7535_v20  ;;  %12110 = vmatmul.mubr.f32.vlgmr.msra.gmra.mxu0 %v14087_v31 }
 0x3d8   : > { %12120 = vmatpush3.msra.mxu0 %v7533_v43  ;;  %12100 = vmatprep.subr.mxu1 %v12535_v55 }
 0x3d9   : > { %12121 = vmatprep.subr.mxu0 %v12535_v55  ;;  %12101 = vmatpush3.msra.mxu1 %v7542_v22 }
 0x3da   : > { %12102 = vmatprep.mubr.msk.f32.mxu1 %vm12536_vm2, %v12535_v55  ;;  %12122 = vmatpush3.msra.mxu0 %v7540_v45 }
 0x3db   : > { %12103 = vmatmul.mubr.f32.vlgmr.msra.gmra.mxu1 %v14075_v32  ;;  %12112 = vmatprep.subr.mxu1 %v12535_v55 }
 0x3dc   : > { %12113 = vmatpush3.msra.mxu1 %v14071_v56  ;;  %12116 = vmatprep.mubr.msk.f32.mxu1 %vm12536_vm2, %v12535_v55 }
 0x3dd   : > { %12114 = vmatprep.subr.mxu1 %v12535_v55  ;;  %12123 = vmatprep.mubr.msk.f32.mxu0 %vm12536_vm2, %v12535_v55 }
 0x3de   : > { %12115 = vmatpush3.msra.mxu1 %v14078_v3  ;;  %12124 = vmatmul.mubr.f32.vlgmr.msra.gmra.mxu0 %v14075_v32 }
 0x3df   : > { %12117 = vmatmul.mubr.f32.vlgmr.msra.gmra.mxu1 %v14095_v44  ;;  %12126 = vmatprep.subr.mxu1 %v12535_v55 }
 0x3e0   : > { %12133 = vmatprep.subr.mxu0 %v14130_v15  ;;  %12127 = vmatpush3.msra.mxu1 %v14071_v56 }
 0x3e1   : > { %12134 = vmatpush3.msra.mxu0 %v14130_v15  ;;  %12128 = vmatprep.subr.mxu1 %v12535_v55 }
 0x3e2   : > { %12135 = vmatprep.subr.mxu0 %v14135_v0  ;;  %12129 = vmatpush3.msra.mxu1 %v14078_v3 }
 0x3e3   : > { %12130 = vmatprep.mubr.msk.f32.mxu1 %vm12536_vm2, %v12535_v55  ;;  %12136 = vmatpush3.msra.mxu0 %v14135_v0 }
 0x3e4   : > { %12137 = vmatprep.mubr.f32.mxu0 %v13850_v37  ;;  %12131 = vmatmul.mubr.f32.vlgmr.msra.gmra.mxu1 %v14075_v32  ;;  %v8981_v37 = vsub.f32 %v11051_v62, %v14183_v59 }
 0x3e5   : > { %12138 = vmatmul.mubr.f32.vlgmr.msra.gmra.mxu0 %v13858_v53  ;;  %12140 = vmatprep.subr.mxu1 %v8475_v60  ;;  %v8975_v53 = vand.u32 4294901760, %v8974_v17 }
 0x3e6   : > { %12147 = vmatprep.subr.mxu0 %v8472_v12  ;;  %12141 = vmatpush3.msra.mxu1 %v8475_v60  ;;  %v8982_v18 = vand.u32 4294901760, %v8981_v37 }
 0x3e7   : > { %12148 = vmatpush3.msra.mxu0 %v8472_v12  ;;  %12142 = vmatprep.subr.mxu1 %v8482_v52 }
 0x3e8   : > { %12149 = vmatprep.subr.mxu0 %v8479_v48  ;;  %12143 = vmatpush3.msra.mxu1 %v8482_v52 }
 0x3e9   : > { %12144 = vmatprep.mubr.f32.mxu1 %v13738_v50  ;;  %12150 = vmatpush3.msra.mxu0 %v8479_v48 }
 0x3ea   : > { %12151 = vmatprep.mubr.f32.mxu0 %v13767_v36  ;;  %12145 = vmatmul.mubr.f32.vlgmr.msra.gmra.mxu1 %v13747_v10  ;;  %v8976_v36 = vsub.f32 %v8974_v17, %v8975_v53 }
 0x3eb   : > { %12152 = vmatmul.mubr.f32.vlgmr.msra.gmra.mxu0 %v13774_v11  ;;  %12154 = vmatprep.subr.mxu1 %v14130_v15  ;;  %v8983_v11 = vsub.f32 %v8981_v37, %v8982_v18 }
 0x3ec   : > { %12161 = vmatprep.subr.mxu0 %v8473_v40  ;;  %12155 = vmatpush3.msra.mxu1 %v14130_v15 }
 0x3ed   : > { %12162 = vmatpush3.msra.mxu0 %v8473_v40  ;;  %12156 = vmatprep.subr.mxu1 %v14135_v0  ;;  %v8984_v56 = vand.u32 4294901760, %v8983_v11 }
 0x3ee   : > { %12163 = vmatprep.subr.mxu0 %v8480_v4  ;;  %12157 = vmatpush3.msra.mxu1 %v14135_v0 }
 0x3ef   : > { %12158 = vmatprep.mubr.f32.mxu1 %v13800_v29  ;;  %12164 = vmatpush3.msra.mxu0 %v8480_v4  ;;  %v8977_v29 = vand.u32 4294901760, %v8976_v36 }
 0x3f0   : > { %12165 = vmatprep.mubr.f32.mxu0 %v13738_v50  ;;  %12159 = vmatmul.mubr.f32.vlgmr.msra.gmra.mxu1 %v13803_v1  ;;  %v11055_v1 = vld [vmem:[%s14410_s4 + $0x50] sm:$0xff] }
 0x3f1   : > { %12166 = vmatmul.mubr.f32.vlgmr.msra.gmra.mxu0 %v13747_v10  ;;  %12168 = vmatprep.subr.mxu1 %v14130_v15  ;;  %v14219_v5 = vand.u32 4294901760, %v11055_v1 }
 0x3f2   : > { %12175 = vmatprep.subr.mxu0 %v14178_v34  ;;  %12169 = vmatpush3.msra.mxu1 %v14130_v15 }
 0x3f3   : > { %12176 = vmatpush3.msra.mxu0 %v14178_v34  ;;  %12170 = vmatprep.subr.mxu1 %v14135_v0 }
 0x3f4   : > { %12177 = vmatprep.subr.mxu0 %v14183_v59  ;;  %12171 = vmatpush3.msra.mxu1 %v14135_v0 }
 0x3f5   : > { %12172 = vmatprep.mubr.f32.mxu1 %v13738_v50  ;;  %12178 = vmatpush3.msra.mxu0 %v14183_v59  ;;  %v9478_v50 = vsub.f32 %v11056_v33, %v14214_v9 }
 0x3f6   : > { %12179 = vmatprep.mubr.f32.mxu0 %v13943_v35  ;;  %12173 = vmatmul.mubr.f32.vlgmr.msra.gmra.mxu1 %v13747_v10  ;;  %v9485_v35 = vsub.f32 %v11055_v1, %v14219_v5 }
 0x3f7   : > { %12180 = vmatmul.mubr.f32.vlgmr.msra.gmra.mxu0 %v13951_v39  ;;  %12182 = vmatprep.subr.mxu1 %v8977_v29  ;;  %v9479_v10 = vand.u32 4294901760, %v9478_v50 }
 0x3f8   : > { %12189 = vmatprep.subr.mxu0 %v8974_v17  ;;  %12183 = vmatpush3.msra.mxu1 %v8977_v29  ;;  %v9486_v39 = vand.u32 4294901760, %v9485_v35 }
 0x3f9   : > { %12190 = vmatpush3.msra.mxu0 %v8974_v17  ;;  %12184 = vmatprep.subr.mxu1 %v8984_v56 }
 0x3fa   : > { %12191 = vmatprep.subr.mxu0 %v8981_v37  ;;  %12185 = vmatpush3.msra.mxu1 %v8984_v56 }
 0x3fb   : > { %12186 = vmatprep.mubr.f32.mxu1 %v13866_v58  ;;  %12192 = vmatpush3.msra.mxu0 %v8981_v37 }
 0x3fc   : > { %12193 = vmatprep.mubr.f32.mxu0 %v13885_v51  ;;  %12187 = vmatmul.mubr.f32.vlgmr.msra.gmra.mxu1 %v13875_v63  ;;  %v9480_v51 = vsub.f32 %v9478_v50, %v9479_v10 }
 0x3fd   : > { %12194 = vmatmul.mubr.f32.vlgmr.msra.gmra.mxu0 %v13891_v28  ;;  %12196 = vmatprep.subr.mxu1 %v14178_v34  ;;  %v9487_v28 = vsub.f32 %v9485_v35, %v9486_v39 }
 0x3fe   : > { %12203 = vmatprep.subr.mxu0 %v8975_v53  ;;  %12197 = vmatpush3.msra.mxu1 %v14178_v34 }
 0x3ff   : > { %12204 = vmatpush3.msra.mxu0 %v8975_v53  ;;  %12198 = vmatprep.subr.mxu1 %v14183_v59 }
 0x400   : > { %12205 = vmatprep.subr.mxu0 %v8982_v18  ;;  %12199 = vmatpush3.msra.mxu1 %v14183_v59 }
 0x401   : > { %12200 = vmatprep.mubr.f32.mxu1 %v13906_v61  ;;  %12206 = vmatpush3.msra.mxu0 %v8982_v18  ;;  %v9481_v61 = vand.u32 4294901760, %v9480_v51 }
 0x402   : > { %12207 = vmatprep.mubr.f32.mxu0 %v13866_v58  ;;  %12201 = vmatmul.mubr.f32.vlgmr.msra.gmra.mxu1 %v13912_v46  ;;  %v9488_v46 = vand.u32 4294901760, %v9487_v28 }
 0x403   : > { %12208 = vmatmul.mubr.f32.vlgmr.msra.gmra.mxu0 %v13875_v63  ;;  %12210 = vmatprep.subr.mxu1 %v14178_v34 }
 0x404   : > { %12217 = vmatprep.subr.mxu0 %v14214_v9  ;;  %12211 = vmatpush3.msra.mxu1 %v14178_v34 }
 0x405   : > { %12218 = vmatpush3.msra.mxu0 %v14214_v9  ;;  %12212 = vmatprep.subr.mxu1 %v14183_v59 }
 0x406   : > { %12219 = vmatprep.subr.mxu0 %v14219_v5  ;;  %12213 = vmatpush3.msra.mxu1 %v14183_v59 }
 0x407   : > { %12214 = vmatprep.mubr.f32.mxu1 %v13866_v58  ;;  %12220 = vmatpush3.msra.mxu0 %v14219_v5 }
 0x408   : > { %12221 = vmatprep.mubr.f32.mxu0 %v14012_v57  ;;  %12215 = vmatmul.mubr.f32.vlgmr.msra.gmra.mxu1 %v13875_v63 }
 0x409   : > { %12222 = vmatmul.mubr.f32.vlgmr.msra.gmra.mxu0 %v14016_v14  ;;  %12224 = vmatprep.subr.mxu1 %v9481_v61 }
 0x40a   : > { %12231 = vmatprep.subr.mxu0 %v9478_v50  ;;  %12225 = vmatpush3.msra.mxu1 %v9481_v61 }
 0x40b   : > { %12232 = vmatpush3.msra.mxu0 %v9478_v50  ;;  %12226 = vmatprep.subr.mxu1 %v9488_v46 }
 0x40c   : > { %12233 = vmatprep.subr.mxu0 %v9485_v35  ;;  %12227 = vmatpush3.msra.mxu1 %v9488_v46 }
 0x40d   : > { %12228 = vmatprep.mubr.f32.mxu1 %v13958_v7  ;;  %12234 = vmatpush3.msra.mxu0 %v9485_v35 }
 0x40e   : > { %12235 = vmatprep.mubr.f32.mxu0 %v13973_v27  ;;  %12229 = vmatmul.mubr.f32.vlgmr.msra.gmra.mxu1 %v13964_v23 }
 0x40f   : > { %12236 = vmatmul.mubr.f32.vlgmr.msra.gmra.mxu0 %v13977_v54  ;;  %12238 = vmatprep.subr.mxu1 %v14214_v9 }
 0x410   : > { %12245 = vmatprep.subr.mxu0 %v9479_v10  ;;  %12239 = vmatpush3.msra.mxu1 %v14214_v9 }
 0x411   : > { %12246 = vmatpush3.msra.mxu0 %v9479_v10  ;;  %12240 = vmatprep.subr.mxu1 %v14219_v5 }
 0x412   : > { %12247 = vmatprep.subr.mxu0 %v9486_v39  ;;  %12241 = vmatpush3.msra.mxu1 %v14219_v5 }
 0x413   : > { %12242 = vmatprep.mubr.f32.mxu1 %v13987_v21  ;;  %12248 = vmatpush3.msra.mxu0 %v9486_v39 }
 0x414   : > { %12249 = vmatprep.mubr.f32.mxu0 %v13958_v7  ;;  %12243 = vmatmul.mubr.f32.vlgmr.msra.gmra.mxu1 %v13992_v16 }
 0x415   : > { %12250 = vmatmul.mubr.f32.vlgmr.msra.gmra.mxu0 %v13964_v23  ;;  %12252 = vmatprep.subr.mxu1 %v14214_v9 }
 0x416   : > { %12253 = vmatpush3.msra.mxu1 %v14214_v9  ;;  %12256 = vmatprep.mubr.f32.mxu1 %v13958_v7 }
 0x417   : > { %12254 = vmatprep.subr.mxu1 %v14219_v5  ;;  %12259 = vmatprep.subr.mxu0 %v12535_v55 }
 0x418   : > { %12255 = vmatpush3.msra.mxu1 %v14219_v5  ;;  %12263 = vmatprep.mubr.msk.f32.mxu0 %vm12536_vm2, %v12535_v55 }
 0x419   : > { %12257 = vmatmul.mubr.f32.vlgmr.msra.gmra.mxu1 %v13964_v23  ;;  %12266 = vmatprep.subr.mxu1 %v12535_v55 }
 0x41a   : > { %12270 = vmatprep.mubr.msk.f32.mxu1 %vm12536_vm2, %v12535_v55 }
 0x481   : > { %v7498_v58 = vpop.f32.mrf.mxu0 }
 0x483   : > { %v12055_v63 = vpop.f32.mrf.mxu0 }
 0x485   : > { %v7655_v27 = vpop.f32.mrf.mxu0 }
 0x487   : > { %v12069_v7 = vpop.f32.mrf.mxu0 }
 0x489   : > { %v7579_v54 = vpop.f32.mrf.mxu1 }
 0x48a   : > { %v7580_v21 = vadd.f32 %v7579_v54, %v7498_v58 }
 0x48b   : > { %v12062_v16 = vpop.f32.mrf.mxu1  ;;  %v7807_v57 = vpop.f32.mrf.mxu0 }
 0x48c   : > { %v7656_v14 = vadd.f32 %v7655_v27, %v7580_v21 }
 0x48d   : > { %v12083_v3 = vpop.f32.mrf.mxu0 }
 0x48f   : > { %v7730_v30 = vpop.f32.mrf.mxu1 }
 0x490   : > { %v7731_v43 = vadd.f32 %v7730_v30, %v7656_v14 }
 0x491   : > { %v12076_v42 = vpop.f32.mrf.mxu1  ;;  %v7963_v23 = vpop.f32.mrf.mxu0 }
 0x492   : > { %v7808_v45 = vadd.f32 %v7807_v57, %v7731_v43 }
 0x493   : > { %v12097_v20 = vpop.f32.mrf.mxu0 }
 0x495   : > { %v7880_v41 = vpop.f32.mrf.mxu1 }
 0x496   : > { %v7881_v22 = vadd.f32 %v7880_v41, %v7808_v45 }
 0x497   : > { %v12090_v38 = vpop.f32.mrf.mxu1  ;;  %v8120_v25 = vpop.f32.mrf.mxu0 }
 0x498   : > { %11048 = vst.msk [vmem:[%s13468_s9 + $0x20] sm:$0xff] %vm2974_vm3, %v7881_v22 }
 0x499   : > { %v12111_v24 = vpop.f32.mrf.mxu0 }
 0x49b   : > { %v8044_v15 = vpop.f32.mrf.mxu1 }
 0x49c   : > { %v8045_v0 = vadd.f32 %v8044_v15, %v7963_v23 }
 0x49d   : > { %v12104_v12 = vpop.f32.mrf.mxu1 }
 0x49e   : > { %v8121_v48 = vadd.f32 %v8120_v25, %v8045_v0  ;;  %v8272_v40 = vpop.f32.mrf.mxu0 }
 0x49f   : > { %v8195_v4 = vpop.f32.mrf.mxu1 }
 0x4a0   : > { %v8196_v13 = vadd.f32 %v8195_v4, %v8121_v48  ;;  %v12125_v49 = vpop.f32.mrf.mxu0 }
 0x4a1   : > { %v12118_v8 = vpop.f32.mrf.mxu1 }
 0x4a2   : > { %v8273_v60 = vadd.f32 %v8272_v40, %v8196_v13 }
 0x4a4   : > { %v8345_v62 = vpop.f32.mrf.mxu1 }
 0x4a5   : > { %v8346_v52 = vadd.f32 %v8345_v62, %v8273_v60  ;;  %v12139_v34 = vpop.f32.mrf.mxu0 }
 0x4a6   : > { %v12132_v59 = vpop.f32.mrf.mxu1 }
 0x4a7   : > { %11050 = vst.msk [vmem:[%s13468_s9 + $0x30] sm:$0xff] %vm2974_vm3, %v8346_v52  ;;  %v8428_v17 = vpop.f32.mrf.mxu0 }
 0x4aa   : > { %v12146_v37 = vpop.f32.mrf.mxu1 }
 0x4ab   : > { %v12153_v53 = vpop.f32.mrf.mxu0  ;;  %v8526_v29 = vadd.f32 %v12146_v37, %v12139_v34 }
 0x4ac   : > { %v8519_v18 = vpop.f32.mrf.mxu1 }
 0x4ad   : > { %v8601_v36 = vpop.f32.mrf.mxu0  ;;  %v8520_v9 = vadd.f32 %v8519_v18, %v8428_v17  ;;  %v8609_v5 = vadd.f32 %v12153_v53, %v8526_v29 }
 0x4af   : > { %v8602_v10 = vadd.f32 %v8601_v36, %v8520_v9 }
 0x4b0   : > { %v12160_v11 = vpop.f32.mrf.mxu1 }
 0x4b1   : > { %v12167_v33 = vpop.f32.mrf.mxu0  ;;  %v8692_v28 = vadd.f32 %v12160_v11, %v8609_v5 }
 0x4b2   : > { %v8683_v1 = vpop.f32.mrf.mxu1 }
 0x4b3   : > { %v8768_v56 = vpop.f32.mrf.mxu0  ;;  %v8684_v61 = vadd.f32 %v8683_v1, %v8602_v10  ;;  %v8775_v63 = vadd.f32 %v12167_v33, %v8692_v28 }
 0x4b5   : > { %v8769_v54 = vadd.f32 %v8768_v56, %v8684_v61 }
 0x4b6   : > { %v12174_v50 = vpop.f32.mrf.mxu1 }
 0x4b7   : > { %v12181_v35 = vpop.f32.mrf.mxu0  ;;  %v8854_v21 = vadd.f32 %v12174_v50, %v8775_v63 }
 0x4b8   : > { %v8847_v39 = vpop.f32.mrf.mxu1 }
 0x4b9   : > { %v8930_v51 = vpop.f32.mrf.mxu0  ;;  %v8848_v14 = vadd.f32 %v8847_v39, %v8769_v54  ;;  %v8941_v43 = vadd.f32 %v12181_v35, %v8854_v21 }
 0x4bb   : > { %v8931_v42 = vadd.f32 %v8930_v51, %v8848_v14 }
 0x4bc   : > { %v12188_v46 = vpop.f32.mrf.mxu1 }
 0x4bd   : > { %v12195_v58 = vpop.f32.mrf.mxu0  ;;  %v9028_v20 = vadd.f32 %v12188_v46, %v8941_v43 }
 0x4be   : > { %v9021_v27 = vpop.f32.mrf.mxu1 }
 0x4bf   : > { %v9103_v7 = vpop.f32.mrf.mxu0  ;;  %v9022_v38 = vadd.f32 %v9021_v27, %v8931_v42  ;;  %v9111_v25 = vadd.f32 %v12195_v58, %v9028_v20 }
 0x4c1   : > { %v9104_v12 = vadd.f32 %v9103_v7, %v9022_v38 }
 0x4c2   : > { %v12202_v16 = vpop.f32.mrf.mxu1 }
 0x4c3   : > { %v12209_v57 = vpop.f32.mrf.mxu0  ;;  %v9194_v49 = vadd.f32 %v12202_v16, %v9111_v25 }
 0x4c4   : > { %v9185_v3 = vpop.f32.mrf.mxu1 }
 0x4c5   : > { %v9270_v30 = vpop.f32.mrf.mxu0  ;;  %v9186_v60 = vadd.f32 %v9185_v3, %v9104_v12  ;;  %v9277_v59 = vadd.f32 %v12209_v57, %v9194_v49 }
 0x4c7   : > { %v9271_v18 = vadd.f32 %v9270_v30, %v9186_v60 }
 0x4c8   : > { %v12216_v23 = vpop.f32.mrf.mxu1 }
 0x4c9   : > { %v12223_v45 = vpop.f32.mrf.mxu0  ;;  %v9356_v29 = vadd.f32 %v12216_v23, %v9277_v59 }
 0x4ca   : > { %v9349_v41 = vpop.f32.mrf.mxu1 }
 0x4cb   : > { %v9434_v22 = vpop.f32.mrf.mxu0  ;;  %v9350_v9 = vadd.f32 %v9349_v41, %v9271_v18 }
 0x4ce   : > { %v12230_v24 = vpop.f32.mrf.mxu1 }
 0x4cf   : > { %v9532_v15 = vadd.f32 %v12230_v24, %v12223_v45  ;;  %v12237_v0 = vpop.f32.mrf.mxu0 }
 0x4d0   : > { %v9525_v48 = vpop.f32.mrf.mxu1 }
 0x4d1   : > { %v9615_v40 = vadd.f32 %v12237_v0, %v9532_v15  ;;  %v9526_v4 = vadd.f32 %v9525_v48, %v9434_v22  ;;  %v9607_v13 = vpop.f32.mrf.mxu0 }
 0x4d3   : > { %v9608_v8 = vadd.f32 %v9607_v13, %v9526_v4 }
 0x4d4   : > { %v12244_v62 = vpop.f32.mrf.mxu1 }
 0x4d5   : > { %v9698_v52 = vadd.f32 %v12244_v62, %v9615_v40  ;;  %v12251_v34 = vpop.f32.mrf.mxu0 }
 0x4d6   : > { %v9689_v17 = vpop.f32.mrf.mxu1 }
 0x4d7   : > { %v9781_v37 = vadd.f32 %v12251_v34, %v9698_v52  ;;  %v9690_v53 = vadd.f32 %v9689_v17, %v9608_v8  ;;  %v9774_v36 = vpop.f32.mrf.mxu0 }
 0x4d9   : > { %v9775_v11 = vadd.f32 %v9774_v36, %v9690_v53  ;;  %v12258_v33 = vpop.f32.mrf.mxu1 }
 0x4da   : > { %v9860_v1 = vadd.f32 %v12258_v33, %v9781_v37 }
 0x4db   : > { %v9853_v56 = vpop.f32.mrf.mxu1 }
 0x4dc   : > { %v9864_v5 = vadd.f32 %v9860_v1, %v9356_v29  ;;  %v9854_v50 = vadd.f32 %v9853_v56, %v9775_v11 }
 0x4de   : > { %v14275_v35 = vand.u32 4294901760, %v9864_v5  ;;  %v9863_v10 = vadd.f32 %v9854_v50, %v9350_v9 }
 0x4e0   : > { %v9976_v39 = vsub.f32 %v9864_v5, %v14275_v35  ;;  %v14278_v51 = vand.u32 4294901760, %v9863_v10  ;;  %12260 = vmatpush3.msra.mxu0 %v14275_v35 }
 0x4e1   : > { %12261 = vmatprep.subr.mxu0 %v12535_v55 }
 0x4e2   : > { %v9983_v28 = vsub.f32 %v9863_v10, %v14278_v51  ;;  %12262 = vmatpush3.msra.mxu0 %v14278_v51  ;;  %v9977_v61 = vand.u32 4294901760, %v9976_v39 }
 0x4e3   : > { %12273 = vmatprep.subr.mxu0 %v12535_v55  ;;  %12264 = vmatmul.mubr.f32.vlgmr.msra.gmra.mxu0 %v14073_v2 }
 0x4e4   : > { %12274 = vmatpush3.msra.mxu0 %v9976_v39  ;;  %12277 = vmatprep.mubr.msk.f32.mxu0 %vm12536_vm2, %v12535_v55  ;;  %v9978_v46 = vsub.f32 %v9976_v39, %v9977_v61  ;;  %v9984_v58 = vand.u32 4294901760, %v9983_v28 }
 0x4e5   : > { %12275 = vmatprep.subr.mxu0 %v12535_v55 }
 0x4e6   : > { %12276 = vmatpush3.msra.mxu0 %v9983_v28  ;;  %v9979_v63 = vand.u32 4294901760, %v9978_v46  ;;  %v9985_v27 = vsub.f32 %v9983_v28, %v9984_v58 }
 0x4e7   : > { %12287 = vmatprep.subr.mxu0 %v12535_v55  ;;  %12278 = vmatmul.mubr.f32.vlgmr.msra.gmra.mxu0 %v14060_v26 }
 0x4e8   : > { %12267 = vmatpush3.msra.mxu1 %v9979_v63  ;;  %12288 = vmatpush3.msra.mxu0 %v9977_v61  ;;  %v9986_v7 = vand.u32 4294901760, %v9985_v27 }
 0x4e9   : > { %12268 = vmatprep.subr.mxu1 %v12535_v55  ;;  %12289 = vmatprep.subr.mxu0 %v12535_v55 }
 0x4ea   : > { %12269 = vmatpush3.msra.mxu1 %v9986_v7  ;;  %12290 = vmatpush3.msra.mxu0 %v9984_v58 }
 0x4eb   : > { %12271 = vmatmul.mubr.f32.vlgmr.msra.gmra.mxu1 %v14057_v47  ;;  %12280 = vmatprep.subr.mxu1 %v12535_v55 }
 0x4ec   : > { %12291 = vmatprep.mubr.msk.f32.mxu0 %vm12536_vm2, %v12535_v55  ;;  %12301 = vmatprep.subr.mxu0 %v12535_v55 }
 0x4ed   : > { %12281 = vmatpush3.msra.mxu1 %v14275_v35  ;;  %12292 = vmatmul.mubr.f32.vlgmr.msra.gmra.mxu0 %v14057_v47 }
 0x4ee   : > { %12302 = vmatpush3.msra.mxu0 %v14275_v35  ;;  %12282 = vmatprep.subr.mxu1 %v12535_v55 }
 0x4ef   : > { %12303 = vmatprep.subr.mxu0 %v12535_v55  ;;  %12283 = vmatpush3.msra.mxu1 %v14278_v51 }
 0x4f0   : > { %12284 = vmatprep.mubr.msk.f32.mxu1 %vm12536_vm2, %v12535_v55  ;;  %12304 = vmatpush3.msra.mxu0 %v14278_v51 }
 0x4f1   : > { %12285 = vmatmul.mubr.f32.vlgmr.msra.gmra.mxu1 %v14063_v19  ;;  %12294 = vmatprep.subr.mxu1 %v12535_v55 }
 0x4f2   : > { %12305 = vmatprep.mubr.msk.f32.mxu0 %vm12536_vm2, %v12535_v55  ;;  %12315 = vmatprep.subr.mxu0 %v12535_v55 }
 0x4f3   : > { %12295 = vmatpush3.msra.mxu1 %v14275_v35  ;;  %12306 = vmatmul.mubr.f32.vlgmr.msra.gmra.mxu0 %v14112_v6 }
 0x4f4   : > { %12316 = vmatpush3.msra.mxu0 %v9976_v39  ;;  %12296 = vmatprep.subr.mxu1 %v12535_v55 }
 0x4f5   : > { %12317 = vmatprep.subr.mxu0 %v12535_v55  ;;  %12297 = vmatpush3.msra.mxu1 %v14278_v51 }
 0x4f6   : > { %12298 = vmatprep.mubr.msk.f32.mxu1 %vm12536_vm2, %v12535_v55  ;;  %12318 = vmatpush3.msra.mxu0 %v9983_v28 }
 0x4f7   : > { %12299 = vmatmul.mubr.f32.vlgmr.msra.gmra.mxu1 %v14057_v47  ;;  %12308 = vmatprep.subr.mxu1 %v12535_v55 }
 0x4f8   : > { %12319 = vmatprep.mubr.msk.f32.mxu0 %vm12536_vm2, %v12535_v55  ;;  %12329 = vmatprep.subr.mxu0 %v12535_v55 }
 0x4f9   : > { %12309 = vmatpush3.msra.mxu1 %v9979_v63  ;;  %12320 = vmatmul.mubr.f32.vlgmr.msra.gmra.mxu0 %v14087_v31 }
 0x4fa   : > { %12330 = vmatpush3.msra.mxu0 %v9977_v61  ;;  %12310 = vmatprep.subr.mxu1 %v12535_v55 }
 0x4fb   : > { %12331 = vmatprep.subr.mxu0 %v12535_v55  ;;  %12311 = vmatpush3.msra.mxu1 %v9986_v7 }
 0x4fc   : > { %12312 = vmatprep.mubr.msk.f32.mxu1 %vm12536_vm2, %v12535_v55  ;;  %12332 = vmatpush3.msra.mxu0 %v9984_v58 }
 0x4fd   : > { %12313 = vmatmul.mubr.f32.vlgmr.msra.gmra.mxu1 %v14075_v32  ;;  %12322 = vmatprep.subr.mxu1 %v12535_v55 }
 0x4fe   : > { %12323 = vmatpush3.msra.mxu1 %v14275_v35  ;;  %12326 = vmatprep.mubr.msk.f32.mxu1 %vm12536_vm2, %v12535_v55 }
 0x4ff   : > { %12324 = vmatprep.subr.mxu1 %v12535_v55  ;;  %12333 = vmatprep.mubr.msk.f32.mxu0 %vm12536_vm2, %v12535_v55 }
 0x500   : > { %12325 = vmatpush3.msra.mxu1 %v14278_v51  ;;  %12334 = vmatmul.mubr.f32.vlgmr.msra.gmra.mxu0 %v14075_v32 }
 0x501   : > { %12327 = vmatmul.mubr.f32.vlgmr.msra.gmra.mxu1 %v14095_v44  ;;  %12336 = vmatprep.subr.mxu1 %v12535_v55 }
 0x502   : > { %12337 = vmatpush3.msra.mxu1 %v14275_v35  ;;  %12340 = vmatprep.mubr.msk.f32.mxu1 %vm12536_vm2, %v12535_v55 }
 0x503   : > { %12338 = vmatprep.subr.mxu1 %v12535_v55 }
 0x504   : > { %12339 = vmatpush3.msra.mxu1 %v14278_v51 }
 0x505   : > { %12341 = vmatmul.mubr.f32.vlgmr.msra.gmra.mxu1 %v14075_v32 }
 0x5a3   : > { %v9942_v47 = vpop.f32.mrf.mxu0 }
 0x5a5   : > { %v12265_v26 = vpop.f32.mrf.mxu0 }
 0x5a7   : > { %v10099_v19 = vpop.f32.mrf.mxu0 }
 0x5a9   : > { %v12279_v2 = vpop.f32.mrf.mxu0 }
 0x5ab   : > { %v10023_v31 = vpop.f32.mrf.mxu1 }
 0x5ac   : > { %v10024_v44 = vadd.f32 %v10023_v31, %v9942_v47 }
 0x5ad   : > { %v12272_v6 = vpop.f32.mrf.mxu1  ;;  %v10251_v54 = vpop.f32.mrf.mxu0 }
 0x5ae   : > { %v10100_v21 = vadd.f32 %v10099_v19, %v10024_v44 }
 0x5af   : > { %v12293_v16 = vpop.f32.mrf.mxu0 }
 0x5b1   : > { %v10174_v57 = vpop.f32.mrf.mxu1 }
 0x5b2   : > { %v10175_v14 = vadd.f32 %v10174_v57, %v10100_v21 }
 0x5b3   : > { %v12286_v3 = vpop.f32.mrf.mxu1  ;;  %v10407_v30 = vpop.f32.mrf.mxu0 }
 0x5b4   : > { %v10252_v55 = vadd.f32 %v10251_v54, %v10175_v14 }
 0x5b5   : > { %v12307_v43 = vpop.f32.mrf.mxu0 }
 0x5b7   : > { %v10324_v32 = vpop.f32.mrf.mxu1 }
 0x5b8   : > { %v10325_v42 = vadd.f32 %v10324_v32, %v10252_v55 }
 0x5b9   : > { %v12300_v23 = vpop.f32.mrf.mxu1  ;;  %v10564_v45 = vpop.f32.mrf.mxu0 }
 0x5ba   : > { %11057 = vst.msk [vmem:[%s13468_s9 + $0x28] sm:$0xff] %vm2974_vm3, %v10325_v42 }
 0x5bb   : > { %v12321_v20 = vpop.f32.mrf.mxu0 }
 0x5bd   : > { %v10488_v41 = vpop.f32.mrf.mxu1 }
 0x5be   : > { %v10489_v22 = vadd.f32 %v10488_v41, %v10407_v30 }
 0x5bf   : > { %v12314_v38 = vpop.f32.mrf.mxu1 }
 0x5c0   : > { %v10565_v25 = vadd.f32 %v10564_v45, %v10489_v22  ;;  %v10716_v24 = vpop.f32.mrf.mxu0 }
 0x5c1   : > { %v10639_v15 = vpop.f32.mrf.mxu1 }
 0x5c2   : > { %v10640_v0 = vadd.f32 %v10639_v15, %v10565_v25  ;;  %v12335_v12 = vpop.f32.mrf.mxu0 }
 0x5c3   : > { %v12328_v48 = vpop.f32.mrf.mxu1 }
 0x5c4   : > { %v10717_v40 = vadd.f32 %v10716_v24, %v10640_v0 }
 0x5c5   : > { %v10789_v4 = vpop.f32.mrf.mxu1 }
 0x5c6   : > { %v10790_v13 = vadd.f32 %v10789_v4, %v10717_v40 }
 0x5c7   : > { %v12342_v49 = vpop.f32.mrf.mxu1 }
 0x5c8   : > { %11059 = vst.msk [vmem:[%s13468_s9 + $0x38] sm:$0xff] %vm2974_vm3, %v10790_v13 }
 0x5c9   : > { %12465 = shalt.err (!%p12462_p6)
}
 0x5ca   : > { %s12466_s9 = scalar_lea.hbm %s14354_s0, 1024  ;;  %s12470_s18 = scalar_lea.hbm %s14412_s6, 2048 }
 0x5cb   : > { %p12467_p7 = scmp.ne.s32.totalorder %s14354_s0, %s12466_s9  ;;  %p12471_p10 = scmp.lt.s32.totalorder %s14354_s0, %s14412_s6 }
 0x5cc   : > { %p12472_p4 = scmp.lt.s32.totalorder %s12470_s18, %s12466_s9 }
 0x5cd   : > { %p12468_p8 = pnand %p12467_p7, %p14431_p12 }
 0x5ce   : > { %p12473_p11 = por %p12472_p4, %p12471_p10 }
 0x5cf   : > { %p12469_p9 = pneg %p12468_p8 }
 0x5d1   : > { %p12474_p13 = pnand %p12473_p11, %p12469_p9 }
 0x5d3   : > { %12477 = shalt.err (!%p12474_p13)
}
 0x5d4   : > { %s12538_s28 = smov 128   ;;  %s12539_s1 = smov 8  }
 0x5d5   : > { %12347 = dma.vmem_to_hbm [thread:$0]  (%p14431_p12), %s14356_s17, 1024, %s14354_s0, %s10796_s30, %s12538_s28, %s12538_s28, %s12539_s1  }
 0x5d6 PF: > { %s10825_s27 = sand.u32 1, %s12512_s21   ;;  %p14432_p0 = scmp.ne.s32.totalorder %s14422_s11, 0 }
 0x5d7   : > { %s10826_s24 = scalar_lea.sflag [#allocation6], %s10825_s27 }
 0x5d8   : > { %p12354_p1 = pnand %p10944_p5, %p14432_p0 }
 0x5da   : > { %p12355_p2 = pneg %p12354_p1 }
 0x5dc   : > { %12507 = dma.done.wait (%p12355_p2), %s10826_s24, 1024  }
 0x5dd   : > { %12509 = vsyncadd (%p12355_p2), %s10826_s24, 4294966272  ;;  %s20_s26 = sadd.s32 1, %s12532_s26   ;;  %s14433_s21 = smov %s12516_s22 }
 0x5de   : > { %p17_p3 = scmp.ge.s32.totalorder %s20_s26, 4   ;;  %s14434_s22 = smov %s12520_s23 }
 0x5df   : > { %s14435_s23 = smov %s12629_s10  ;;  %s14436_s24 = smov %s12528_s25 }
 0x5e0   : > { %s14437_s25 = smov %s14439_s29  ;;  %19 = sbr.rel (!%p17_p3) target bundleno = 8 (0x8), region = 192 }
 0x5e5   :  { %10831 = vsyncpa [#allocation6], 1 }
 0x5e6   :  { %10833 = vsyncpa [#allocation6 + $0x1], 1 }
 0x5e7   :  { %10834 = vsyncpa [#allocation7], 1 }
 0x5e8   :  { %10836 = vsyncpa [#allocation7 + $0x1], 1 }

</bundles_post_ra>
